<compile_context>
chip_gen: v6e
topology: v6e:2x2x1
jax: 0.10.0
libtpu: 0.0.40
codegen_flags: <defaults>
</compile_context>

<pallas_src>
import functools
import numpy as np
import jax
import jax.numpy as jnp
from jax.experimental import pallas as pl
from jax.experimental.pallas import tpu as pltpu

# ----------------------- small, module-consistent config -----------------------
BATCH = 2
N_MELS = 8          # dims.n_mels          (whisper "base": 80)
N_FRAMES = 16       # whisper N_FRAMES     (real: 3000)
N_CTX = N_FRAMES // 2   # dims.n_audio_ctx (conv2 has stride 2)
N_STATE = 32        # dims.n_audio_state   (real: 512)
N_HEAD = 4          # dims.n_audio_head
N_LAYER = 2         # dims.n_audio_layer
UP_CH = 64          # ConvTranspose1d out_channels (real: 512)
VOCAB = 128         # final Linear out features    (real: 9001)
T_IN = 20           # input time length (<= 2*N_FRAMES)
LN_EPS = 1e-5


# --------------------------- in-kernel math helpers ----------------------------

def _erf_approx(x):
    # TODO(synk): PyTorch nn.GELU() uses exact erf; lax.erf has no guaranteed
    # Mosaic lowering, so we use the Abramowitz & Stegun 7.1.26 polynomial
    # (|err| <= 1.5e-7) built from exp/mul/add, which always lowers.
    a1, a2, a3, a4, a5 = 0.254829592, -0.284496736, 1.421413741, -1.453152027, 1.061405429
    p = 0.3275911
    ax = jnp.abs(x)
    t = 1.0 / (1.0 + p * ax)
    poly = ((((a5 * t + a4) * t + a3) * t + a2) * t + a1) * t
    y = 1.0 - poly * jnp.exp(-ax * ax)
    return jnp.where(x >= 0, y, -y)


def _gelu(x):
    return 0.5 * x * (1.0 + _erf_approx(x * 0.7071067811865476))


def _ln(x, g, b, eps):
    mean = jnp.mean(x, axis=-1, keepdims=True)
    xc = x - mean
    var = jnp.mean(xc * xc, axis=-1, keepdims=True)
    return xc * jax.lax.rsqrt(var + eps) * g + b


# ------------------------------ Pallas kernels ---------------------------------

def _conv_taps_kernel(x_ref, w_ref, b_ref, o_ref, *, apply_gelu):
    """Stride-1 Conv1d as K shifted tap-matmuls, bias (+GELU) fused.
    x_ref: (Tp, Cin) padded input, w_ref: (K, Cin, Cout), b_ref: (1, Cout),
    o_ref: (Tout, Cout)."""
    K = w_ref.shape[0]
    Tout, Cout = o_ref.shape
    x = x_ref[...].astype(jnp.float32)
    acc = jnp.zeros((Tout, Cout), jnp.float32)
    for k in range(K):
        acc = acc + jnp.dot(x[k:k + Tout, :], w_ref[k].astype(jnp.float32),
                            preferred_element_type=jnp.float32)
    y = acc + b_ref[...]
    if apply_gelu:
        y = _gelu(y)
    o_ref[...] = y.astype(o_ref.dtype)


def _conv2_gelu_pos_kernel(he_ref, ho_ref, w_ref, b_ref, pos_ref, o_ref):
    """Stride-2 Conv1d (K=3, pad=1) via even/odd phase inputs, fused with
    bias + GELU + positional-embedding add.
    he/ho: (Te, D) even/odd time phases of the padded input."""
    Tout, Cout = o_ref.shape
    he = he_ref[...].astype(jnp.float32)
    ho = ho_ref[...].astype(jnp.float32)
    acc = jnp.dot(he[0:Tout, :], w_ref[0].astype(jnp.float32),
                  preferred_element_type=jnp.float32)
    acc = acc + jnp.dot(ho[0:Tout, :], w_ref[1].astype(jnp.float32),
                        preferred_element_type=jnp.float32)
    acc = acc + jnp.dot(he[1:Tout + 1, :], w_ref[2].astype(jnp.float32),
                        preferred_element_type=jnp.float32)
    y = _gelu(acc + b_ref[...]) + pos_ref[...]
    o_ref[...] = y.astype(o_ref.dtype)


def _block_kernel(x_ref, ln1_g, ln1_b, qkv_w, qkv_b, out_w, out_b,
                  ln2_g, ln2_b, mlp0_w, mlp0_b, mlp2_w, mlp2_b,
                  lnp_g, lnp_b, o_ref, *, n_head, eps, apply_post_ln):
    """One fused ResidualAttentionBlock (optionally followed by ln_post)."""
    T, D = x_ref.shape
    dh = D // n_head
    x = x_ref[...].astype(jnp.float32)

    # ---- self-attention (pre-LN) ----
    h = _ln(x, ln1_g[...], ln1_b[...], eps)
    qkv = jnp.dot(h, qkv_w[...], preferred_element_type=jnp.float32) + qkv_b[...]
    scale2 = float(dh) ** -0.5                 # (dh**-0.25)**2 folded into q only
    heads = []
    for i in range(n_head):
        q = qkv[:, i * dh:(i + 1) * dh] * scale2
        k = qkv[:, D + i * dh:D + (i + 1) * dh]
        v = qkv[:, 2 * D + i * dh:2 * D + (i + 1) * dh]
        s = jax.lax.dot_general(q, k, (((1,), (1,)), ((), ())),
                                preferred_element_type=jnp.float32)   # (T, T)
        m = jnp.max(s, axis=-1, keepdims=True)
        e = jnp.exp(s - m)
        p = e * pl.reciprocal(jnp.sum(e, axis=-1, keepdims=True), approx=True)
        heads.append(jnp.dot(p, v, preferred_element_type=jnp.float32))
    attn = jnp.concatenate(heads, axis=-1)                            # (T, D)
    x = x + jnp.dot(attn, out_w[...], preferred_element_type=jnp.float32) + out_b[...]

    # ---- MLP (pre-LN) ----
    h = _ln(x, ln2_g[...], ln2_b[...], eps)
    h = _gelu(jnp.dot(h, mlp0_w[...], preferred_element_type=jnp.float32) + mlp0_b[...])
    x = x + jnp.dot(h, mlp2_w[...], preferred_element_type=jnp.float32) + mlp2_b[...]

    if apply_post_ln:
        x = _ln(x, lnp_g[...], lnp_b[...], eps)
    o_ref[...] = x.astype(o_ref.dtype)


def _final_kernel(x_ref, w_ref, b_ref, lp_ref, lg_ref):
    """Final Linear fused with log_softmax; emits log-probs and raw logits."""
    x = x_ref[...].astype(jnp.float32)
    logits = jnp.dot(x, w_ref[...], preferred_element_type=jnp.float32) + b_ref[...]
    m = jnp.max(logits, axis=-1, keepdims=True)
    s = logits - m
    lse = jnp.log(jnp.sum(jnp.exp(s), axis=-1, keepdims=True))
    lp_ref[...] = (s - lse).astype(lp_ref.dtype)
    lg_ref[...] = logits.astype(lg_ref.dtype)


# ------------------------------ kernel wrappers --------------------------------

_PARALLEL = pltpu.CompilerParams(dimension_semantics=("parallel",))


def conv_taps(x_pad, w_taps, bias, *, tout, apply_gelu):
    """x_pad: (BB, Tp, Cin), w_taps: (K, Cin, Cout) -> (BB, tout, Cout)."""
    BB, Tp, Cin = x_pad.shape
    K, _, Cout = w_taps.shape
    return pl.pallas_call(
        functools.partial(_conv_taps_kernel, apply_gelu=apply_gelu),
        out_shape=jax.ShapeDtypeStruct((BB, tout, Cout), x_pad.dtype),
        grid=(BB,),
        in_specs=[pl.BlockSpec((None, Tp, Cin), lambda b: (b, 0, 0)),
                  pl.BlockSpec((K, Cin, Cout), lambda b: (0, 0, 0)),
                  pl.BlockSpec((1, Cout), lambda b: (0, 0))],
        out_specs=pl.BlockSpec((None, tout, Cout), lambda b: (b, 0, 0)),
        compiler_params=_PARALLEL,
    )(x_pad, w_taps, bias)


def conv2_gelu_pos(h_even, h_odd, w_taps, bias, pos):
    BB, Te, D = h_even.shape
    K, _, Cout = w_taps.shape
    Tout = pos.shape[0]
    return pl.pallas_call(
        _conv2_gelu_pos_kernel,
        out_shape=jax.ShapeDtypeStruct((BB, Tout, Cout), h_even.dtype),
        grid=(BB,),
        in_specs=[pl.BlockSpec((None, Te, D), lambda b: (b, 0, 0)),
                  pl.BlockSpec((None, Te, D), lambda b: (b, 0, 0)),
                  pl.BlockSpec((K, D, Cout), lambda b: (0, 0, 0)),
                  pl.BlockSpec((1, Cout), lambda b: (0, 0)),
                  pl.BlockSpec((Tout, Cout), lambda b: (0, 0))],
        out_specs=pl.BlockSpec((None, Tout, Cout), lambda b: (b, 0, 0)),
        compiler_params=_PARALLEL,
    )(h_even, h_odd, w_taps, bias, pos)


def block_fused(blk, lnp_g, lnp_b, x, *, apply_post_ln):
    """One ResidualAttentionBlock, gridded over the (stacked) batch axis."""
    BB, T, D = x.shape
    vec = lambda d: pl.BlockSpec((1, d), lambda b: (0, 0))
    mat = lambda r, c: pl.BlockSpec((r, c), lambda b: (0, 0))
    return pl.pallas_call(
        functools.partial(_block_kernel, n_head=N_HEAD, eps=LN_EPS,
                          apply_post_ln=apply_post_ln),
        out_shape=jax.ShapeDtypeStruct((BB, T, D), x.dtype),
        grid=(BB,),
        in_specs=[pl.BlockSpec((None, T, D), lambda b: (b, 0, 0)),
                  vec(D), vec(D),
                  mat(D, 3 * D), vec(3 * D),
                  mat(D, D), vec(D),
                  vec(D), vec(D),
                  mat(D, 4 * D), vec(4 * D),
                  mat(4 * D, D), vec(D),
                  vec(D), vec(D)],
        out_specs=pl.BlockSpec((None, T, D), lambda b: (b, 0, 0)),
        compiler_params=_PARALLEL,
    )(x, blk['ln1_g'], blk['ln1_b'], blk['qkv_w'], blk['qkv_b'],
      blk['out_w'], blk['out_b'], blk['ln2_g'], blk['ln2_b'],
      blk['mlp0_w'], blk['mlp0_b'], blk['mlp2_w'], blk['mlp2_b'],
      lnp_g, lnp_b)


def final_linear_logsoftmax(x2d, w, bias):
    """(N, UP_CH) -> (log_probs (N, V), logits (N, V)) in one fused kernel."""
    N, Din = x2d.shape
    V = w.shape[1]
    # TODO(synk): at real VOCAB=9001 pad V to a multiple of 128 and tile the
    # B*T rows (acc scratch + pl.when) — a single full slab is only OK at toy
    # sizes; same applies to the per-block matmuls at real Whisper dims.
    spec = pl.BlockSpec((N, V), lambda i: (0, 0))
    return pl.pallas_call(
        _final_kernel,
        out_shape=(jax.ShapeDtypeStruct((N, V), x2d.dtype),
                   jax.ShapeDtypeStruct((N, V), x2d.dtype)),
        grid=(1,),
        in_specs=[pl.BlockSpec((N, Din), lambda i: (0, 0)),
                  pl.BlockSpec((Din, V), lambda i: (0, 0)),
                  pl.BlockSpec((1, V), lambda i: (0, 0))],
        out_specs=(spec, spec),
    )(x2d, w, bias)


# ------------------------------- glue helpers ----------------------------------

def sinusoids(length, channels, max_timescale=10000):
    """Whisper positional embedding."""
    log_ts_inc = np.log(max_timescale) / (channels // 2 - 1)
    inv_timescales = np.exp(-log_ts_inc * np.arange(channels // 2))
    scaled_time = np.arange(length)[:, None] * inv_timescales[None, :]
    pe = np.concatenate([np.sin(scaled_time), np.cos(scaled_time)], axis=1)
    return jnp.asarray(pe, dtype=jnp.float32)


# --------------------------- Whisper encoder forward ----------------------------

def encoder_forward(kp, x):
    """x: (BB, N_FRAMES, n_mels) channels-last mel chunks -> (BB, N_CTX, N_STATE)."""
    # conv1 (k=3, s=1, p=1) + GELU, fused
    xp = jnp.pad(x, ((0, 0), (1, 1), (0, 0)))
    h = conv_taps(xp, kp['conv1_w'], kp['conv1_b'], tout=N_FRAMES, apply_gelu=True)
    # conv2 (k=3, s=2, p=1) + GELU + positional embedding, fused
    hp = jnp.pad(h, ((0, 0), (1, 1), (0, 0)))
    h_even = hp[:, 0::2, :]
    h_odd = hp[:, 1::2, :]
    x = conv2_gelu_pos(h_even, h_odd, kp['conv2_w'], kp['conv2_b'], kp['pos_emb'])
    assert x.shape[1:] == (N_CTX, N_STATE), 'incorrect audio shape'
    n_blocks = len(kp['blocks'])
    for li, blk in enumerate(kp['blocks']):
        x = block_fused(blk, kp['ln_post_g'], kp['ln_post_b'], x,
                        apply_post_ln=(li == n_blocks - 1))   # ln_post fused in last block
    return x


def upsample(kp, x):
    """ConvTranspose1d(D, UP_CH, k=5, s=2, p=1) over time, channels-last.
    x: (BB, L, D) -> (BB, (L-1)*2+3, UP_CH)."""
    BB, L, D = x.shape
    K = kp['up_w'].shape[0]
    stride, pad = 2, 1
    xu = jnp.zeros((BB, (L - 1) * stride + 1, D), x.dtype).at[:, ::stride, :].set(x)
    xp = jnp.pad(xu, ((0, 0), (K - 1 - pad, K - 1 - pad), (0, 0)))
    tout = (L - 1) * stride + K - 2 * pad
    return conv_taps(xp, kp['up_w'], kp['up_b'], tout=tout, apply_gelu=False)


# -------------------------------- Model forward ---------------------------------

def model_forward(kp, audio_mel_features):
    """audio_mel_features: (B, T, n_mels) -> (log_probs (B,T,V), logits_ce (B,V,T))."""
    B, T, _ = audio_mel_features.shape
    padded = jnp.pad(audio_mel_features, ((0, 0), (0, 2 * N_FRAMES - T), (0, 0)))
    # TODO(synk): the PyTorch module skips chunk2 when it is all-zero
    # (torch.is_nonzero host sync). We always process both chunks stacked on the
    # batch axis — identical result here (T > N_FRAMES) and whenever the final
    # [:T] slice stays inside chunk1's upsampled span — and it keeps the whole
    # forward jittable with a single encoder pass.
    chunks = jnp.concatenate([padded[:, :N_FRAMES, :], padded[:, N_FRAMES:, :]], axis=0)

    enc = encoder_forward(kp, chunks)          # (2B, N_CTX, D)
    up = upsample(kp, enc)                     # (2B, Tup, UP_CH)
    x = jnp.concatenate([up[:B], up[B:]], axis=1)      # (B, 2*Tup, UP_CH)
    x = x[:, :T, :]                            # (B, T, UP_CH)

    lp, lg = final_linear_logsoftmax(x.reshape(B * T, UP_CH),
                                     kp['final_w'], kp['final_b'])
    log_probs = lp.reshape(B, T, VOCAB)
    logits_ce_order = jnp.transpose(lg.reshape(B, T, VOCAB), (0, 2, 1))
    return log_probs, logits_ce_order


# ------------------------------- parameter init ---------------------------------

def init_params(key):
    """PyTorch-layout parameters (mirrors the nn.Module state dict shapes)."""
    keys = iter(jax.random.split(key, 64))

    def w(shape, scale=0.02):
        return scale * jax.random.normal(next(keys), shape, jnp.float32)

    p = {
        'conv1_w': w((N_STATE, N_MELS, 3)),  'conv1_b': w((N_STATE,)),
        'conv2_w': w((N_STATE, N_STATE, 3)), 'conv2_b': w((N_STATE,)),
        'blocks': [],
        'ln_post_g': jnp.ones((N_STATE,), jnp.float32),
        'ln_post_b': jnp.zeros((N_STATE,), jnp.float32),
        'up_w': w((N_STATE, UP_CH, 5)),      'up_b': w((UP_CH,)),   # ConvTranspose1d (Cin,Cout,K)
        'final_w': w((VOCAB, UP_CH)),        'final_b': w((VOCAB,)),  # Linear (out,in)
    }
    for _ in range(N_LAYER):
        p['blocks'].append({
            'attn_ln_g': jnp.ones((N_STATE,), jnp.float32),
            'attn_ln_b': jnp.zeros((N_STATE,), jnp.float32),
            'q_w': w((N_STATE, N_STATE)),   'q_b': w((N_STATE,)),
            'k_w': w((N_STATE, N_STATE)),   # key Linear has no bias (Whisper)
            'v_w': w((N_STATE, N_STATE)),   'v_b': w((N_STATE,)),
            'out_w': w((N_STATE, N_STATE)), 'out_b': w((N_STATE,)),
            'mlp_ln_g': jnp.ones((N_STATE,), jnp.float32),
            'mlp_ln_b': jnp.zeros((N_STATE,), jnp.float32),
            'mlp0_w': w((4 * N_STATE, N_STATE)), 'mlp0_b': w((4 * N_STATE,)),
            'mlp2_w': w((N_STATE, 4 * N_STATE)), 'mlp2_b': w((N_STATE,)),
        })
    return p


def prepare_params(p):
    """One-time conversion to kernel-friendly layouts (QKV merge, tap weights,
    (1, C) biases, zero key-bias built once)."""
    row = lambda v: v.reshape(1, -1)
    D = N_STATE
    kp = {
        'conv1_w': jnp.transpose(p['conv1_w'], (2, 1, 0)),   # (K, Cin, Cout)
        'conv1_b': row(p['conv1_b']),
        'conv2_w': jnp.transpose(p['conv2_w'], (2, 1, 0)),
        'conv2_b': row(p['conv2_b']),
        'pos_emb': sinusoids(N_CTX, N_STATE),
        'ln_post_g': row(p['ln_post_g']), 'ln_post_b': row(p['ln_post_b']),
        # ConvTranspose1d == zero-upsample + conv with k-flipped weights
        'up_w': jnp.transpose(jnp.flip(p['up_w'], axis=-1), (2, 0, 1)),  # (K, Cin, Cout)
        'up_b': row(p['up_b']),
        'final_w': p['final_w'].T,           # (UP_CH, VOCAB)
        'final_b': row(p['final_b']),
        'blocks': [],
    }
    for b in p['blocks']:
        kp['blocks'].append({
            'ln1_g': row(b['attn_ln_g']), 'ln1_b': row(b['attn_ln_b']),
            'qkv_w': jnp.concatenate([b['q_w'].T, b['k_w'].T, b['v_w'].T], axis=1),
            'qkv_b': row(jnp.concatenate([b['q_b'],
                                          jnp.zeros((D,), jnp.float32),
                                          b['v_b']])),
            'out_w': b['out_w'].T, 'out_b': row(b['out_b']),
            'ln2_g': row(b['mlp_ln_g']), 'ln2_b': row(b['mlp_ln_b']),
            'mlp0_w': b['mlp0_w'].T, 'mlp0_b': row(b['mlp0_b']),
            'mlp2_w': b['mlp2_w'].T, 'mlp2_b': row(b['mlp2_b']),
        })
    return kp


if __name__ == "__main__":
    key = jax.random.PRNGKey(0)
    pkey, xkey = jax.random.split(key)
    params = prepare_params(init_params(pkey))
    audio_mel_features = jax.random.normal(xkey, (BATCH, T_IN, N_MELS), jnp.float32)

    fwd = jax.jit(model_forward)
    log_probs, logits_ce_order = fwd(params, audio_mel_features)
    jax.block_until_ready((log_probs, logits_ce_order))

    assert log_probs.shape == (BATCH, T_IN, VOCAB)
    assert logits_ce_order.shape == (BATCH, VOCAB, T_IN)
    assert bool(jnp.all(jnp.isfinite(log_probs)))
    print("KERNEL_OK")
</pallas_src>

<mosaic_0001>
module attributes {stable_mosaic.version = 11 : i64} {
  func.func @_conv_taps_kernel(%arg0: i32, %arg1: memref<1x18x8xf32, #tpu.memory_space<vmem>>, %arg2: memref<3x8x32xf32, #tpu.memory_space<vmem>>, %arg3: memref<1x32xf32, #tpu.memory_space<vmem>>, %arg4: memref<1x16x32xf32, #tpu.memory_space<vmem>>) attributes {dimension_semantics = [#tpu.dimension_semantics<parallel>], iteration_bounds = array<i64: 4>, scalar_prefetch = 0 : i64, scratch_operands = 0 : i64, tpu.core_type = #tpu.core_type<tc>, window_params = [{transform_indices = @transform_0, window_bounds = array<i64: 1, 18, 8>}, {pipeline_mode = #tpu.pipeline_mode<synchronous>, transform_indices = @transform_1, window_bounds = array<i64: 3, 8, 32>}, {pipeline_mode = #tpu.pipeline_mode<synchronous>, transform_indices = @transform_2, window_bounds = array<i64: 1, 32>}, {transform_indices = @transform_3, window_bounds = array<i64: 1, 16, 32>}]} {
    %c0 = arith.constant 0 : index
    %c0_0 = arith.constant 0 : index
    %c0_1 = arith.constant 0 : index
    %0 = vector.load %arg1[%c0, %c0_0, %c0_1] : memref<1x18x8xf32, #tpu.memory_space<vmem>>, vector<1x18x8xf32>
    %1 = vector.shape_cast %0 : vector<1x18x8xf32> to vector<18x8xf32>
    %cst = arith.constant 0.000000e+00 : f32
    %2 = vector.broadcast %cst : f32 to vector<16x32xf32>
    %3 = vector.extract_strided_slice %1 {offsets = [0, 0], sizes = [16, 8], strides = [1, 1]} : vector<18x8xf32> to vector<16x8xf32>
    %c0_2 = arith.constant 0 : index
    %c0_3 = arith.constant 0 : index
    %c0_4 = arith.constant 0 : index
    %4 = vector.load %arg2[%c0_2, %c0_3, %c0_4] : memref<3x8x32xf32, #tpu.memory_space<vmem>>, vector<1x8x32xf32>
    %5 = vector.shape_cast %4 : vector<1x8x32xf32> to vector<8x32xf32>
    %cst_5 = arith.constant dense<0.000000e+00> : vector<16x32xf32>
    %6 = tpu.matmul %3, %5, %cst_5 {dimension_numbers = #tpu.dot_dimension_numbers<[1], [0], [0], [1], [0, 0, 1, 1], [], []>} : vector<16x8xf32>, vector<8x32xf32>, vector<16x32xf32> -> vector<16x32xf32>
    %7 = arith.addf %2, %6 : vector<16x32xf32>
    %8 = vector.extract_strided_slice %1 {offsets = [1, 0], sizes = [16, 8], strides = [1, 1]} : vector<18x8xf32> to vector<16x8xf32>
    %c1 = arith.constant 1 : index
    %c0_6 = arith.constant 0 : index
    %c0_7 = arith.constant 0 : index
    %9 = vector.load %arg2[%c1, %c0_6, %c0_7] : memref<3x8x32xf32, #tpu.memory_space<vmem>>, vector<1x8x32xf32>
    %10 = vector.shape_cast %9 : vector<1x8x32xf32> to vector<8x32xf32>
    %cst_8 = arith.constant dense<0.000000e+00> : vector<16x32xf32>
    %11 = tpu.matmul %8, %10, %cst_8 {dimension_numbers = #tpu.dot_dimension_numbers<[1], [0], [0], [1], [0, 0, 1, 1], [], []>} : vector<16x8xf32>, vector<8x32xf32>, vector<16x32xf32> -> vector<16x32xf32>
    %12 = arith.addf %7, %11 : vector<16x32xf32>
    %13 = vector.extract_strided_slice %1 {offsets = [2, 0], sizes = [16, 8], strides = [1, 1]} : vector<18x8xf32> to vector<16x8xf32>
    %c2 = arith.constant 2 : index
    %c0_9 = arith.constant 0 : index
    %c0_10 = arith.constant 0 : index
    %14 = vector.load %arg2[%c2, %c0_9, %c0_10] : memref<3x8x32xf32, #tpu.memory_space<vmem>>, vector<1x8x32xf32>
    %15 = vector.shape_cast %14 : vector<1x8x32xf32> to vector<8x32xf32>
    %cst_11 = arith.constant dense<0.000000e+00> : vector<16x32xf32>
    %16 = tpu.matmul %13, %15, %cst_11 {dimension_numbers = #tpu.dot_dimension_numbers<[1], [0], [0], [1], [0, 0, 1, 1], [], []>} : vector<16x8xf32>, vector<8x32xf32>, vector<16x32xf32> -> vector<16x32xf32>
    %17 = arith.addf %12, %16 : vector<16x32xf32>
    %c0_12 = arith.constant 0 : index
    %c0_13 = arith.constant 0 : index
    %18 = vector.load %arg3[%c0_12, %c0_13] : memref<1x32xf32, #tpu.memory_space<vmem>>, vector<1x32xf32>
    %19 = vector.broadcast %18 : vector<1x32xf32> to vector<16x32xf32>
    %20 = arith.addf %17, %19 : vector<16x32xf32>
    %cst_14 = arith.constant 5.000000e-01 : f32
    %21 = vector.broadcast %cst_14 : f32 to vector<16x32xf32>
    %22 = arith.mulf %21, %20 : vector<16x32xf32>
    %cst_15 = arith.constant 0.707106769 : f32
    %23 = vector.broadcast %cst_15 : f32 to vector<16x32xf32>
    %24 = arith.mulf %20, %23 : vector<16x32xf32>
    %25 = math.absf %24 : vector<16x32xf32>
    %cst_16 = arith.constant 0.327591091 : f32
    %26 = vector.broadcast %cst_16 : f32 to vector<16x32xf32>
    %27 = arith.mulf %26, %25 : vector<16x32xf32>
    %cst_17 = arith.constant 1.000000e+00 : f32
    %28 = vector.broadcast %cst_17 : f32 to vector<16x32xf32>
    %29 = arith.addf %28, %27 : vector<16x32xf32>
    %cst_18 = arith.constant 1.000000e+00 : f32
    %30 = vector.broadcast %cst_18 : f32 to vector<16x32xf32>
    %31 = arith.divf %30, %29 : vector<16x32xf32>
    %cst_19 = arith.constant 1.06140542 : f32
    %32 = vector.broadcast %cst_19 : f32 to vector<16x32xf32>
    %33 = arith.mulf %32, %31 : vector<16x32xf32>
    %cst_20 = arith.constant -1.45315206 : f32
    %34 = vector.broadcast %cst_20 : f32 to vector<16x32xf32>
    %35 = arith.addf %33, %34 : vector<16x32xf32>
    %36 = arith.mulf %35, %31 : vector<16x32xf32>
    %cst_21 = arith.constant 1.42141378 : f32
    %37 = vector.broadcast %cst_21 : f32 to vector<16x32xf32>
    %38 = arith.addf %36, %37 : vector<16x32xf32>
    %39 = arith.mulf %38, %31 : vector<16x32xf32>
    %cst_22 = arith.constant -0.284496725 : f32
    %40 = vector.broadcast %cst_22 : f32 to vector<16x32xf32>
    %41 = arith.addf %39, %40 : vector<16x32xf32>
    %42 = arith.mulf %41, %31 : vector<16x32xf32>
    %cst_23 = arith.constant 0.254829586 : f32
    %43 = vector.broadcast %cst_23 : f32 to vector<16x32xf32>
    %44 = arith.addf %42, %43 : vector<16x32xf32>
    %45 = arith.mulf %44, %31 : vector<16x32xf32>
    %cst_24 = arith.constant 0.000000e+00 : f32
    %46 = vector.broadcast %cst_24 : f32 to vector<16x32xf32>
    %47 = arith.subf %46, %25 : vector<16x32xf32>
    %48 = arith.mulf %47, %25 : vector<16x32xf32>
    %49 = math.exp %48 : vector<16x32xf32>
    %50 = arith.mulf %45, %49 : vector<16x32xf32>
    %cst_25 = arith.constant 1.000000e+00 : f32
    %51 = vector.broadcast %cst_25 : f32 to vector<16x32xf32>
    %52 = arith.subf %51, %50 : vector<16x32xf32>
    %cst_26 = arith.constant 0.000000e+00 : f32
    %53 = vector.broadcast %cst_26 : f32 to vector<16x32xf32>
    %54 = arith.cmpf oge, %24, %53 : vector<16x32xf32>
    %cst_27 = arith.constant 0.000000e+00 : f32
    %55 = vector.broadcast %cst_27 : f32 to vector<16x32xf32>
    %56 = arith.subf %55, %52 : vector<16x32xf32>
    %57 = arith.select %54, %52, %56 : vector<16x32xi1>, vector<16x32xf32>
    %cst_28 = arith.constant 1.000000e+00 : f32
    %58 = vector.broadcast %cst_28 : f32 to vector<16x32xf32>
    %59 = arith.addf %58, %57 : vector<16x32xf32>
    %60 = arith.mulf %22, %59 : vector<16x32xf32>
    %c0_29 = arith.constant 0 : index
    %c0_30 = arith.constant 0 : index
    %c0_31 = arith.constant 0 : index
    %61 = vector.load %arg4[%c0_29, %c0_30, %c0_31] : memref<1x16x32xf32, #tpu.memory_space<vmem>>, vector<1x16x32xf32>
    %62 = vector.shape_cast %61 : vector<1x16x32xf32> to vector<16x32xf32>
    %63 = vector.shape_cast %60 : vector<16x32xf32> to vector<1x16x32xf32>
    tpu.vector_store %arg4[%c0_29, %c0_30, %c0_31], %63 {strides = array<i32>} : memref<1x16x32xf32, #tpu.memory_space<vmem>>, vector<1x16x32xf32>,
    return
  }
  func.func @transform_0(%arg0: i32) -> (i32, i32, i32) {
    %c0_i32 = arith.constant 0 : i32
    %c0_i32_0 = arith.constant 0 : i32
    %c0_i32_1 = arith.constant 0 : i32
    return %arg0, %c0_i32, %c0_i32_0 : i32, i32, i32
  }
  func.func @transform_1(%arg0: i32) -> (i32, i32, i32) {
    %c0_i32 = arith.constant 0 : i32
    %c0_i32_0 = arith.constant 0 : i32
    %c0_i32_1 = arith.constant 0 : i32
    %c0_i32_2 = arith.constant 0 : i32
    return %c0_i32, %c0_i32_0, %c0_i32_1 : i32, i32, i32
  }
  func.func @transform_2(%arg0: i32) -> (i32, i32) {
    %c0_i32 = arith.constant 0 : i32
    %c0_i32_0 = arith.constant 0 : i32
    %c0_i32_1 = arith.constant 0 : i32
    return %c0_i32, %c0_i32_0 : i32, i32
  }
  func.func @transform_3(%arg0: i32) -> (i32, i32, i32) {
    %c0_i32 = arith.constant 0 : i32
    %c0_i32_0 = arith.constant 0 : i32
    %c0_i32_1 = arith.constant 0 : i32
    return %arg0, %c0_i32, %c0_i32_0 : i32, i32, i32
  }
}

module attributes {stable_mosaic.version = 11 : i64} {
  func.func @_conv2_gelu_pos_kernel(%arg0: i32, %arg1: memref<1x9x32xf32, #tpu.memory_space<vmem>>, %arg2: memref<1x9x32xf32, #tpu.memory_space<vmem>>, %arg3: memref<3x32x32xf32, #tpu.memory_space<vmem>>, %arg4: memref<1x32xf32, #tpu.memory_space<vmem>>, %arg5: memref<8x32xf32, #tpu.memory_space<vmem>>, %arg6: memref<1x8x32xf32, #tpu.memory_space<vmem>>) attributes {dimension_semantics = [#tpu.dimension_semantics<parallel>], iteration_bounds = array<i64: 4>, scalar_prefetch = 0 : i64, scratch_operands = 0 : i64, tpu.core_type = #tpu.core_type<tc>, window_params = [{transform_indices = @transform_0, window_bounds = array<i64: 1, 9, 32>}, {transform_indices = @transform_1, window_bounds = array<i64: 1, 9, 32>}, {pipeline_mode = #tpu.pipeline_mode<synchronous>, transform_indices = @transform_2, window_bounds = array<i64: 3, 32, 32>}, {pipeline_mode = #tpu.pipeline_mode<synchronous>, transform_indices = @transform_3, window_bounds = array<i64: 1, 32>}, {pipeline_mode = #tpu.pipeline_mode<synchronous>, transform_indices = @transform_4, window_bounds = array<i64: 8, 32>}, {transform_indices = @transform_5, window_bounds = array<i64: 1, 8, 32>}]} {
    %c0 = arith.constant 0 : index
    %c0_0 = arith.constant 0 : index
    %c0_1 = arith.constant 0 : index
    %0 = vector.load %arg1[%c0, %c0_0, %c0_1] : memref<1x9x32xf32, #tpu.memory_space<vmem>>, vector<1x9x32xf32>
    %1 = vector.shape_cast %0 : vector<1x9x32xf32> to vector<9x32xf32>
    %c0_2 = arith.constant 0 : index
    %c0_3 = arith.constant 0 : index
    %c0_4 = arith.constant 0 : index
    %2 = vector.load %arg2[%c0_2, %c0_3, %c0_4] : memref<1x9x32xf32, #tpu.memory_space<vmem>>, vector<1x9x32xf32>
    %3 = vector.shape_cast %2 : vector<1x9x32xf32> to vector<9x32xf32>
    %4 = vector.extract_strided_slice %1 {offsets = [0, 0], sizes = [8, 32], strides = [1, 1]} : vector<9x32xf32> to vector<8x32xf32>
    %c0_5 = arith.constant 0 : index
    %c0_6 = arith.constant 0 : index
    %c0_7 = arith.constant 0 : index
    %5 = vector.load %arg3[%c0_5, %c0_6, %c0_7] : memref<3x32x32xf32, #tpu.memory_space<vmem>>, vector<1x32x32xf32>
    %6 = vector.shape_cast %5 : vector<1x32x32xf32> to vector<32x32xf32>
    %cst = arith.constant dense<0.000000e+00> : vector<8x32xf32>
    %7 = tpu.matmul %4, %6, %cst {dimension_numbers = #tpu.dot_dimension_numbers<[1], [0], [0], [1], [0, 0, 1, 1], [], []>} : vector<8x32xf32>, vector<32x32xf32>, vector<8x32xf32> -> vector<8x32xf32>
    %8 = vector.extract_strided_slice %3 {offsets = [0, 0], sizes = [8, 32], strides = [1, 1]} : vector<9x32xf32> to vector<8x32xf32>
    %c1 = arith.constant 1 : index
    %c0_8 = arith.constant 0 : index
    %c0_9 = arith.constant 0 : index
    %9 = vector.load %arg3[%c1, %c0_8, %c0_9] : memref<3x32x32xf32, #tpu.memory_space<vmem>>, vector<1x32x32xf32>
    %10 = vector.shape_cast %9 : vector<1x32x32xf32> to vector<32x32xf32>
    %cst_10 = arith.constant dense<0.000000e+00> : vector<8x32xf32>
    %11 = tpu.matmul %8, %10, %cst_10 {dimension_numbers = #tpu.dot_dimension_numbers<[1], [0], [0], [1], [0, 0, 1, 1], [], []>} : vector<8x32xf32>, vector<32x32xf32>, vector<8x32xf32> -> vector<8x32xf32>
    %12 = arith.addf %7, %11 : vector<8x32xf32>
    %13 = vector.extract_strided_slice %1 {offsets = [1, 0], sizes = [8, 32], strides = [1, 1]} : vector<9x32xf32> to vector<8x32xf32>
    %c2 = arith.constant 2 : index
    %c0_11 = arith.constant 0 : index
    %c0_12 = arith.constant 0 : index
    %14 = vector.load %arg3[%c2, %c0_11, %c0_12] : memref<3x32x32xf32, #tpu.memory_space<vmem>>, vector<1x32x32xf32>
    %15 = vector.shape_cast %14 : vector<1x32x32xf32> to vector<32x32xf32>
    %cst_13 = arith.constant dense<0.000000e+00> : vector<8x32xf32>
    %16 = tpu.matmul %13, %15, %cst_13 {dimension_numbers = #tpu.dot_dimension_numbers<[1], [0], [0], [1], [0, 0, 1, 1], [], []>} : vector<8x32xf32>, vector<32x32xf32>, vector<8x32xf32> -> vector<8x32xf32>
    %17 = arith.addf %12, %16 : vector<8x32xf32>
    %c0_14 = arith.constant 0 : index
    %c0_15 = arith.constant 0 : index
    %18 = vector.load %arg4[%c0_14, %c0_15] : memref<1x32xf32, #tpu.memory_space<vmem>>, vector<1x32xf32>
    %19 = vector.broadcast %18 : vector<1x32xf32> to vector<8x32xf32>
    %20 = arith.addf %17, %19 : vector<8x32xf32>
    %cst_16 = arith.constant 5.000000e-01 : f32
    %21 = vector.broadcast %cst_16 : f32 to vector<8x32xf32>
    %22 = arith.mulf %21, %20 : vector<8x32xf32>
    %cst_17 = arith.constant 0.707106769 : f32
    %23 = vector.broadcast %cst_17 : f32 to vector<8x32xf32>
    %24 = arith.mulf %20, %23 : vector<8x32xf32>
    %25 = math.absf %24 : vector<8x32xf32>
    %cst_18 = arith.constant 0.327591091 : f32
    %26 = vector.broadcast %cst_18 : f32 to vector<8x32xf32>
    %27 = arith.mulf %26, %25 : vector<8x32xf32>
    %cst_19 = arith.constant 1.000000e+00 : f32
    %28 = vector.broadcast %cst_19 : f32 to vector<8x32xf32>
    %29 = arith.addf %28, %27 : vector<8x32xf32>
    %cst_20 = arith.constant 1.000000e+00 : f32
    %30 = vector.broadcast %cst_20 : f32 to vector<8x32xf32>
    %31 = arith.divf %30, %29 : vector<8x32xf32>
    %cst_21 = arith.constant 1.06140542 : f32
    %32 = vector.broadcast %cst_21 : f32 to vector<8x32xf32>
    %33 = arith.mulf %32, %31 : vector<8x32xf32>
    %cst_22 = arith.constant -1.45315206 : f32
    %34 = vector.broadcast %cst_22 : f32 to vector<8x32xf32>
    %35 = arith.addf %33, %34 : vector<8x32xf32>
    %36 = arith.mulf %35, %31 : vector<8x32xf32>
    %cst_23 = arith.constant 1.42141378 : f32
    %37 = vector.broadcast %cst_23 : f32 to vector<8x32xf32>
    %38 = arith.addf %36, %37 : vector<8x32xf32>
    %39 = arith.mulf %38, %31 : vector<8x32xf32>
    %cst_24 = arith.constant -0.284496725 : f32
    %40 = vector.broadcast %cst_24 : f32 to vector<8x32xf32>
    %41 = arith.addf %39, %40 : vector<8x32xf32>
    %42 = arith.mulf %41, %31 : vector<8x32xf32>
    %cst_25 = arith.constant 0.254829586 : f32
    %43 = vector.broadcast %cst_25 : f32 to vector<8x32xf32>
    %44 = arith.addf %42, %43 : vector<8x32xf32>
    %45 = arith.mulf %44, %31 : vector<8x32xf32>
    %cst_26 = arith.constant 0.000000e+00 : f32
    %46 = vector.broadcast %cst_26 : f32 to vector<8x32xf32>
    %47 = arith.subf %46, %25 : vector<8x32xf32>
    %48 = arith.mulf %47, %25 : vector<8x32xf32>
    %49 = math.exp %48 : vector<8x32xf32>
    %50 = arith.mulf %45, %49 : vector<8x32xf32>
    %cst_27 = arith.constant 1.000000e+00 : f32
    %51 = vector.broadcast %cst_27 : f32 to vector<8x32xf32>
    %52 = arith.subf %51, %50 : vector<8x32xf32>
    %cst_28 = arith.constant 0.000000e+00 : f32
    %53 = vector.broadcast %cst_28 : f32 to vector<8x32xf32>
    %54 = arith.cmpf oge, %24, %53 : vector<8x32xf32>
    %cst_29 = arith.constant 0.000000e+00 : f32
    %55 = vector.broadcast %cst_29 : f32 to vector<8x32xf32>
    %56 = arith.subf %55, %52 : vector<8x32xf32>
    %57 = arith.select %54, %52, %56 : vector<8x32xi1>, vector<8x32xf32>
    %cst_30 = arith.constant 1.000000e+00 : f32
    %58 = vector.broadcast %cst_30 : f32 to vector<8x32xf32>
    %59 = arith.addf %58, %57 : vector<8x32xf32>
    %60 = arith.mulf %22, %59 : vector<8x32xf32>
    %c0_31 = arith.constant 0 : index
    %c0_32 = arith.constant 0 : index
    %61 = vector.load %arg5[%c0_31, %c0_32] : memref<8x32xf32, #tpu.memory_space<vmem>>, vector<8x32xf32>
    %62 = arith.addf %60, %61 : vector<8x32xf32>
    %c0_33 = arith.constant 0 : index
    %c0_34 = arith.constant 0 : index
    %c0_35 = arith.constant 0 : index
    %63 = vector.load %arg6[%c0_33, %c0_34, %c0_35] : memref<1x8x32xf32, #tpu.memory_space<vmem>>, vector<1x8x32xf32>
    %64 = vector.shape_cast %63 : vector<1x8x32xf32> to vector<8x32xf32>
    %65 = vector.shape_cast %62 : vector<8x32xf32> to vector<1x8x32xf32>
    tpu.vector_store %arg6[%c0_33, %c0_34, %c0_35], %65 {strides = array<i32>} : memref<1x8x32xf32, #tpu.memory_space<vmem>>, vector<1x8x32xf32>,
    return
  }
  func.func @transform_0(%arg0: i32) -> (i32, i32, i32) {
    %c0_i32 = arith.constant 0 : i32
    %c0_i32_0 = arith.constant 0 : i32
    %c0_i32_1 = arith.constant 0 : i32
    return %arg0, %c0_i32, %c0_i32_0 : i32, i32, i32
  }
  func.func @transform_1(%arg0: i32) -> (i32, i32, i32) {
    %c0_i32 = arith.constant 0 : i32
    %c0_i32_0 = arith.constant 0 : i32
    %c0_i32_1 = arith.constant 0 : i32
    return %arg0, %c0_i32, %c0_i32_0 : i32, i32, i32
  }
  func.func @transform_2(%arg0: i32) -> (i32, i32, i32) {
    %c0_i32 = arith.constant 0 : i32
    %c0_i32_0 = arith.constant 0 : i32
    %c0_i32_1 = arith.constant 0 : i32
    %c0_i32_2 = arith.constant 0 : i32
    return %c0_i32, %c0_i32_0, %c0_i32_1 : i32, i32, i32
  }
  func.func @transform_3(%arg0: i32) -> (i32, i32) {
    %c0_i32 = arith.constant 0 : i32
    %c0_i32_0 = arith.constant 0 : i32
    %c0_i32_1 = arith.constant 0 : i32
    return %c0_i32, %c0_i32_0 : i32, i32
  }
  func.func @transform_4(%arg0: i32) -> (i32, i32) {
    %c0_i32 = arith.constant 0 : i32
    %c0_i32_0 = arith.constant 0 : i32
    %c0_i32_1 = arith.constant 0 : i32
    return %c0_i32, %c0_i32_0 : i32, i32
  }
  func.func @transform_5(%arg0: i32) -> (i32, i32, i32) {
    %c0_i32 = arith.constant 0 : i32
    %c0_i32_0 = arith.constant 0 : i32
    %c0_i32_1 = arith.constant 0 : i32
    return %arg0, %c0_i32, %c0_i32_0 : i32, i32, i32
  }
}

module attributes {stable_mosaic.version = 11 : i64} {
  func.func @_block_kernel(%arg0: i32, %arg1: memref<1x8x32xf32, #tpu.memory_space<vmem>>, %arg2: memref<1x32xf32, #tpu.memory_space<vmem>>, %arg3: memref<1x32xf32, #tpu.memory_space<vmem>>, %arg4: memref<32x96xf32, #tpu.memory_space<vmem>>, %arg5: memref<1x96xf32, #tpu.memory_space<vmem>>, %arg6: memref<32x32xf32, #tpu.memory_space<vmem>>, %arg7: memref<1x32xf32, #tpu.memory_space<vmem>>, %arg8: memref<1x32xf32, #tpu.memory_space<vmem>>, %arg9: memref<1x32xf32, #tpu.memory_space<vmem>>, %arg10: memref<32x128xf32, #tpu.memory_space<vmem>>, %arg11: memref<1x128xf32, #tpu.memory_space<vmem>>, %arg12: memref<128x32xf32, #tpu.memory_space<vmem>>, %arg13: memref<1x32xf32, #tpu.memory_space<vmem>>, %arg14: memref<1x32xf32, #tpu.memory_space<vmem>>, %arg15: memref<1x32xf32, #tpu.memory_space<vmem>>, %arg16: memref<1x8x32xf32, #tpu.memory_space<vmem>>) attributes {dimension_semantics = [#tpu.dimension_semantics<parallel>], iteration_bounds = array<i64: 4>, scalar_prefetch = 0 : i64, scratch_operands = 0 : i64, tpu.core_type = #tpu.core_type<tc>, window_params = [{transform_indices = @transform_0, window_bounds = array<i64: 1, 8, 32>}, {pipeline_mode = #tpu.pipeline_mode<synchronous>, transform_indices = @transform_1, window_bounds = array<i64: 1, 32>}, {pipeline_mode = #tpu.pipeline_mode<synchronous>, transform_indices = @transform_2, window_bounds = array<i64: 1, 32>}, {pipeline_mode = #tpu.pipeline_mode<synchronous>, transform_indices = @transform_3, window_bounds = array<i64: 32, 96>}, {pipeline_mode = #tpu.pipeline_mode<synchronous>, transform_indices = @transform_4, window_bounds = array<i64: 1, 96>}, {pipeline_mode = #tpu.pipeline_mode<synchronous>, transform_indices = @transform_5, window_bounds = array<i64: 32, 32>}, {pipeline_mode = #tpu.pipeline_mode<synchronous>, transform_indices = @transform_6, window_bounds = array<i64: 1, 32>}, {pipeline_mode = #tpu.pipeline_mode<synchronous>, transform_indices = @transform_7, window_bounds = array<i64: 1, 32>}, {pipeline_mode = #tpu.pipeline_mode<synchronous>, transform_indices = @transform_8, window_bounds = array<i64: 1, 32>}, {pipeline_mode = #tpu.pipeline_mode<synchronous>, transform_indices = @transform_9, window_bounds = array<i64: 32, 128>}, {pipeline_mode = #tpu.pipeline_mode<synchronous>, transform_indices = @transform_10, window_bounds = array<i64: 1, 128>}, {pipeline_mode = #tpu.pipeline_mode<synchronous>, transform_indices = @transform_11, window_bounds = array<i64: 128, 32>}, {pipeline_mode = #tpu.pipeline_mode<synchronous>, transform_indices = @transform_12, window_bounds = array<i64: 1, 32>}, {pipeline_mode = #tpu.pipeline_mode<synchronous>, transform_indices = @transform_13, window_bounds = array<i64: 1, 32>}, {pipeline_mode = #tpu.pipeline_mode<synchronous>, transform_indices = @transform_14, window_bounds = array<i64: 1, 32>}, {transform_indices = @transform_15, window_bounds = array<i64: 1, 8, 32>}]} {
    %c0 = arith.constant 0 : index
    %c0_0 = arith.constant 0 : index
    %c0_1 = arith.constant 0 : index
    %0 = vector.load %arg1[%c0, %c0_0, %c0_1] : memref<1x8x32xf32, #tpu.memory_space<vmem>>, vector<1x8x32xf32>
    %1 = vector.shape_cast %0 : vector<1x8x32xf32> to vector<8x32xf32>
    %c0_2 = arith.constant 0 : index
    %c0_3 = arith.constant 0 : index
    %2 = vector.load %arg2[%c0_2, %c0_3] : memref<1x32xf32, #tpu.memory_space<vmem>>, vector<1x32xf32>
    %c0_4 = arith.constant 0 : index
    %c0_5 = arith.constant 0 : index
    %3 = vector.load %arg3[%c0_4, %c0_5] : memref<1x32xf32, #tpu.memory_space<vmem>>, vector<1x32xf32>
    %cst = arith.constant dense<0.000000e+00> : vector<8xf32>
    %4 = vector.multi_reduction <add>, %1, %cst [1] : vector<8x32xf32> to vector<8xf32>
    %5 = vector.shape_cast %4 : vector<8xf32> to vector<8x1xf32>
    %cst_6 = arith.constant 3.200000e+01 : f32
    %6 = vector.broadcast %cst_6 : f32 to vector<8x1xf32>
    %7 = arith.divf %5, %6 : vector<8x1xf32>
    %8 = vector.broadcast %7 : vector<8x1xf32> to vector<8x32xf32>
    %9 = arith.subf %1, %8 : vector<8x32xf32>
    %10 = arith.mulf %9, %9 : vector<8x32xf32>
    %cst_7 = arith.constant dense<0.000000e+00> : vector<8xf32>
    %11 = vector.multi_reduction <add>, %10, %cst_7 [1] : vector<8x32xf32> to vector<8xf32>
    %12 = vector.shape_cast %11 : vector<8xf32> to vector<8x1xf32>
    %cst_8 = arith.constant 3.200000e+01 : f32
    %13 = vector.broadcast %cst_8 : f32 to vector<8x1xf32>
    %14 = arith.divf %12, %13 : vector<8x1xf32>
    %cst_9 = arith.constant 9.99999974E-6 : f32
    %15 = vector.broadcast %cst_9 : f32 to vector<8x1xf32>
    %16 = arith.addf %14, %15 : vector<8x1xf32>
    %17 = math.rsqrt %16 : vector<8x1xf32>
    %18 = vector.broadcast %17 : vector<8x1xf32> to vector<8x32xf32>
    %19 = arith.mulf %9, %18 : vector<8x32xf32>
    %20 = vector.broadcast %2 : vector<1x32xf32> to vector<8x32xf32>
    %21 = arith.mulf %19, %20 : vector<8x32xf32>
    %22 = vector.broadcast %3 : vector<1x32xf32> to vector<8x32xf32>
    %23 = arith.addf %21, %22 : vector<8x32xf32>
    %c0_10 = arith.constant 0 : index
    %c0_11 = arith.constant 0 : index
    %24 = vector.load %arg4[%c0_10, %c0_11] : memref<32x96xf32, #tpu.memory_space<vmem>>, vector<32x96xf32>
    %cst_12 = arith.constant dense<0.000000e+00> : vector<8x96xf32>
    %25 = tpu.matmul %23, %24, %cst_12 {dimension_numbers = #tpu.dot_dimension_numbers<[1], [0], [0], [1], [0, 0, 1, 1], [], []>} : vector<8x32xf32>, vector<32x96xf32>, vector<8x96xf32> -> vector<8x96xf32>
    %c0_13 = arith.constant 0 : index
    %c0_14 = arith.constant 0 : index
    %26 = vector.load %arg5[%c0_13, %c0_14] : memref<1x96xf32, #tpu.memory_space<vmem>>, vector<1x96xf32>
    %27 = vector.broadcast %26 : vector<1x96xf32> to vector<8x96xf32>
    %28 = arith.addf %25, %27 : vector<8x96xf32>
    %29 = vector.extract_strided_slice %28 {offsets = [0, 0], sizes = [8, 8], strides = [1, 1]} : vector<8x96xf32> to vector<8x8xf32>
    %cst_15 = arith.constant 0.353553385 : f32
    %30 = vector.broadcast %cst_15 : f32 to vector<8x8xf32>
    %31 = arith.mulf %29, %30 : vector<8x8xf32>
    %32 = vector.extract_strided_slice %28 {offsets = [0, 32], sizes = [8, 8], strides = [1, 1]} : vector<8x96xf32> to vector<8x8xf32>
    %33 = vector.extract_strided_slice %28 {offsets = [0, 64], sizes = [8, 8], strides = [1, 1]} : vector<8x96xf32> to vector<8x8xf32>
    %cst_16 = arith.constant dense<0.000000e+00> : vector<8x8xf32>
    %34 = tpu.matmul %31, %32, %cst_16 {dimension_numbers = #tpu.dot_dimension_numbers<[1], [1], [0], [0], [0, 0, 1, 0], [], []>} : vector<8x8xf32>, vector<8x8xf32>, vector<8x8xf32> -> vector<8x8xf32>
    %cst_17 = arith.constant dense<0xFF800000> : vector<8xf32>
    %35 = vector.multi_reduction <maximumf>, %34, %cst_17 [1] : vector<8x8xf32> to vector<8xf32>
    %36 = vector.shape_cast %35 : vector<8xf32> to vector<8x1xf32>
    %37 = vector.broadcast %36 : vector<8x1xf32> to vector<8x8xf32>
    %38 = arith.subf %34, %37 : vector<8x8xf32>
    %39 = math.exp %38 : vector<8x8xf32>
    %cst_18 = arith.constant dense<0.000000e+00> : vector<8xf32>
    %40 = vector.multi_reduction <add>, %39, %cst_18 [1] : vector<8x8xf32> to vector<8xf32>
    %41 = vector.shape_cast %40 : vector<8xf32> to vector<8x1xf32>
    %42 = tpu.reciprocal %41 {approx = true} : vector<8x1xf32> -> vector<8x1xf32>
    %43 = vector.broadcast %42 : vector<8x1xf32> to vector<8x8xf32>
    %44 = arith.mulf %39, %43 : vector<8x8xf32>
    %cst_19 = arith.constant dense<0.000000e+00> : vector<8x8xf32>
    %45 = tpu.matmul %44, %33, %cst_19 {dimension_numbers = #tpu.dot_dimension_numbers<[1], [0], [0], [1], [0, 0, 1, 1], [], []>} : vector<8x8xf32>, vector<8x8xf32>, vector<8x8xf32> -> vector<8x8xf32>
    %46 = vector.extract_strided_slice %28 {offsets = [0, 8], sizes = [8, 8], strides = [1, 1]} : vector<8x96xf32> to vector<8x8xf32>
    %cst_20 = arith.constant 0.353553385 : f32
    %47 = vector.broadcast %cst_20 : f32 to vector<8x8xf32>
    %48 = arith.mulf %46, %47 : vector<8x8xf32>
    %49 = vector.extract_strided_slice %28 {offsets = [0, 40], sizes = [8, 8], strides = [1, 1]} : vector<8x96xf32> to vector<8x8xf32>
    %50 = vector.extract_strided_slice %28 {offsets = [0, 72], sizes = [8, 8], strides = [1, 1]} : vector<8x96xf32> to vector<8x8xf32>
    %cst_21 = arith.constant dense<0.000000e+00> : vector<8x8xf32>
    %51 = tpu.matmul %48, %49, %cst_21 {dimension_numbers = #tpu.dot_dimension_numbers<[1], [1], [0], [0], [0, 0, 1, 0], [], []>} : vector<8x8xf32>, vector<8x8xf32>, vector<8x8xf32> -> vector<8x8xf32>
    %cst_22 = arith.constant dense<0xFF800000> : vector<8xf32>
    %52 = vector.multi_reduction <maximumf>, %51, %cst_22 [1] : vector<8x8xf32> to vector<8xf32>
    %53 = vector.shape_cast %52 : vector<8xf32> to vector<8x1xf32>
    %54 = vector.broadcast %53 : vector<8x1xf32> to vector<8x8xf32>
    %55 = arith.subf %51, %54 : vector<8x8xf32>
    %56 = math.exp %55 : vector<8x8xf32>
    %cst_23 = arith.constant dense<0.000000e+00> : vector<8xf32>
    %57 = vector.multi_reduction <add>, %56, %cst_23 [1] : vector<8x8xf32> to vector<8xf32>
    %58 = vector.shape_cast %57 : vector<8xf32> to vector<8x1xf32>
    %59 = tpu.reciprocal %58 {approx = true} : vector<8x1xf32> -> vector<8x1xf32>
    %60 = vector.broadcast %59 : vector<8x1xf32> to vector<8x8xf32>
    %61 = arith.mulf %56, %60 : vector<8x8xf32>
    %cst_24 = arith.constant dense<0.000000e+00> : vector<8x8xf32>
    %62 = tpu.matmul %61, %50, %cst_24 {dimension_numbers = #tpu.dot_dimension_numbers<[1], [0], [0], [1], [0, 0, 1, 1], [], []>} : vector<8x8xf32>, vector<8x8xf32>, vector<8x8xf32> -> vector<8x8xf32>
    %63 = vector.extract_strided_slice %28 {offsets = [0, 16], sizes = [8, 8], strides = [1, 1]} : vector<8x96xf32> to vector<8x8xf32>
    %cst_25 = arith.constant 0.353553385 : f32
    %64 = vector.broadcast %cst_25 : f32 to vector<8x8xf32>
    %65 = arith.mulf %63, %64 : vector<8x8xf32>
    %66 = vector.extract_strided_slice %28 {offsets = [0, 48], sizes = [8, 8], strides = [1, 1]} : vector<8x96xf32> to vector<8x8xf32>
    %67 = vector.extract_strided_slice %28 {offsets = [0, 80], sizes = [8, 8], strides = [1, 1]} : vector<8x96xf32> to vector<8x8xf32>
    %cst_26 = arith.constant dense<0.000000e+00> : vector<8x8xf32>
    %68 = tpu.matmul %65, %66, %cst_26 {dimension_numbers = #tpu.dot_dimension_numbers<[1], [1], [0], [0], [0, 0, 1, 0], [], []>} : vector<8x8xf32>, vector<8x8xf32>, vector<8x8xf32> -> vector<8x8xf32>
    %cst_27 = arith.constant dense<0xFF800000> : vector<8xf32>
    %69 = vector.multi_reduction <maximumf>, %68, %cst_27 [1] : vector<8x8xf32> to vector<8xf32>
    %70 = vector.shape_cast %69 : vector<8xf32> to vector<8x1xf32>
    %71 = vector.broadcast %70 : vector<8x1xf32> to vector<8x8xf32>
    %72 = arith.subf %68, %71 : vector<8x8xf32>
    %73 = math.exp %72 : vector<8x8xf32>
    %cst_28 = arith.constant dense<0.000000e+00> : vector<8xf32>
    %74 = vector.multi_reduction <add>, %73, %cst_28 [1] : vector<8x8xf32> to vector<8xf32>
    %75 = vector.shape_cast %74 : vector<8xf32> to vector<8x1xf32>
    %76 = tpu.reciprocal %75 {approx = true} : vector<8x1xf32> -> vector<8x1xf32>
    %77 = vector.broadcast %76 : vector<8x1xf32> to vector<8x8xf32>
    %78 = arith.mulf %73, %77 : vector<8x8xf32>
    %cst_29 = arith.constant dense<0.000000e+00> : vector<8x8xf32>
    %79 = tpu.matmul %78, %67, %cst_29 {dimension_numbers = #tpu.dot_dimension_numbers<[1], [0], [0], [1], [0, 0, 1, 1], [], []>} : vector<8x8xf32>, vector<8x8xf32>, vector<8x8xf32> -> vector<8x8xf32>
    %80 = vector.extract_strided_slice %28 {offsets = [0, 24], sizes = [8, 8], strides = [1, 1]} : vector<8x96xf32> to vector<8x8xf32>
    %cst_30 = arith.constant 0.353553385 : f32
    %81 = vector.broadcast %cst_30 : f32 to vector<8x8xf32>
    %82 = arith.mulf %80, %81 : vector<8x8xf32>
    %83 = vector.extract_strided_slice %28 {offsets = [0, 56], sizes = [8, 8], strides = [1, 1]} : vector<8x96xf32> to vector<8x8xf32>
    %84 = vector.extract_strided_slice %28 {offsets = [0, 88], sizes = [8, 8], strides = [1, 1]} : vector<8x96xf32> to vector<8x8xf32>
    %cst_31 = arith.constant dense<0.000000e+00> : vector<8x8xf32>
    %85 = tpu.matmul %82, %83, %cst_31 {dimension_numbers = #tpu.dot_dimension_numbers<[1], [1], [0], [0], [0, 0, 1, 0], [], []>} : vector<8x8xf32>, vector<8x8xf32>, vector<8x8xf32> -> vector<8x8xf32>
    %cst_32 = arith.constant dense<0xFF800000> : vector<8xf32>
    %86 = vector.multi_reduction <maximumf>, %85, %cst_32 [1] : vector<8x8xf32> to vector<8xf32>
    %87 = vector.shape_cast %86 : vector<8xf32> to vector<8x1xf32>
    %88 = vector.broadcast %87 : vector<8x1xf32> to vector<8x8xf32>
    %89 = arith.subf %85, %88 : vector<8x8xf32>
    %90 = math.exp %89 : vector<8x8xf32>
    %cst_33 = arith.constant dense<0.000000e+00> : vector<8xf32>
    %91 = vector.multi_reduction <add>, %90, %cst_33 [1] : vector<8x8xf32> to vector<8xf32>
    %92 = vector.shape_cast %91 : vector<8xf32> to vector<8x1xf32>
    %93 = tpu.reciprocal %92 {approx = true} : vector<8x1xf32> -> vector<8x1xf32>
    %94 = vector.broadcast %93 : vector<8x1xf32> to vector<8x8xf32>
    %95 = arith.mulf %90, %94 : vector<8x8xf32>
    %cst_34 = arith.constant dense<0.000000e+00> : vector<8x8xf32>
    %96 = tpu.matmul %95, %84, %cst_34 {dimension_numbers = #tpu.dot_dimension_numbers<[1], [0], [0], [1], [0, 0, 1, 1], [], []>} : vector<8x8xf32>, vector<8x8xf32>, vector<8x8xf32> -> vector<8x8xf32>
    %97 = tpu.concatenate %45, %62, %79, %96 in 1 : vector<8x8xf32>, vector<8x8xf32>, vector<8x8xf32>, vector<8x8xf32> -> vector<8x32xf32>
    %c0_35 = arith.constant 0 : index
    %c0_36 = arith.constant 0 : index
    %98 = vector.load %arg6[%c0_35, %c0_36] : memref<32x32xf32, #tpu.memory_space<vmem>>, vector<32x32xf32>
    %cst_37 = arith.constant dense<0.000000e+00> : vector<8x32xf32>
    %99 = tpu.matmul %97, %98, %cst_37 {dimension_numbers = #tpu.dot_dimension_numbers<[1], [0], [0], [1], [0, 0, 1, 1], [], []>} : vector<8x32xf32>, vector<32x32xf32>, vector<8x32xf32> -> vector<8x32xf32>
    %100 = arith.addf %1, %99 : vector<8x32xf32>
    %c0_38 = arith.constant 0 : index
    %c0_39 = arith.constant 0 : index
    %101 = vector.load %arg7[%c0_38, %c0_39] : memref<1x32xf32, #tpu.memory_space<vmem>>, vector<1x32xf32>
    %102 = vector.broadcast %101 : vector<1x32xf32> to vector<8x32xf32>
    %103 = arith.addf %100, %102 : vector<8x32xf32>
    %c0_40 = arith.constant 0 : index
    %c0_41 = arith.constant 0 : index
    %104 = vector.load %arg8[%c0_40, %c0_41] : memref<1x32xf32, #tpu.memory_space<vmem>>, vector<1x32xf32>
    %c0_42 = arith.constant 0 : index
    %c0_43 = arith.constant 0 : index
    %105 = vector.load %arg9[%c0_42, %c0_43] : memref<1x32xf32, #tpu.memory_space<vmem>>, vector<1x32xf32>
    %cst_44 = arith.constant dense<0.000000e+00> : vector<8xf32>
    %106 = vector.multi_reduction <add>, %103, %cst_44 [1] : vector<8x32xf32> to vector<8xf32>
    %107 = vector.shape_cast %106 : vector<8xf32> to vector<8x1xf32>
    %cst_45 = arith.constant 3.200000e+01 : f32
    %108 = vector.broadcast %cst_45 : f32 to vector<8x1xf32>
    %109 = arith.divf %107, %108 : vector<8x1xf32>
    %110 = vector.broadcast %109 : vector<8x1xf32> to vector<8x32xf32>
    %111 = arith.subf %103, %110 : vector<8x32xf32>
    %112 = arith.mulf %111, %111 : vector<8x32xf32>
    %cst_46 = arith.constant dense<0.000000e+00> : vector<8xf32>
    %113 = vector.multi_reduction <add>, %112, %cst_46 [1] : vector<8x32xf32> to vector<8xf32>
    %114 = vector.shape_cast %113 : vector<8xf32> to vector<8x1xf32>
    %cst_47 = arith.constant 3.200000e+01 : f32
    %115 = vector.broadcast %cst_47 : f32 to vector<8x1xf32>
    %116 = arith.divf %114, %115 : vector<8x1xf32>
    %cst_48 = arith.constant 9.99999974E-6 : f32
    %117 = vector.broadcast %cst_48 : f32 to vector<8x1xf32>
    %118 = arith.addf %116, %117 : vector<8x1xf32>
    %119 = math.rsqrt %118 : vector<8x1xf32>
    %120 = vector.broadcast %119 : vector<8x1xf32> to vector<8x32xf32>
    %121 = arith.mulf %111, %120 : vector<8x32xf32>
    %122 = vector.broadcast %104 : vector<1x32xf32> to vector<8x32xf32>
    %123 = arith.mulf %121, %122 : vector<8x32xf32>
    %124 = vector.broadcast %105 : vector<1x32xf32> to vector<8x32xf32>
    %125 = arith.addf %123, %124 : vector<8x32xf32>
    %c0_49 = arith.constant 0 : index
    %c0_50 = arith.constant 0 : index
    %126 = vector.load %arg10[%c0_49, %c0_50] : memref<32x128xf32, #tpu.memory_space<vmem>>, vector<32x128xf32>
    %cst_51 = arith.constant dense<0.000000e+00> : vector<8x128xf32>
    %127 = tpu.matmul %125, %126, %cst_51 {dimension_numbers = #tpu.dot_dimension_numbers<[1], [0], [0], [1], [0, 0, 1, 1], [], []>} : vector<8x32xf32>, vector<32x128xf32>, vector<8x128xf32> -> vector<8x128xf32>
    %c0_52 = arith.constant 0 : index
    %c0_53 = arith.constant 0 : index
    %128 = vector.load %arg11[%c0_52, %c0_53] : memref<1x128xf32, #tpu.memory_space<vmem>>, vector<1x128xf32>
    %129 = vector.broadcast %128 : vector<1x128xf32> to vector<8x128xf32>
    %130 = arith.addf %127, %129 : vector<8x128xf32>
    %cst_54 = arith.constant 5.000000e-01 : f32
    %131 = vector.broadcast %cst_54 : f32 to vector<8x128xf32>
    %132 = arith.mulf %131, %130 : vector<8x128xf32>
    %cst_55 = arith.constant 0.707106769 : f32
    %133 = vector.broadcast %cst_55 : f32 to vector<8x128xf32>
    %134 = arith.mulf %130, %133 : vector<8x128xf32>
    %135 = math.absf %134 : vector<8x128xf32>
    %cst_56 = arith.constant 0.327591091 : f32
    %136 = vector.broadcast %cst_56 : f32 to vector<8x128xf32>
    %137 = arith.mulf %136, %135 : vector<8x128xf32>
    %cst_57 = arith.constant 1.000000e+00 : f32
    %138 = vector.broadcast %cst_57 : f32 to vector<8x128xf32>
    %139 = arith.addf %138, %137 : vector<8x128xf32>
    %cst_58 = arith.constant 1.000000e+00 : f32
    %140 = vector.broadcast %cst_58 : f32 to vector<8x128xf32>
    %141 = arith.divf %140, %139 : vector<8x128xf32>
    %cst_59 = arith.constant 1.06140542 : f32
    %142 = vector.broadcast %cst_59 : f32 to vector<8x128xf32>
    %143 = arith.mulf %142, %141 : vector<8x128xf32>
    %cst_60 = arith.constant -1.45315206 : f32
    %144 = vector.broadcast %cst_60 : f32 to vector<8x128xf32>
    %145 = arith.addf %143, %144 : vector<8x128xf32>
    %146 = arith.mulf %145, %141 : vector<8x128xf32>
    %cst_61 = arith.constant 1.42141378 : f32
    %147 = vector.broadcast %cst_61 : f32 to vector<8x128xf32>
    %148 = arith.addf %146, %147 : vector<8x128xf32>
    %149 = arith.mulf %148, %141 : vector<8x128xf32>
    %cst_62 = arith.constant -0.284496725 : f32
    %150 = vector.broadcast %cst_62 : f32 to vector<8x128xf32>
    %151 = arith.addf %149, %150 : vector<8x128xf32>
    %152 = arith.mulf %151, %141 : vector<8x128xf32>
    %cst_63 = arith.constant 0.254829586 : f32
    %153 = vector.broadcast %cst_63 : f32 to vector<8x128xf32>
    %154 = arith.addf %152, %153 : vector<8x128xf32>
    %155 = arith.mulf %154, %141 : vector<8x128xf32>
    %cst_64 = arith.constant 0.000000e+00 : f32
    %156 = vector.broadcast %cst_64 : f32 to vector<8x128xf32>
    %157 = arith.subf %156, %135 : vector<8x128xf32>
    %158 = arith.mulf %157, %135 : vector<8x128xf32>
    %159 = math.exp %158 : vector<8x128xf32>
    %160 = arith.mulf %155, %159 : vector<8x128xf32>
    %cst_65 = arith.constant 1.000000e+00 : f32
    %161 = vector.broadcast %cst_65 : f32 to vector<8x128xf32>
    %162 = arith.subf %161, %160 : vector<8x128xf32>
    %cst_66 = arith.constant 0.000000e+00 : f32
    %163 = vector.broadcast %cst_66 : f32 to vector<8x128xf32>
    %164 = arith.cmpf oge, %134, %163 : vector<8x128xf32>
    %cst_67 = arith.constant 0.000000e+00 : f32
    %165 = vector.broadcast %cst_67 : f32 to vector<8x128xf32>
    %166 = arith.subf %165, %162 : vector<8x128xf32>
    %167 = arith.select %164, %162, %166 : vector<8x128xi1>, vector<8x128xf32>
    %cst_68 = arith.constant 1.000000e+00 : f32
    %168 = vector.broadcast %cst_68 : f32 to vector<8x128xf32>
    %169 = arith.addf %168, %167 : vector<8x128xf32>
    %170 = arith.mulf %132, %169 : vector<8x128xf32>
    %c0_69 = arith.constant 0 : index
    %c0_70 = arith.constant 0 : index
    %171 = vector.load %arg12[%c0_69, %c0_70] : memref<128x32xf32, #tpu.memory_space<vmem>>, vector<128x32xf32>
    %cst_71 = arith.constant dense<0.000000e+00> : vector<8x32xf32>
    %172 = tpu.matmul %170, %171, %cst_71 {dimension_numbers = #tpu.dot_dimension_numbers<[1], [0], [0], [1], [0, 0, 1, 1], [], []>} : vector<8x128xf32>, vector<128x32xf32>, vector<8x32xf32> -> vector<8x32xf32>
    %173 = arith.addf %103, %172 : vector<8x32xf32>
    %c0_72 = arith.constant 0 : index
    %c0_73 = arith.constant 0 : index
    %174 = vector.load %arg13[%c0_72, %c0_73] : memref<1x32xf32, #tpu.memory_space<vmem>>, vector<1x32xf32>
    %175 = vector.broadcast %174 : vector<1x32xf32> to vector<8x32xf32>
    %176 = arith.addf %173, %175 : vector<8x32xf32>
    %c0_74 = arith.constant 0 : index
    %c0_75 = arith.constant 0 : index
    %177 = vector.load %arg14[%c0_74, %c0_75] : memref<1x32xf32, #tpu.memory_space<vmem>>, vector<1x32xf32>
    %c0_76 = arith.constant 0 : index
    %c0_77 = arith.constant 0 : index
    %178 = vector.load %arg15[%c0_76, %c0_77] : memref<1x32xf32, #tpu.memory_space<vmem>>, vector<1x32xf32>
    %cst_78 = arith.constant dense<0.000000e+00> : vector<8xf32>
    %179 = vector.multi_reduction <add>, %176, %cst_78 [1] : vector<8x32xf32> to vector<8xf32>
    %180 = vector.shape_cast %179 : vector<8xf32> to vector<8x1xf32>
    %cst_79 = arith.constant 3.200000e+01 : f32
    %181 = vector.broadcast %cst_79 : f32 to vector<8x1xf32>
    %182 = arith.divf %180, %181 : vector<8x1xf32>
    %183 = vector.broadcast %182 : vector<8x1xf32> to vector<8x32xf32>
    %184 = arith.subf %176, %183 : vector<8x32xf32>
    %185 = arith.mulf %184, %184 : vector<8x32xf32>
    %cst_80 = arith.constant dense<0.000000e+00> : vector<8xf32>
    %186 = vector.multi_reduction <add>, %185, %cst_80 [1] : vector<8x32xf32> to vector<8xf32>
    %187 = vector.shape_cast %186 : vector<8xf32> to vector<8x1xf32>
    %cst_81 = arith.constant 3.200000e+01 : f32
    %188 = vector.broadcast %cst_81 : f32 to vector<8x1xf32>
    %189 = arith.divf %187, %188 : vector<8x1xf32>
    %cst_82 = arith.constant 9.99999974E-6 : f32
    %190 = vector.broadcast %cst_82 : f32 to vector<8x1xf32>
    %191 = arith.addf %189, %190 : vector<8x1xf32>
    %192 = math.rsqrt %191 : vector<8x1xf32>
    %193 = vector.broadcast %192 : vector<8x1xf32> to vector<8x32xf32>
    %194 = arith.mulf %184, %193 : vector<8x32xf32>
    %195 = vector.broadcast %177 : vector<1x32xf32> to vector<8x32xf32>
    %196 = arith.mulf %194, %195 : vector<8x32xf32>
    %197 = vector.broadcast %178 : vector<1x32xf32> to vector<8x32xf32>
    %198 = arith.addf %196, %197 : vector<8x32xf32>
    %c0_83 = arith.constant 0 : index
    %c0_84 = arith.constant 0 : index
    %c0_85 = arith.constant 0 : index
    %199 = vector.load %arg16[%c0_83, %c0_84, %c0_85] : memref<1x8x32xf32, #tpu.memory_space<vmem>>, vector<1x8x32xf32>
    %200 = vector.shape_cast %199 : vector<1x8x32xf32> to vector<8x32xf32>
    %201 = vector.shape_cast %198 : vector<8x32xf32> to vector<1x8x32xf32>
    tpu.vector_store %arg16[%c0_83, %c0_84, %c0_85], %201 {strides = array<i32>} : memref<1x8x32xf32, #tpu.memory_space<vmem>>, vector<1x8x32xf32>,
    return
  }
  func.func @transform_0(%arg0: i32) -> (i32, i32, i32) {
    %c0_i32 = arith.constant 0 : i32
    %c0_i32_0 = arith.constant 0 : i32
    %c0_i32_1 = arith.constant 0 : i32
    return %arg0, %c0_i32, %c0_i32_0 : i32, i32, i32
  }
  func.func @transform_1(%arg0: i32) -> (i32, i32) {
    %c0_i32 = arith.constant 0 : i32
    %c0_i32_0 = arith.constant 0 : i32
    %c0_i32_1 = arith.constant 0 : i32
    return %c0_i32, %c0_i32_0 : i32, i32
  }
  func.func @transform_2(%arg0: i32) -> (i32, i32) {
    %c0_i32 = arith.constant 0 : i32
    %c0_i32_0 = arith.constant 0 : i32
    %c0_i32_1 = arith.constant 0 : i32
    return %c0_i32, %c0_i32_0 : i32, i32
  }
  func.func @transform_3(%arg0: i32) -> (i32, i32) {
    %c0_i32 = arith.constant 0 : i32
    %c0_i32_0 = arith.constant 0 : i32
    %c0_i32_1 = arith.constant 0 : i32
    return %c0_i32, %c0_i32_0 : i32, i32
  }
  func.func @transform_4(%arg0: i32) -> (i32, i32) {
    %c0_i32 = arith.constant 0 : i32
    %c0_i32_0 = arith.constant 0 : i32
    %c0_i32_1 = arith.constant 0 : i32
    return %c0_i32, %c0_i32_0 : i32, i32
  }
  func.func @transform_5(%arg0: i32) -> (i32, i32) {
    %c0_i32 = arith.constant 0 : i32
    %c0_i32_0 = arith.constant 0 : i32
    %c0_i32_1 = arith.constant 0 : i32
    return %c0_i32, %c0_i32_0 : i32, i32
  }
  func.func @transform_6(%arg0: i32) -> (i32, i32) {
    %c0_i32 = arith.constant 0 : i32
    %c0_i32_0 = arith.constant 0 : i32
    %c0_i32_1 = arith.constant 0 : i32
    return %c0_i32, %c0_i32_0 : i32, i32
  }
  func.func @transform_7(%arg0: i32) -> (i32, i32) {
    %c0_i32 = arith.constant 0 : i32
    %c0_i32_0 = arith.constant 0 : i32
    %c0_i32_1 = arith.constant 0 : i32
    return %c0_i32, %c0_i32_0 : i32, i32
  }
  func.func @transform_8(%arg0: i32) -> (i32, i32) {
    %c0_i32 = arith.constant 0 : i32
    %c0_i32_0 = arith.constant 0 : i32
    %c0_i32_1 = arith.constant 0 : i32
    return %c0_i32, %c0_i32_0 : i32, i32
  }
  func.func @transform_9(%arg0: i32) -> (i32, i32) {
    %c0_i32 = arith.constant 0 : i32
    %c0_i32_0 = arith.constant 0 : i32
    %c0_i32_1 = arith.constant 0 : i32
    return %c0_i32, %c0_i32_0 : i32, i32
  }
  func.func @transform_10(%arg0: i32) -> (i32, i32) {
    %c0_i32 = arith.constant 0 : i32
    %c0_i32_0 = arith.constant 0 : i32
    %c0_i32_1 = arith.constant 0 : i32
    return %c0_i32, %c0_i32_0 : i32, i32
  }
  func.func @transform_11(%arg0: i32) -> (i32, i32) {
    %c0_i32 = arith.constant 0 : i32
    %c0_i32_0 = arith.constant 0 : i32
    %c0_i32_1 = arith.constant 0 : i32
    return %c0_i32, %c0_i32_0 : i32, i32
  }
  func.func @transform_12(%arg0: i32) -> (i32, i32) {
    %c0_i32 = arith.constant 0 : i32
    %c0_i32_0 = arith.constant 0 : i32
    %c0_i32_1 = arith.constant 0 : i32
    return %c0_i32, %c0_i32_0 : i32, i32
  }
  func.func @transform_13(%arg0: i32) -> (i32, i32) {
    %c0_i32 = arith.constant 0 : i32
    %c0_i32_0 = arith.constant 0 : i32
    %c0_i32_1 = arith.constant 0 : i32
    return %c0_i32, %c0_i32_0 : i32, i32
  }
  func.func @transform_14(%arg0: i32) -> (i32, i32) {
    %c0_i32 = arith.constant 0 : i32
    %c0_i32_0 = arith.constant 0 : i32
    %c0_i32_1 = arith.constant 0 : i32
    return %c0_i32, %c0_i32_0 : i32, i32
  }
  func.func @transform_15(%arg0: i32) -> (i32, i32, i32) {
    %c0_i32 = arith.constant 0 : i32
    %c0_i32_0 = arith.constant 0 : i32
    %c0_i32_1 = arith.constant 0 : i32
    return %arg0, %c0_i32, %c0_i32_0 : i32, i32, i32
  }
}

module attributes {stable_mosaic.version = 11 : i64} {
  func.func @_block_kernel(%arg0: i32, %arg1: memref<1x8x32xf32, #tpu.memory_space<vmem>>, %arg2: memref<1x32xf32, #tpu.memory_space<vmem>>, %arg3: memref<1x32xf32, #tpu.memory_space<vmem>>, %arg4: memref<32x96xf32, #tpu.memory_space<vmem>>, %arg5: memref<1x96xf32, #tpu.memory_space<vmem>>, %arg6: memref<32x32xf32, #tpu.memory_space<vmem>>, %arg7: memref<1x32xf32, #tpu.memory_space<vmem>>, %arg8: memref<1x32xf32, #tpu.memory_space<vmem>>, %arg9: memref<1x32xf32, #tpu.memory_space<vmem>>, %arg10: memref<32x128xf32, #tpu.memory_space<vmem>>, %arg11: memref<1x128xf32, #tpu.memory_space<vmem>>, %arg12: memref<128x32xf32, #tpu.memory_space<vmem>>, %arg13: memref<1x32xf32, #tpu.memory_space<vmem>>, %arg14: memref<1x32xf32, #tpu.memory_space<vmem>>, %arg15: memref<1x32xf32, #tpu.memory_space<vmem>>, %arg16: memref<1x8x32xf32, #tpu.memory_space<vmem>>) attributes {dimension_semantics = [#tpu.dimension_semantics<parallel>], iteration_bounds = array<i64: 4>, scalar_prefetch = 0 : i64, scratch_operands = 0 : i64, tpu.core_type = #tpu.core_type<tc>, window_params = [{transform_indices = @transform_0, window_bounds = array<i64: 1, 8, 32>}, {pipeline_mode = #tpu.pipeline_mode<synchronous>, transform_indices = @transform_1, window_bounds = array<i64: 1, 32>}, {pipeline_mode = #tpu.pipeline_mode<synchronous>, transform_indices = @transform_2, window_bounds = array<i64: 1, 32>}, {pipeline_mode = #tpu.pipeline_mode<synchronous>, transform_indices = @transform_3, window_bounds = array<i64: 32, 96>}, {pipeline_mode = #tpu.pipeline_mode<synchronous>, transform_indices = @transform_4, window_bounds = array<i64: 1, 96>}, {pipeline_mode = #tpu.pipeline_mode<synchronous>, transform_indices = @transform_5, window_bounds = array<i64: 32, 32>}, {pipeline_mode = #tpu.pipeline_mode<synchronous>, transform_indices = @transform_6, window_bounds = array<i64: 1, 32>}, {pipeline_mode = #tpu.pipeline_mode<synchronous>, transform_indices = @transform_7, window_bounds = array<i64: 1, 32>}, {pipeline_mode = #tpu.pipeline_mode<synchronous>, transform_indices = @transform_8, window_bounds = array<i64: 1, 32>}, {pipeline_mode = #tpu.pipeline_mode<synchronous>, transform_indices = @transform_9, window_bounds = array<i64: 32, 128>}, {pipeline_mode = #tpu.pipeline_mode<synchronous>, transform_indices = @transform_10, window_bounds = array<i64: 1, 128>}, {pipeline_mode = #tpu.pipeline_mode<synchronous>, transform_indices = @transform_11, window_bounds = array<i64: 128, 32>}, {pipeline_mode = #tpu.pipeline_mode<synchronous>, transform_indices = @transform_12, window_bounds = array<i64: 1, 32>}, {pipeline_mode = #tpu.pipeline_mode<synchronous>, transform_indices = @transform_13, window_bounds = array<i64: 1, 32>}, {pipeline_mode = #tpu.pipeline_mode<synchronous>, transform_indices = @transform_14, window_bounds = array<i64: 1, 32>}, {transform_indices = @transform_15, window_bounds = array<i64: 1, 8, 32>}]} {
    %c0 = arith.constant 0 : index
    %c0_0 = arith.constant 0 : index
    %c0_1 = arith.constant 0 : index
    %0 = vector.load %arg1[%c0, %c0_0, %c0_1] : memref<1x8x32xf32, #tpu.memory_space<vmem>>, vector<1x8x32xf32>
    %1 = vector.shape_cast %0 : vector<1x8x32xf32> to vector<8x32xf32>
    %c0_2 = arith.constant 0 : index
    %c0_3 = arith.constant 0 : index
    %2 = vector.load %arg2[%c0_2, %c0_3] : memref<1x32xf32, #tpu.memory_space<vmem>>, vector<1x32xf32>
    %c0_4 = arith.constant 0 : index
    %c0_5 = arith.constant 0 : index
    %3 = vector.load %arg3[%c0_4, %c0_5] : memref<1x32xf32, #tpu.memory_space<vmem>>, vector<1x32xf32>
    %cst = arith.constant dense<0.000000e+00> : vector<8xf32>
    %4 = vector.multi_reduction <add>, %1, %cst [1] : vector<8x32xf32> to vector<8xf32>
    %5 = vector.shape_cast %4 : vector<8xf32> to vector<8x1xf32>
    %cst_6 = arith.constant 3.200000e+01 : f32
    %6 = vector.broadcast %cst_6 : f32 to vector<8x1xf32>
    %7 = arith.divf %5, %6 : vector<8x1xf32>
    %8 = vector.broadcast %7 : vector<8x1xf32> to vector<8x32xf32>
    %9 = arith.subf %1, %8 : vector<8x32xf32>
    %10 = arith.mulf %9, %9 : vector<8x32xf32>
    %cst_7 = arith.constant dense<0.000000e+00> : vector<8xf32>
    %11 = vector.multi_reduction <add>, %10, %cst_7 [1] : vector<8x32xf32> to vector<8xf32>
    %12 = vector.shape_cast %11 : vector<8xf32> to vector<8x1xf32>
    %cst_8 = arith.constant 3.200000e+01 : f32
    %13 = vector.broadcast %cst_8 : f32 to vector<8x1xf32>
    %14 = arith.divf %12, %13 : vector<8x1xf32>
    %cst_9 = arith.constant 9.99999974E-6 : f32
    %15 = vector.broadcast %cst_9 : f32 to vector<8x1xf32>
    %16 = arith.addf %14, %15 : vector<8x1xf32>
    %17 = math.rsqrt %16 : vector<8x1xf32>
    %18 = vector.broadcast %17 : vector<8x1xf32> to vector<8x32xf32>
    %19 = arith.mulf %9, %18 : vector<8x32xf32>
    %20 = vector.broadcast %2 : vector<1x32xf32> to vector<8x32xf32>
    %21 = arith.mulf %19, %20 : vector<8x32xf32>
    %22 = vector.broadcast %3 : vector<1x32xf32> to vector<8x32xf32>
    %23 = arith.addf %21, %22 : vector<8x32xf32>
    %c0_10 = arith.constant 0 : index
    %c0_11 = arith.constant 0 : index
    %24 = vector.load %arg4[%c0_10, %c0_11] : memref<32x96xf32, #tpu.memory_space<vmem>>, vector<32x96xf32>
    %cst_12 = arith.constant dense<0.000000e+00> : vector<8x96xf32>
    %25 = tpu.matmul %23, %24, %cst_12 {dimension_numbers = #tpu.dot_dimension_numbers<[1], [0], [0], [1], [0, 0, 1, 1], [], []>} : vector<8x32xf32>, vector<32x96xf32>, vector<8x96xf32> -> vector<8x96xf32>
    %c0_13 = arith.constant 0 : index
    %c0_14 = arith.constant 0 : index
    %26 = vector.load %arg5[%c0_13, %c0_14] : memref<1x96xf32, #tpu.memory_space<vmem>>, vector<1x96xf32>
    %27 = vector.broadcast %26 : vector<1x96xf32> to vector<8x96xf32>
    %28 = arith.addf %25, %27 : vector<8x96xf32>
    %29 = vector.extract_strided_slice %28 {offsets = [0, 0], sizes = [8, 8], strides = [1, 1]} : vector<8x96xf32> to vector<8x8xf32>
    %cst_15 = arith.constant 0.353553385 : f32
    %30 = vector.broadcast %cst_15 : f32 to vector<8x8xf32>
    %31 = arith.mulf %29, %30 : vector<8x8xf32>
    %32 = vector.extract_strided_slice %28 {offsets = [0, 32], sizes = [8, 8], strides = [1, 1]} : vector<8x96xf32> to vector<8x8xf32>
    %33 = vector.extract_strided_slice %28 {offsets = [0, 64], sizes = [8, 8], strides = [1, 1]} : vector<8x96xf32> to vector<8x8xf32>
    %cst_16 = arith.constant dense<0.000000e+00> : vector<8x8xf32>
    %34 = tpu.matmul %31, %32, %cst_16 {dimension_numbers = #tpu.dot_dimension_numbers<[1], [1], [0], [0], [0, 0, 1, 0], [], []>} : vector<8x8xf32>, vector<8x8xf32>, vector<8x8xf32> -> vector<8x8xf32>
    %cst_17 = arith.constant dense<0xFF800000> : vector<8xf32>
    %35 = vector.multi_reduction <maximumf>, %34, %cst_17 [1] : vector<8x8xf32> to vector<8xf32>
    %36 = vector.shape_cast %35 : vector<8xf32> to vector<8x1xf32>
    %37 = vector.broadcast %36 : vector<8x1xf32> to vector<8x8xf32>
    %38 = arith.subf %34, %37 : vector<8x8xf32>
    %39 = math.exp %38 : vector<8x8xf32>
    %cst_18 = arith.constant dense<0.000000e+00> : vector<8xf32>
    %40 = vector.multi_reduction <add>, %39, %cst_18 [1] : vector<8x8xf32> to vector<8xf32>
    %41 = vector.shape_cast %40 : vector<8xf32> to vector<8x1xf32>
    %42 = tpu.reciprocal %41 {approx = true} : vector<8x1xf32> -> vector<8x1xf32>
    %43 = vector.broadcast %42 : vector<8x1xf32> to vector<8x8xf32>
    %44 = arith.mulf %39, %43 : vector<8x8xf32>
    %cst_19 = arith.constant dense<0.000000e+00> : vector<8x8xf32>
    %45 = tpu.matmul %44, %33, %cst_19 {dimension_numbers = #tpu.dot_dimension_numbers<[1], [0], [0], [1], [0, 0, 1, 1], [], []>} : vector<8x8xf32>, vector<8x8xf32>, vector<8x8xf32> -> vector<8x8xf32>
    %46 = vector.extract_strided_slice %28 {offsets = [0, 8], sizes = [8, 8], strides = [1, 1]} : vector<8x96xf32> to vector<8x8xf32>
    %cst_20 = arith.constant 0.353553385 : f32
    %47 = vector.broadcast %cst_20 : f32 to vector<8x8xf32>
    %48 = arith.mulf %46, %47 : vector<8x8xf32>
    %49 = vector.extract_strided_slice %28 {offsets = [0, 40], sizes = [8, 8], strides = [1, 1]} : vector<8x96xf32> to vector<8x8xf32>
    %50 = vector.extract_strided_slice %28 {offsets = [0, 72], sizes = [8, 8], strides = [1, 1]} : vector<8x96xf32> to vector<8x8xf32>
    %cst_21 = arith.constant dense<0.000000e+00> : vector<8x8xf32>
    %51 = tpu.matmul %48, %49, %cst_21 {dimension_numbers = #tpu.dot_dimension_numbers<[1], [1], [0], [0], [0, 0, 1, 0], [], []>} : vector<8x8xf32>, vector<8x8xf32>, vector<8x8xf32> -> vector<8x8xf32>
    %cst_22 = arith.constant dense<0xFF800000> : vector<8xf32>
    %52 = vector.multi_reduction <maximumf>, %51, %cst_22 [1] : vector<8x8xf32> to vector<8xf32>
    %53 = vector.shape_cast %52 : vector<8xf32> to vector<8x1xf32>
    %54 = vector.broadcast %53 : vector<8x1xf32> to vector<8x8xf32>
    %55 = arith.subf %51, %54 : vector<8x8xf32>
    %56 = math.exp %55 : vector<8x8xf32>
    %cst_23 = arith.constant dense<0.000000e+00> : vector<8xf32>
    %57 = vector.multi_reduction <add>, %56, %cst_23 [1] : vector<8x8xf32> to vector<8xf32>
    %58 = vector.shape_cast %57 : vector<8xf32> to vector<8x1xf32>
    %59 = tpu.reciprocal %58 {approx = true} : vector<8x1xf32> -> vector<8x1xf32>
    %60 = vector.broadcast %59 : vector<8x1xf32> to vector<8x8xf32>
    %61 = arith.mulf %56, %60 : vector<8x8xf32>
    %cst_24 = arith.constant dense<0.000000e+00> : vector<8x8xf32>
    %62 = tpu.matmul %61, %50, %cst_24 {dimension_numbers = #tpu.dot_dimension_numbers<[1], [0], [0], [1], [0, 0, 1, 1], [], []>} : vector<8x8xf32>, vector<8x8xf32>, vector<8x8xf32> -> vector<8x8xf32>
    %63 = vector.extract_strided_slice %28 {offsets = [0, 16], sizes = [8, 8], strides = [1, 1]} : vector<8x96xf32> to vector<8x8xf32>
    %cst_25 = arith.constant 0.353553385 : f32
    %64 = vector.broadcast %cst_25 : f32 to vector<8x8xf32>
    %65 = arith.mulf %63, %64 : vector<8x8xf32>
    %66 = vector.extract_strided_slice %28 {offsets = [0, 48], sizes = [8, 8], strides = [1, 1]} : vector<8x96xf32> to vector<8x8xf32>
    %67 = vector.extract_strided_slice %28 {offsets = [0, 80], sizes = [8, 8], strides = [1, 1]} : vector<8x96xf32> to vector<8x8xf32>
    %cst_26 = arith.constant dense<0.000000e+00> : vector<8x8xf32>
    %68 = tpu.matmul %65, %66, %cst_26 {dimension_numbers = #tpu.dot_dimension_numbers<[1], [1], [0], [0], [0, 0, 1, 0], [], []>} : vector<8x8xf32>, vector<8x8xf32>, vector<8x8xf32> -> vector<8x8xf32>
    %cst_27 = arith.constant dense<0xFF800000> : vector<8xf32>
    %69 = vector.multi_reduction <maximumf>, %68, %cst_27 [1] : vector<8x8xf32> to vector<8xf32>
    %70 = vector.shape_cast %69 : vector<8xf32> to vector<8x1xf32>
    %71 = vector.broadcast %70 : vector<8x1xf32> to vector<8x8xf32>
    %72 = arith.subf %68, %71 : vector<8x8xf32>
    %73 = math.exp %72 : vector<8x8xf32>
    %cst_28 = arith.constant dense<0.000000e+00> : vector<8xf32>
    %74 = vector.multi_reduction <add>, %73, %cst_28 [1] : vector<8x8xf32> to vector<8xf32>
    %75 = vector.shape_cast %74 : vector<8xf32> to vector<8x1xf32>
    %76 = tpu.reciprocal %75 {approx = true} : vector<8x1xf32> -> vector<8x1xf32>
    %77 = vector.broadcast %76 : vector<8x1xf32> to vector<8x8xf32>
    %78 = arith.mulf %73, %77 : vector<8x8xf32>
    %cst_29 = arith.constant dense<0.000000e+00> : vector<8x8xf32>
    %79 = tpu.matmul %78, %67, %cst_29 {dimension_numbers = #tpu.dot_dimension_numbers<[1], [0], [0], [1], [0, 0, 1, 1], [], []>} : vector<8x8xf32>, vector<8x8xf32>, vector<8x8xf32> -> vector<8x8xf32>
    %80 = vector.extract_strided_slice %28 {offsets = [0, 24], sizes = [8, 8], strides = [1, 1]} : vector<8x96xf32> to vector<8x8xf32>
    %cst_30 = arith.constant 0.353553385 : f32
    %81 = vector.broadcast %cst_30 : f32 to vector<8x8xf32>
    %82 = arith.mulf %80, %81 : vector<8x8xf32>
    %83 = vector.extract_strided_slice %28 {offsets = [0, 56], sizes = [8, 8], strides = [1, 1]} : vector<8x96xf32> to vector<8x8xf32>
    %84 = vector.extract_strided_slice %28 {offsets = [0, 88], sizes = [8, 8], strides = [1, 1]} : vector<8x96xf32> to vector<8x8xf32>
    %cst_31 = arith.constant dense<0.000000e+00> : vector<8x8xf32>
    %85 = tpu.matmul %82, %83, %cst_31 {dimension_numbers = #tpu.dot_dimension_numbers<[1], [1], [0], [0], [0, 0, 1, 0], [], []>} : vector<8x8xf32>, vector<8x8xf32>, vector<8x8xf32> -> vector<8x8xf32>
    %cst_32 = arith.constant dense<0xFF800000> : vector<8xf32>
    %86 = vector.multi_reduction <maximumf>, %85, %cst_32 [1] : vector<8x8xf32> to vector<8xf32>
    %87 = vector.shape_cast %86 : vector<8xf32> to vector<8x1xf32>
    %88 = vector.broadcast %87 : vector<8x1xf32> to vector<8x8xf32>
    %89 = arith.subf %85, %88 : vector<8x8xf32>
    %90 = math.exp %89 : vector<8x8xf32>
    %cst_33 = arith.constant dense<0.000000e+00> : vector<8xf32>
    %91 = vector.multi_reduction <add>, %90, %cst_33 [1] : vector<8x8xf32> to vector<8xf32>
    %92 = vector.shape_cast %91 : vector<8xf32> to vector<8x1xf32>
    %93 = tpu.reciprocal %92 {approx = true} : vector<8x1xf32> -> vector<8x1xf32>
    %94 = vector.broadcast %93 : vector<8x1xf32> to vector<8x8xf32>
    %95 = arith.mulf %90, %94 : vector<8x8xf32>
    %cst_34 = arith.constant dense<0.000000e+00> : vector<8x8xf32>
    %96 = tpu.matmul %95, %84, %cst_34 {dimension_numbers = #tpu.dot_dimension_numbers<[1], [0], [0], [1], [0, 0, 1, 1], [], []>} : vector<8x8xf32>, vector<8x8xf32>, vector<8x8xf32> -> vector<8x8xf32>
    %97 = tpu.concatenate %45, %62, %79, %96 in 1 : vector<8x8xf32>, vector<8x8xf32>, vector<8x8xf32>, vector<8x8xf32> -> vector<8x32xf32>
    %c0_35 = arith.constant 0 : index
    %c0_36 = arith.constant 0 : index
    %98 = vector.load %arg6[%c0_35, %c0_36] : memref<32x32xf32, #tpu.memory_space<vmem>>, vector<32x32xf32>
    %cst_37 = arith.constant dense<0.000000e+00> : vector<8x32xf32>
    %99 = tpu.matmul %97, %98, %cst_37 {dimension_numbers = #tpu.dot_dimension_numbers<[1], [0], [0], [1], [0, 0, 1, 1], [], []>} : vector<8x32xf32>, vector<32x32xf32>, vector<8x32xf32> -> vector<8x32xf32>
    %100 = arith.addf %1, %99 : vector<8x32xf32>
    %c0_38 = arith.constant 0 : index
    %c0_39 = arith.constant 0 : index
    %101 = vector.load %arg7[%c0_38, %c0_39] : memref<1x32xf32, #tpu.memory_space<vmem>>, vector<1x32xf32>
    %102 = vector.broadcast %101 : vector<1x32xf32> to vector<8x32xf32>
    %103 = arith.addf %100, %102 : vector<8x32xf32>
    %c0_40 = arith.constant 0 : index
    %c0_41 = arith.constant 0 : index
    %104 = vector.load %arg8[%c0_40, %c0_41] : memref<1x32xf32, #tpu.memory_space<vmem>>, vector<1x32xf32>
    %c0_42 = arith.constant 0 : index
    %c0_43 = arith.constant 0 : index
    %105 = vector.load %arg9[%c0_42, %c0_43] : memref<1x32xf32, #tpu.memory_space<vmem>>, vector<1x32xf32>
    %cst_44 = arith.constant dense<0.000000e+00> : vector<8xf32>
    %106 = vector.multi_reduction <add>, %103, %cst_44 [1] : vector<8x32xf32> to vector<8xf32>
    %107 = vector.shape_cast %106 : vector<8xf32> to vector<8x1xf32>
    %cst_45 = arith.constant 3.200000e+01 : f32
    %108 = vector.broadcast %cst_45 : f32 to vector<8x1xf32>
    %109 = arith.divf %107, %108 : vector<8x1xf32>
    %110 = vector.broadcast %109 : vector<8x1xf32> to vector<8x32xf32>
    %111 = arith.subf %103, %110 : vector<8x32xf32>
    %112 = arith.mulf %111, %111 : vector<8x32xf32>
    %cst_46 = arith.constant dense<0.000000e+00> : vector<8xf32>
    %113 = vector.multi_reduction <add>, %112, %cst_46 [1] : vector<8x32xf32> to vector<8xf32>
    %114 = vector.shape_cast %113 : vector<8xf32> to vector<8x1xf32>
    %cst_47 = arith.constant 3.200000e+01 : f32
    %115 = vector.broadcast %cst_47 : f32 to vector<8x1xf32>
    %116 = arith.divf %114, %115 : vector<8x1xf32>
    %cst_48 = arith.constant 9.99999974E-6 : f32
    %117 = vector.broadcast %cst_48 : f32 to vector<8x1xf32>
    %118 = arith.addf %116, %117 : vector<8x1xf32>
    %119 = math.rsqrt %118 : vector<8x1xf32>
    %120 = vector.broadcast %119 : vector<8x1xf32> to vector<8x32xf32>
    %121 = arith.mulf %111, %120 : vector<8x32xf32>
    %122 = vector.broadcast %104 : vector<1x32xf32> to vector<8x32xf32>
    %123 = arith.mulf %121, %122 : vector<8x32xf32>
    %124 = vector.broadcast %105 : vector<1x32xf32> to vector<8x32xf32>
    %125 = arith.addf %123, %124 : vector<8x32xf32>
    %c0_49 = arith.constant 0 : index
    %c0_50 = arith.constant 0 : index
    %126 = vector.load %arg10[%c0_49, %c0_50] : memref<32x128xf32, #tpu.memory_space<vmem>>, vector<32x128xf32>
    %cst_51 = arith.constant dense<0.000000e+00> : vector<8x128xf32>
    %127 = tpu.matmul %125, %126, %cst_51 {dimension_numbers = #tpu.dot_dimension_numbers<[1], [0], [0], [1], [0, 0, 1, 1], [], []>} : vector<8x32xf32>, vector<32x128xf32>, vector<8x128xf32> -> vector<8x128xf32>
    %c0_52 = arith.constant 0 : index
    %c0_53 = arith.constant 0 : index
    %128 = vector.load %arg11[%c0_52, %c0_53] : memref<1x128xf32, #tpu.memory_space<vmem>>, vector<1x128xf32>
    %129 = vector.broadcast %128 : vector<1x128xf32> to vector<8x128xf32>
    %130 = arith.addf %127, %129 : vector<8x128xf32>
    %cst_54 = arith.constant 5.000000e-01 : f32
    %131 = vector.broadcast %cst_54 : f32 to vector<8x128xf32>
    %132 = arith.mulf %131, %130 : vector<8x128xf32>
    %cst_55 = arith.constant 0.707106769 : f32
    %133 = vector.broadcast %cst_55 : f32 to vector<8x128xf32>
    %134 = arith.mulf %130, %133 : vector<8x128xf32>
    %135 = math.absf %134 : vector<8x128xf32>
    %cst_56 = arith.constant 0.327591091 : f32
    %136 = vector.broadcast %cst_56 : f32 to vector<8x128xf32>
    %137 = arith.mulf %136, %135 : vector<8x128xf32>
    %cst_57 = arith.constant 1.000000e+00 : f32
    %138 = vector.broadcast %cst_57 : f32 to vector<8x128xf32>
    %139 = arith.addf %138, %137 : vector<8x128xf32>
    %cst_58 = arith.constant 1.000000e+00 : f32
    %140 = vector.broadcast %cst_58 : f32 to vector<8x128xf32>
    %141 = arith.divf %140, %139 : vector<8x128xf32>
    %cst_59 = arith.constant 1.06140542 : f32
    %142 = vector.broadcast %cst_59 : f32 to vector<8x128xf32>
    %143 = arith.mulf %142, %141 : vector<8x128xf32>
    %cst_60 = arith.constant -1.45315206 : f32
    %144 = vector.broadcast %cst_60 : f32 to vector<8x128xf32>
    %145 = arith.addf %143, %144 : vector<8x128xf32>
    %146 = arith.mulf %145, %141 : vector<8x128xf32>
    %cst_61 = arith.constant 1.42141378 : f32
    %147 = vector.broadcast %cst_61 : f32 to vector<8x128xf32>
    %148 = arith.addf %146, %147 : vector<8x128xf32>
    %149 = arith.mulf %148, %141 : vector<8x128xf32>
    %cst_62 = arith.constant -0.284496725 : f32
    %150 = vector.broadcast %cst_62 : f32 to vector<8x128xf32>
    %151 = arith.addf %149, %150 : vector<8x128xf32>
    %152 = arith.mulf %151, %141 : vector<8x128xf32>
    %cst_63 = arith.constant 0.254829586 : f32
    %153 = vector.broadcast %cst_63 : f32 to vector<8x128xf32>
    %154 = arith.addf %152, %153 : vector<8x128xf32>
    %155 = arith.mulf %154, %141 : vector<8x128xf32>
    %cst_64 = arith.constant 0.000000e+00 : f32
    %156 = vector.broadcast %cst_64 : f32 to vector<8x128xf32>
    %157 = arith.subf %156, %135 : vector<8x128xf32>
    %158 = arith.mulf %157, %135 : vector<8x128xf32>
    %159 = math.exp %158 : vector<8x128xf32>
    %160 = arith.mulf %155, %159 : vector<8x128xf32>
    %cst_65 = arith.constant 1.000000e+00 : f32
    %161 = vector.broadcast %cst_65 : f32 to vector<8x128xf32>
    %162 = arith.subf %161, %160 : vector<8x128xf32>
    %cst_66 = arith.constant 0.000000e+00 : f32
    %163 = vector.broadcast %cst_66 : f32 to vector<8x128xf32>
    %164 = arith.cmpf oge, %134, %163 : vector<8x128xf32>
    %cst_67 = arith.constant 0.000000e+00 : f32
    %165 = vector.broadcast %cst_67 : f32 to vector<8x128xf32>
    %166 = arith.subf %165, %162 : vector<8x128xf32>
    %167 = arith.select %164, %162, %166 : vector<8x128xi1>, vector<8x128xf32>
    %cst_68 = arith.constant 1.000000e+00 : f32
    %168 = vector.broadcast %cst_68 : f32 to vector<8x128xf32>
    %169 = arith.addf %168, %167 : vector<8x128xf32>
    %170 = arith.mulf %132, %169 : vector<8x128xf32>
    %c0_69 = arith.constant 0 : index
    %c0_70 = arith.constant 0 : index
    %171 = vector.load %arg12[%c0_69, %c0_70] : memref<128x32xf32, #tpu.memory_space<vmem>>, vector<128x32xf32>
    %cst_71 = arith.constant dense<0.000000e+00> : vector<8x32xf32>
    %172 = tpu.matmul %170, %171, %cst_71 {dimension_numbers = #tpu.dot_dimension_numbers<[1], [0], [0], [1], [0, 0, 1, 1], [], []>} : vector<8x128xf32>, vector<128x32xf32>, vector<8x32xf32> -> vector<8x32xf32>
    %173 = arith.addf %103, %172 : vector<8x32xf32>
    %c0_72 = arith.constant 0 : index
    %c0_73 = arith.constant 0 : index
    %174 = vector.load %arg13[%c0_72, %c0_73] : memref<1x32xf32, #tpu.memory_space<vmem>>, vector<1x32xf32>
    %175 = vector.broadcast %174 : vector<1x32xf32> to vector<8x32xf32>
    %176 = arith.addf %173, %175 : vector<8x32xf32>
    %c0_74 = arith.constant 0 : index
    %c0_75 = arith.constant 0 : index
    %c0_76 = arith.constant 0 : index
    %177 = vector.load %arg16[%c0_74, %c0_75, %c0_76] : memref<1x8x32xf32, #tpu.memory_space<vmem>>, vector<1x8x32xf32>
    %178 = vector.shape_cast %177 : vector<1x8x32xf32> to vector<8x32xf32>
    %179 = vector.shape_cast %176 : vector<8x32xf32> to vector<1x8x32xf32>
    tpu.vector_store %arg16[%c0_74, %c0_75, %c0_76], %179 {strides = array<i32>} : memref<1x8x32xf32, #tpu.memory_space<vmem>>, vector<1x8x32xf32>,
    return
  }
  func.func @transform_0(%arg0: i32) -> (i32, i32, i32) {
    %c0_i32 = arith.constant 0 : i32
    %c0_i32_0 = arith.constant 0 : i32
    %c0_i32_1 = arith.constant 0 : i32
    return %arg0, %c0_i32, %c0_i32_0 : i32, i32, i32
  }
  func.func @transform_1(%arg0: i32) -> (i32, i32) {
    %c0_i32 = arith.constant 0 : i32
    %c0_i32_0 = arith.constant 0 : i32
    %c0_i32_1 = arith.constant 0 : i32
    return %c0_i32, %c0_i32_0 : i32, i32
  }
  func.func @transform_2(%arg0: i32) -> (i32, i32) {
    %c0_i32 = arith.constant 0 : i32
    %c0_i32_0 = arith.constant 0 : i32
    %c0_i32_1 = arith.constant 0 : i32
    return %c0_i32, %c0_i32_0 : i32, i32
  }
  func.func @transform_3(%arg0: i32) -> (i32, i32) {
    %c0_i32 = arith.constant 0 : i32
    %c0_i32_0 = arith.constant 0 : i32
    %c0_i32_1 = arith.constant 0 : i32
    return %c0_i32, %c0_i32_0 : i32, i32
  }
  func.func @transform_4(%arg0: i32) -> (i32, i32) {
    %c0_i32 = arith.constant 0 : i32
    %c0_i32_0 = arith.constant 0 : i32
    %c0_i32_1 = arith.constant 0 : i32
    return %c0_i32, %c0_i32_0 : i32, i32
  }
  func.func @transform_5(%arg0: i32) -> (i32, i32) {
    %c0_i32 = arith.constant 0 : i32
    %c0_i32_0 = arith.constant 0 : i32
    %c0_i32_1 = arith.constant 0 : i32
    return %c0_i32, %c0_i32_0 : i32, i32
  }
  func.func @transform_6(%arg0: i32) -> (i32, i32) {
    %c0_i32 = arith.constant 0 : i32
    %c0_i32_0 = arith.constant 0 : i32
    %c0_i32_1 = arith.constant 0 : i32
    return %c0_i32, %c0_i32_0 : i32, i32
  }
  func.func @transform_7(%arg0: i32) -> (i32, i32) {
    %c0_i32 = arith.constant 0 : i32
    %c0_i32_0 = arith.constant 0 : i32
    %c0_i32_1 = arith.constant 0 : i32
    return %c0_i32, %c0_i32_0 : i32, i32
  }
  func.func @transform_8(%arg0: i32) -> (i32, i32) {
    %c0_i32 = arith.constant 0 : i32
    %c0_i32_0 = arith.constant 0 : i32
    %c0_i32_1 = arith.constant 0 : i32
    return %c0_i32, %c0_i32_0 : i32, i32
  }
  func.func @transform_9(%arg0: i32) -> (i32, i32) {
    %c0_i32 = arith.constant 0 : i32
    %c0_i32_0 = arith.constant 0 : i32
    %c0_i32_1 = arith.constant 0 : i32
    return %c0_i32, %c0_i32_0 : i32, i32
  }
  func.func @transform_10(%arg0: i32) -> (i32, i32) {
    %c0_i32 = arith.constant 0 : i32
    %c0_i32_0 = arith.constant 0 : i32
    %c0_i32_1 = arith.constant 0 : i32
    return %c0_i32, %c0_i32_0 : i32, i32
  }
  func.func @transform_11(%arg0: i32) -> (i32, i32) {
    %c0_i32 = arith.constant 0 : i32
    %c0_i32_0 = arith.constant 0 : i32
    %c0_i32_1 = arith.constant 0 : i32
    return %c0_i32, %c0_i32_0 : i32, i32
  }
  func.func @transform_12(%arg0: i32) -> (i32, i32) {
    %c0_i32 = arith.constant 0 : i32
    %c0_i32_0 = arith.constant 0 : i32
    %c0_i32_1 = arith.constant 0 : i32
    return %c0_i32, %c0_i32_0 : i32, i32
  }
  func.func @transform_13(%arg0: i32) -> (i32, i32) {
    %c0_i32 = arith.constant 0 : i32
    %c0_i32_0 = arith.constant 0 : i32
    %c0_i32_1 = arith.constant 0 : i32
    return %c0_i32, %c0_i32_0 : i32, i32
  }
  func.func @transform_14(%arg0: i32) -> (i32, i32) {
    %c0_i32 = arith.constant 0 : i32
    %c0_i32_0 = arith.constant 0 : i32
    %c0_i32_1 = arith.constant 0 : i32
    return %c0_i32, %c0_i32_0 : i32, i32
  }
  func.func @transform_15(%arg0: i32) -> (i32, i32, i32) {
    %c0_i32 = arith.constant 0 : i32
    %c0_i32_0 = arith.constant 0 : i32
    %c0_i32_1 = arith.constant 0 : i32
    return %arg0, %c0_i32, %c0_i32_0 : i32, i32, i32
  }
}

module attributes {stable_mosaic.version = 11 : i64} {
  func.func @_final_kernel(%arg0: i32, %arg1: memref<40x64xf32, #tpu.memory_space<vmem>>, %arg2: memref<64x128xf32, #tpu.memory_space<vmem>>, %arg3: memref<1x128xf32, #tpu.memory_space<vmem>>, %arg4: memref<40x128xf32, #tpu.memory_space<vmem>>, %arg5: memref<40x128xf32, #tpu.memory_space<vmem>>) attributes {dimension_semantics = [#tpu.dimension_semantics<arbitrary>], iteration_bounds = array<i64: 1>, scalar_prefetch = 0 : i64, scratch_operands = 0 : i64, tpu.core_type = #tpu.core_type<tc>, window_params = [{pipeline_mode = #tpu.pipeline_mode<synchronous>, transform_indices = @transform_0, window_bounds = array<i64: 40, 64>}, {pipeline_mode = #tpu.pipeline_mode<synchronous>, transform_indices = @transform_1, window_bounds = array<i64: 64, 128>}, {pipeline_mode = #tpu.pipeline_mode<synchronous>, transform_indices = @transform_2, window_bounds = array<i64: 1, 128>}, {pipeline_mode = #tpu.pipeline_mode<synchronous>, transform_indices = @transform_3, window_bounds = array<i64: 40, 128>}, {pipeline_mode = #tpu.pipeline_mode<synchronous>, transform_indices = @transform_4, window_bounds = array<i64: 40, 128>}]} {
    %c0 = arith.constant 0 : index
    %c0_0 = arith.constant 0 : index
    %0 = vector.load %arg1[%c0, %c0_0] : memref<40x64xf32, #tpu.memory_space<vmem>>, vector<40x64xf32>
    %c0_1 = arith.constant 0 : index
    %c0_2 = arith.constant 0 : index
    %1 = vector.load %arg2[%c0_1, %c0_2] : memref<64x128xf32, #tpu.memory_space<vmem>>, vector<64x128xf32>
    %cst = arith.constant dense<0.000000e+00> : vector<40x128xf32>
    %2 = tpu.matmul %0, %1, %cst {dimension_numbers = #tpu.dot_dimension_numbers<[1], [0], [0], [1], [0, 0, 1, 1], [], []>} : vector<40x64xf32>, vector<64x128xf32>, vector<40x128xf32> -> vector<40x128xf32>
    %c0_3 = arith.constant 0 : index
    %c0_4 = arith.constant 0 : index
    %3 = vector.load %arg3[%c0_3, %c0_4] : memref<1x128xf32, #tpu.memory_space<vmem>>, vector<1x128xf32>
    %4 = vector.broadcast %3 : vector<1x128xf32> to vector<40x128xf32>
    %5 = arith.addf %2, %4 : vector<40x128xf32>
    %cst_5 = arith.constant dense<0xFF800000> : vector<40xf32>
    %6 = vector.multi_reduction <maximumf>, %5, %cst_5 [1] : vector<40x128xf32> to vector<40xf32>
    %7 = vector.shape_cast %6 : vector<40xf32> to vector<40x1xf32>
    %8 = vector.broadcast %7 : vector<40x1xf32> to vector<40x128xf32>
    %9 = arith.subf %5, %8 : vector<40x128xf32>
    %10 = math.exp %9 : vector<40x128xf32>
    %cst_6 = arith.constant dense<0.000000e+00> : vector<40xf32>
    %11 = vector.multi_reduction <add>, %10, %cst_6 [1] : vector<40x128xf32> to vector<40xf32>
    %12 = vector.shape_cast %11 : vector<40xf32> to vector<40x1xf32>
    %13 = math.log %12 : vector<40x1xf32>
    %14 = vector.broadcast %13 : vector<40x1xf32> to vector<40x128xf32>
    %15 = arith.subf %9, %14 : vector<40x128xf32>
    %c0_7 = arith.constant 0 : index
    %c0_8 = arith.constant 0 : index
    %16 = vector.load %arg4[%c0_7, %c0_8] : memref<40x128xf32, #tpu.memory_space<vmem>>, vector<40x128xf32>
    tpu.vector_store %arg4[%c0_7, %c0_8], %15 {strides = array<i32>} : memref<40x128xf32, #tpu.memory_space<vmem>>, vector<40x128xf32>,
    %c0_9 = arith.constant 0 : index
    %c0_10 = arith.constant 0 : index
    %17 = vector.load %arg5[%c0_9, %c0_10] : memref<40x128xf32, #tpu.memory_space<vmem>>, vector<40x128xf32>
    tpu.vector_store %arg5[%c0_9, %c0_10], %5 {strides = array<i32>} : memref<40x128xf32, #tpu.memory_space<vmem>>, vector<40x128xf32>,
    return
  }
  func.func @transform_0(%arg0: i32) -> (i32, i32) {
    %c0_i32 = arith.constant 0 : i32
    %c0_i32_0 = arith.constant 0 : i32
    %c0_i32_1 = arith.constant 0 : i32
    return %c0_i32, %c0_i32_0 : i32, i32
  }
  func.func @transform_1(%arg0: i32) -> (i32, i32) {
    %c0_i32 = arith.constant 0 : i32
    %c0_i32_0 = arith.constant 0 : i32
    %c0_i32_1 = arith.constant 0 : i32
    return %c0_i32, %c0_i32_0 : i32, i32
  }
  func.func @transform_2(%arg0: i32) -> (i32, i32) {
    %c0_i32 = arith.constant 0 : i32
    %c0_i32_0 = arith.constant 0 : i32
    %c0_i32_1 = arith.constant 0 : i32
    return %c0_i32, %c0_i32_0 : i32, i32
  }
  func.func @transform_3(%arg0: i32) -> (i32, i32) {
    %c0_i32 = arith.constant 0 : i32
    %c0_i32_0 = arith.constant 0 : i32
    %c0_i32_1 = arith.constant 0 : i32
    return %c0_i32, %c0_i32_0 : i32, i32
  }
  func.func @transform_4(%arg0: i32) -> (i32, i32) {
    %c0_i32 = arith.constant 0 : i32
    %c0_i32_0 = arith.constant 0 : i32
    %c0_i32_1 = arith.constant 0 : i32
    return %c0_i32, %c0_i32_0 : i32, i32
  }
}

module attributes {stable_mosaic.version = 11 : i64} {
  func.func @_conv_taps_kernel(%arg0: i32, %arg1: memref<1x21x32xf32, #tpu.memory_space<vmem>>, %arg2: memref<5x32x64xf32, #tpu.memory_space<vmem>>, %arg3: memref<1x64xf32, #tpu.memory_space<vmem>>, %arg4: memref<1x17x64xf32, #tpu.memory_space<vmem>>) attributes {dimension_semantics = [#tpu.dimension_semantics<parallel>], iteration_bounds = array<i64: 4>, scalar_prefetch = 0 : i64, scratch_operands = 0 : i64, tpu.core_type = #tpu.core_type<tc>, window_params = [{transform_indices = @transform_0, window_bounds = array<i64: 1, 21, 32>}, {pipeline_mode = #tpu.pipeline_mode<synchronous>, transform_indices = @transform_1, window_bounds = array<i64: 5, 32, 64>}, {pipeline_mode = #tpu.pipeline_mode<synchronous>, transform_indices = @transform_2, window_bounds = array<i64: 1, 64>}, {transform_indices = @transform_3, window_bounds = array<i64: 1, 17, 64>}]} {
    %c0 = arith.constant 0 : index
    %c0_0 = arith.constant 0 : index
    %c0_1 = arith.constant 0 : index
    %0 = vector.load %arg1[%c0, %c0_0, %c0_1] : memref<1x21x32xf32, #tpu.memory_space<vmem>>, vector<1x21x32xf32>
    %1 = vector.shape_cast %0 : vector<1x21x32xf32> to vector<21x32xf32>
    %cst = arith.constant 0.000000e+00 : f32
    %2 = vector.broadcast %cst : f32 to vector<17x64xf32>
    %3 = vector.extract_strided_slice %1 {offsets = [0, 0], sizes = [17, 32], strides = [1, 1]} : vector<21x32xf32> to vector<17x32xf32>
    %c0_2 = arith.constant 0 : index
    %c0_3 = arith.constant 0 : index
    %c0_4 = arith.constant 0 : index
    %4 = vector.load %arg2[%c0_2, %c0_3, %c0_4] : memref<5x32x64xf32, #tpu.memory_space<vmem>>, vector<1x32x64xf32>
    %5 = vector.shape_cast %4 : vector<1x32x64xf32> to vector<32x64xf32>
    %cst_5 = arith.constant dense<0.000000e+00> : vector<17x64xf32>
    %6 = tpu.matmul %3, %5, %cst_5 {dimension_numbers = #tpu.dot_dimension_numbers<[1], [0], [0], [1], [0, 0, 1, 1], [], []>} : vector<17x32xf32>, vector<32x64xf32>, vector<17x64xf32> -> vector<17x64xf32>
    %7 = arith.addf %2, %6 : vector<17x64xf32>
    %8 = vector.extract_strided_slice %1 {offsets = [1, 0], sizes = [17, 32], strides = [1, 1]} : vector<21x32xf32> to vector<17x32xf32>
    %c1 = arith.constant 1 : index
    %c0_6 = arith.constant 0 : index
    %c0_7 = arith.constant 0 : index
    %9 = vector.load %arg2[%c1, %c0_6, %c0_7] : memref<5x32x64xf32, #tpu.memory_space<vmem>>, vector<1x32x64xf32>
    %10 = vector.shape_cast %9 : vector<1x32x64xf32> to vector<32x64xf32>
    %cst_8 = arith.constant dense<0.000000e+00> : vector<17x64xf32>
    %11 = tpu.matmul %8, %10, %cst_8 {dimension_numbers = #tpu.dot_dimension_numbers<[1], [0], [0], [1], [0, 0, 1, 1], [], []>} : vector<17x32xf32>, vector<32x64xf32>, vector<17x64xf32> -> vector<17x64xf32>
    %12 = arith.addf %7, %11 : vector<17x64xf32>
    %13 = vector.extract_strided_slice %1 {offsets = [2, 0], sizes = [17, 32], strides = [1, 1]} : vector<21x32xf32> to vector<17x32xf32>
    %c2 = arith.constant 2 : index
    %c0_9 = arith.constant 0 : index
    %c0_10 = arith.constant 0 : index
    %14 = vector.load %arg2[%c2, %c0_9, %c0_10] : memref<5x32x64xf32, #tpu.memory_space<vmem>>, vector<1x32x64xf32>
    %15 = vector.shape_cast %14 : vector<1x32x64xf32> to vector<32x64xf32>
    %cst_11 = arith.constant dense<0.000000e+00> : vector<17x64xf32>
    %16 = tpu.matmul %13, %15, %cst_11 {dimension_numbers = #tpu.dot_dimension_numbers<[1], [0], [0], [1], [0, 0, 1, 1], [], []>} : vector<17x32xf32>, vector<32x64xf32>, vector<17x64xf32> -> vector<17x64xf32>
    %17 = arith.addf %12, %16 : vector<17x64xf32>
    %18 = vector.extract_strided_slice %1 {offsets = [3, 0], sizes = [17, 32], strides = [1, 1]} : vector<21x32xf32> to vector<17x32xf32>
    %c3 = arith.constant 3 : index
    %c0_12 = arith.constant 0 : index
    %c0_13 = arith.constant 0 : index
    %19 = vector.load %arg2[%c3, %c0_12, %c0_13] : memref<5x32x64xf32, #tpu.memory_space<vmem>>, vector<1x32x64xf32>
    %20 = vector.shape_cast %19 : vector<1x32x64xf32> to vector<32x64xf32>
    %cst_14 = arith.constant dense<0.000000e+00> : vector<17x64xf32>
    %21 = tpu.matmul %18, %20, %cst_14 {dimension_numbers = #tpu.dot_dimension_numbers<[1], [0], [0], [1], [0, 0, 1, 1], [], []>} : vector<17x32xf32>, vector<32x64xf32>, vector<17x64xf32> -> vector<17x64xf32>
    %22 = arith.addf %17, %21 : vector<17x64xf32>
    %23 = vector.extract_strided_slice %1 {offsets = [4, 0], sizes = [17, 32], strides = [1, 1]} : vector<21x32xf32> to vector<17x32xf32>
    %c4 = arith.constant 4 : index
    %c0_15 = arith.constant 0 : index
    %c0_16 = arith.constant 0 : index
    %24 = vector.load %arg2[%c4, %c0_15, %c0_16] : memref<5x32x64xf32, #tpu.memory_space<vmem>>, vector<1x32x64xf32>
    %25 = vector.shape_cast %24 : vector<1x32x64xf32> to vector<32x64xf32>
    %cst_17 = arith.constant dense<0.000000e+00> : vector<17x64xf32>
    %26 = tpu.matmul %23, %25, %cst_17 {dimension_numbers = #tpu.dot_dimension_numbers<[1], [0], [0], [1], [0, 0, 1, 1], [], []>} : vector<17x32xf32>, vector<32x64xf32>, vector<17x64xf32> -> vector<17x64xf32>
    %27 = arith.addf %22, %26 : vector<17x64xf32>
    %c0_18 = arith.constant 0 : index
    %c0_19 = arith.constant 0 : index
    %28 = vector.load %arg3[%c0_18, %c0_19] : memref<1x64xf32, #tpu.memory_space<vmem>>, vector<1x64xf32>
    %29 = vector.broadcast %28 : vector<1x64xf32> to vector<17x64xf32>
    %30 = arith.addf %27, %29 : vector<17x64xf32>
    %c0_20 = arith.constant 0 : index
    %c0_21 = arith.constant 0 : index
    %c0_22 = arith.constant 0 : index
    %31 = vector.load %arg4[%c0_20, %c0_21, %c0_22] : memref<1x17x64xf32, #tpu.memory_space<vmem>>, vector<1x17x64xf32>
    %32 = vector.shape_cast %31 : vector<1x17x64xf32> to vector<17x64xf32>
    %33 = vector.shape_cast %30 : vector<17x64xf32> to vector<1x17x64xf32>
    tpu.vector_store %arg4[%c0_20, %c0_21, %c0_22], %33 {strides = array<i32>} : memref<1x17x64xf32, #tpu.memory_space<vmem>>, vector<1x17x64xf32>,
    return
  }
  func.func @transform_0(%arg0: i32) -> (i32, i32, i32) {
    %c0_i32 = arith.constant 0 : i32
    %c0_i32_0 = arith.constant 0 : i32
    %c0_i32_1 = arith.constant 0 : i32
    return %arg0, %c0_i32, %c0_i32_0 : i32, i32, i32
  }
  func.func @transform_1(%arg0: i32) -> (i32, i32, i32) {
    %c0_i32 = arith.constant 0 : i32
    %c0_i32_0 = arith.constant 0 : i32
    %c0_i32_1 = arith.constant 0 : i32
    %c0_i32_2 = arith.constant 0 : i32
    return %c0_i32, %c0_i32_0, %c0_i32_1 : i32, i32, i32
  }
  func.func @transform_2(%arg0: i32) -> (i32, i32) {
    %c0_i32 = arith.constant 0 : i32
    %c0_i32_0 = arith.constant 0 : i32
    %c0_i32_1 = arith.constant 0 : i32
    return %c0_i32, %c0_i32_0 : i32, i32
  }
  func.func @transform_3(%arg0: i32) -> (i32, i32, i32) {
    %c0_i32 = arith.constant 0 : i32
    %c0_i32_0 = arith.constant 0 : i32
    %c0_i32_1 = arith.constant 0 : i32
    return %arg0, %c0_i32, %c0_i32_0 : i32, i32, i32
  }
}

</mosaic_0001>

<bundles_post_ra>
// kernel: model_forward.7
= control target key start
LH: loop header
LB: loop body
LE: loop exit
PB: predicated region body
PF: predicated region fallthrough
CT: control target
= control target key end

     0   :  { %s716_s18 = smov 0   ;;  %s789_s0 = inlined_call_operand.vmem [shape: f32[4,9,32], index: 0, kind: input, shape index: {}]   ;;  %s790_s1 = inlined_call_operand.vmem [shape: f32[4,9,32], index: 1, kind: input, shape index: {}]   ;;  %s791_s2 = inlined_call_operand.vmem [shape: f32[3,32,32], index: 2, kind: input, shape index: {}]   ;;  %s792_s3 = inlined_call_operand.vmem [shape: f32[1,32], index: 3, kind: input, shape index: {}]   ;;  %s793_s4 = inlined_call_operand.vmem [shape: f32[8,32], index: 4, kind: input, shape index: {}]   ;;  %s794_s5 = inlined_call_operand.vmem [shape: f32[4,8,32], index: 5, kind: output, shape index: {}]  }
   0x1 LB: > { %s588_s19 = sadd.s32 4294967295, %s682_s18   ;;  %p592_p0 = scmp.ge.s32.totalorder %s682_s18, 1  ;;  %s682_s18 = sphi %s716_s18, %s15_s18  }
   0x2   : > { %p197_p1 = scmp.lt.s32.totalorder %s682_s18, 5 }
   0x4   : > { %p198_p2 = pnand %p592_p0, %p197_p1 }
   0x5   : > { %p229_p3 = scmp.lt.s32.totalorder (!%p198_p2), %s588_s19, 3 }
   0x6   : > { %201 = sbr.rel (%p198_p2) target bundleno = 280 (0x118), region = 40 }
   0xb   : > { %v601_v0 = vld [vmem:[%s791_s2 + $0x38] sm:$0xff]  ;;  %v684_v2 = vmov 0.0   ;;  %v600_v3 = vld [vmem:[%s791_s2 + $0x30] sm:$0xff]  ;;  %s796_s19 = smov (!%p229_p3, %s588_s19), 3  ;;  %v599_v5 = vld [vmem:[%s791_s2 + $0x28] sm:$0xff]  ;;  %vm255_vm0 = vcmask 261120  }
   0xc   : > { %v249_v1 = vld [vmem:[%s791_s2 + $0x18] sm:$0xff]  ;;  %629 = vmatprep.subr.mxu0 %v684_v2  ;;  %640 = vmatprep.subr.mxu1 %v684_v2  ;;  %v248_v4 = vld [vmem:[%s791_s2 + $0x10] sm:$0xff]  ;;  %v247_v6 = vld [vmem:[%s791_s2 + $0x8] sm:$0xff]  ;;  %s612_s7 = sshll.u32 %s796_s19, 4  ;;  %vm685_vm1 = vmmov 0   ;;  %vm408_vm2 = vcmask 1046528  }
   0xd   : > { %630 = vmatpush3.msra.mxu0 %v601_v0  ;;  %641 = vmatpush3.msra.mxu1 %v249_v1  ;;  %v598_v7 = vld [vmem:[%s791_s2 + $0x20] sm:$0xff]  ;;  %s238_s12 = scalar_lea.vmem %s790_s1, %s612_s7  ;;  %s233_s17 = scalar_lea.vmem %s789_s0, %s612_s7  ;;  %v607_v12 = vld [vmem:[%s791_s2 + $0x58] sm:$0xff]  ;;  %v606_v13 = vld [vmem:[%s791_s2 + $0x50] sm:$0xff] }
   0xe   : > { %631 = vmatprep.subr.mxu0 %v684_v2  ;;  %642 = vmatprep.subr.mxu1 %v684_v2  ;;  %v245_v8 = vld [vmem:[%s238_s12] sm:$0xff]  ;;  %v244_v11 = vld [vmem:[%s233_s17 + $0x8] sm:$0x1]  ;;  %s597_s30 = sshll.u32 %s796_s19, 3 }
   0xf   : > { %632 = vmatpush3.msra.mxu0 %v600_v3  ;;  %643 = vmatpush3.msra.mxu1 %v248_v4  ;;  %v246_v9 = vld [vmem:[%s791_s2] sm:$0xff]  ;;  %v410_v15 = vrot.slane %v244_v11, 1  ;;  %v605_v16 = vld [vmem:[%s791_s2 + $0x48] sm:$0xff]  ;;  %s242_s10 = scalar_lea.vmem %s794_s5, %s597_s30 }
  0x10   : > { %633 = vmatprep.subr.mxu0 %v684_v2  ;;  %644 = vmatprep.subr.mxu1 %v684_v2  ;;  %v243_v10 = vld [vmem:[%s233_s17] sm:$0xff] }
  0x11   : > { %634 = vmatpush3.msra.mxu0 %v599_v5  ;;  %645 = vmatpush3.msra.mxu1 %v247_v6  ;;  %v409_v14 = vrot.slane %v243_v10, 1  ;;  %v604_v17 = vld [vmem:[%s791_s2 + $0x40] sm:$0xff] }
  0x12   : > { %635 = vmatprep.subr.mxu0 %v684_v2  ;;  %637 = vmatprep.mubr.msk.f32.mxu0 %vm685_vm1, %v684_v2  ;;  %v609_v25 = vld [vmem:[%s792_s3] ss:$0 sm:$0xff] }
  0x13   : > { %636 = vmatpush3.msra.mxu0 %v598_v7  ;;  %646 = vmatprep.subr.mxu1 %v684_v2  ;;  %v411_v18 = vsel %vm408_vm2, %v409_v14, %v410_v15  ;;  %v520_v53 = vld [vmem:[%s793_s4] sm:$0xff] }
  0x14   : > { %638 = vmatmul.mubr.msk.f32.vlgmr.msra.gmra.mxu0 %vm255_vm0, %v245_v8  ;;  %647 = vmatpush3.msra.mxu1 %v246_v9 }
  0x15   : > { %648 = vmatprep.mubr.msk.f32.mxu1 %vm685_vm1, %v684_v2  ;;  %651 = vmatprep.subr.mxu0 %v684_v2 }
  0x16   : > { %649 = vmatmul.mubr.msk.f32.vlgmr.msra.gmra.mxu1 %vm255_vm0, %v243_v10  ;;  %652 = vmatpush3.msra.mxu0 %v607_v12 }
  0x17   : > { %653 = vmatprep.subr.mxu0 %v684_v2  ;;  %659 = vmatprep.mubr.msk.f32.mxu0 %vm685_vm1, %v684_v2 }
  0x18   : > { %654 = vmatpush3.msra.mxu0 %v606_v13 }
  0x19   : > { %655 = vmatprep.subr.mxu0 %v684_v2 }
  0x1a   : > { %656 = vmatpush3.msra.mxu0 %v605_v16 }
  0x1b   : > { %657 = vmatprep.subr.mxu0 %v684_v2 }
  0x1c   : > { %658 = vmatpush3.msra.mxu0 %v604_v17 }
  0x1d   : > { %660 = vmatmul.mubr.msk.f32.vlgmr.msra.gmra.mxu0 %vm255_vm0, %v411_v18 }
  0xd4   : > { %v325_v19 = vpop.f32.mrf.mxu0 }
  0xd6   : > { %v398_v20 = vpop.f32.mrf.mxu1  ;;  %v639_v21 = vpop.f32.mrf.mxu0 }
  0xd7   : > { %v399_v23 = vadd.f32 %v398_v20, %v325_v19 }
  0xd8   : > { %v650_v22 = vpop.f32.mrf.mxu1 }
  0xdd   : > { %v480_v24 = vpop.f32.mrf.mxu0 }
  0xde   : > { %v484_v26 = vadd.f32 %v480_v24, %v399_v23 }
  0xdf   : > { %v661_v27 = vpop.f32.mrf.mxu0 }
  0xe0   : > { %v492_v28 = vadd.f32 %v609_v25, %v484_v26 }
  0xe2   : > { %v494_v29 = vmul.f32 0.70710677, %v492_v28  ;;  %v493_v51 = vmul.f32 0.5, %v492_v28 }
  0xe4   : > { %v495_v30 = vand.u32 2147483647, %v494_v29  ;;  %vm515_vm3 = vcmp.ge.f32.partialorder %v494_v29, 0.0 }
  0xe6   : > { %v496_v31 = vmul.f32 0.3275911, %v495_v30  ;;  %v509_v33 = vsub.f32 0.0, %v495_v30 }
  0xe8   : > { %v497_v32 = vadd.f32 1.0, %v496_v31  ;;  %v510_v34 = vmul.f32 %v509_v33, %v495_v30 }
  0xea   : > { %672 = vrcp.f32 %v497_v32  ;;  %v511_v37 = vmul.f32 1.442695, %v510_v34 }
  0xec   : > { %674 = vpow2.f32 %v511_v37 }
  0xf7   : > { %v673_v35 = vpop.eup %672 }
  0xf8   : > { %v500_v36 = vmul.f32 1.0614054, %v673_v35 }
  0xf9   : > { %v675_v46 = vpop.eup %674 }
  0xfa   : > { %v501_v38 = vadd.f32 -1.4531521, %v500_v36 }
  0xfc   : > { %v502_v39 = vmul.f32 %v673_v35, %v501_v38 }
  0xfe   : > { %v503_v40 = vadd.f32 1.4214138, %v502_v39 }
 0x100   : > { %v504_v41 = vmul.f32 %v673_v35, %v503_v40 }
 0x102   : > { %v505_v42 = vadd.f32 -0.28449672, %v504_v41 }
 0x104   : > { %v506_v43 = vmul.f32 %v673_v35, %v505_v42 }
 0x106   : > { %v507_v44 = vadd.f32 0.2548296, %v506_v43 }
 0x108   : > { %v508_v45 = vmul.f32 %v673_v35, %v507_v44 }
 0x10a   : > { %v513_v47 = vmul.f32 %v675_v46, %v508_v45 }
 0x10c   : > { %v514_v48 = vsub.f32 1.0, %v513_v47 }
 0x10e   : > { %v516_v49 = vsub.f32 0.0, %v514_v48 }
 0x110   : > { %v517_v50 = vsel %vm515_vm3, %v514_v48, %v516_v49 }
 0x111   : > { %v518_v52 = vadd.f32 1.0, %v517_v50 }
 0x113   : > { %v519_v54 = vmul.f32 %v518_v52, %v493_v51 }
 0x115   : > { %v521_v55 = vadd.f32 %v520_v53, %v519_v54 }
 0x117   : > { %522 = vst.msk [vmem:[%s242_s10] sm:$0xff] %vm255_vm0, %v521_v55 }
 0x118 PF: > { %s15_s18 = sadd.s32 1, %s682_s18  }
 0x119   : > { %p12_p4 = scmp.ge.s32.totalorder %s15_s18, 6  }
 0x11b   :  { %14 = sbr.rel (!%p12_p4) target bundleno = 1 (0x1), region = 75 }

// kernel: model_forward.6
= control target key start
LH: loop header
LB: loop body
LE: loop exit
PB: predicated region body
PF: predicated region fallthrough
CT: control target
= control target key end

     0   :  { %s644_s12 = smov 0   ;;  %s683_s0 = inlined_call_operand.vmem [shape: f32[4,18,8], index: 0, kind: input, shape index: {}]   ;;  %s684_s1 = inlined_call_operand.vmem [shape: f32[3,8,32], index: 1, kind: input, shape index: {}]   ;;  %s685_s2 = inlined_call_operand.vmem [shape: f32[1,32], index: 2, kind: input, shape index: {}]   ;;  %s686_s3 = inlined_call_operand.vmem [shape: f32[4,16,32], index: 3, kind: output, shape index: {}]  }
   0x1 LB: > { %s555_s13 = sadd.s32 4294967295, %s622_s12   ;;  %p559_p0 = scmp.ge.s32.totalorder %s622_s12, 1  ;;  %s622_s12 = sphi %s644_s12, %s13_s12  }
   0x2   : > { %p137_p1 = scmp.lt.s32.totalorder %s622_s12, 5 }
   0x4   : > { %p138_p2 = pnand %p559_p0, %p137_p1 }
   0x5   : > { %p161_p3 = scmp.lt.s32.totalorder (!%p138_p2), %s555_s13, 3 }
   0x6   : > { %141 = sbr.rel (%p138_p2) target bundleno = 275 (0x113), region = 32 }
   0xb   : > { %v563_v0 = vld [vmem:[%s684_s1 + $0x8] sm:$0xff]  ;;  %v174_v1 = vld [vmem:[%s684_s1] sm:$0xff]  ;;  %v568_v2 = vld [vmem:[%s684_s1 + $0x10] sm:$0xff]  ;;  %s688_s13 = smov (!%p161_p3, %s555_s13), 3  ;;  %vm186_vm0 = vcmask 64512   ;;  %vm180_vm1 = vcmask 1046528  }
   0xc   : > { %584 = vmatprep.subr.mxu0 %v563_v0  ;;  %589 = vmatprep.subr.mxu1 %v174_v1  ;;  %s599_s20 = smul.u32 24, %s688_s13  ;;  %vm347_vm2 = vcmask 1045504   ;;  %v571_v22 = vld [vmem:[%s685_s2] ss:$0 sm:$0xff]  ;;  %s574_s26 = sshll.u32 %s688_s13, 4  ;;  %vm497_vm4 = vcmask 261120  }
   0xd   : > { %585 = vmatpush3.msra.mxu0 %v563_v0  ;;  %590 = vmatpush3.msra.mxu1 %v174_v1  ;;  %s170_s29 = scalar_lea.vmem %s686_s3, %s574_s26 }
   0xe   : > { %594 = vmatprep.subr.mxu0 %v568_v2  ;;  %s165_s23 = scalar_lea.vmem %s683_s0, %s599_s20 }
   0xf   : > { %v171_v3 = vld [vmem:[%s165_s23] sm:$0xff]  ;;  %v172_v4 = vld [vmem:[%s165_s23 + $0x8] sm:$0xff]  ;;  %v173_v5 = vld [vmem:[%s165_s23 + $0x10] sm:$0x3] }
  0x10   : > { %v181_v6 = vrot.slane %v171_v3, 1  ;;  %v182_v7 = vrot.slane %v172_v4, 1  ;;  %591 = vmatprep.mubr.msk.f32.mxu1 %vm186_vm0, %v171_v3  ;;  %v184_v8 = vrot.slane %v173_v5, 1  ;;  %v351_v9 = vrot.slane %v173_v5, 2 }
  0x11   : > { %592 = vmatmul.mubr.msk.f32.vlgmr.msra.gmra.mxu1 %vm186_vm0, %v172_v4  ;;  %v348_v10 = vrot.slane %v171_v3, 2  ;;  %v349_v11 = vrot.slane %v172_v4, 2 }
  0x12   : > { %v183_v12 = vsel %vm180_vm1, %v181_v6, %v182_v7  ;;  %v185_v13 = vsel %vm180_vm1, %v182_v7, %v184_v8 }
  0x13   : > { %586 = vmatprep.mubr.msk.f32.mxu0 %vm186_vm0, %v183_v12  ;;  %v350_v14 = vsel %vm347_vm2, %v348_v10, %v349_v11  ;;  %v352_v15 = vsel %vm347_vm2, %v349_v11, %v351_v9 }
  0x14   : > { %587 = vmatmul.mubr.msk.f32.vlgmr.msra.gmra.mxu0 %vm186_vm0, %v185_v13 }
  0x15   : > { %595 = vmatpush3.msra.mxu0 %v568_v2  ;;  %596 = vmatprep.mubr.msk.f32.mxu0 %vm186_vm0, %v350_v14 }
  0x18   : > { %597 = vmatmul.mubr.msk.f32.vlgmr.msra.gmra.mxu0 %vm186_vm0, %v352_v15 }
  0xd1   : > { %v593_v16 = vpop.f32.mrf.mxu1 }
  0xd3   : > { %v336_v19 = vpop.f32.mrf.mxu1 }
  0xd4   : > { %v588_v17 = vpop.f32.mrf.mxu0 }
  0xd5   : > { %v342_v20 = vadd.f32 %v593_v16, %v588_v17 }
  0xd6   : > { %v257_v18 = vpop.f32.mrf.mxu0 }
  0xd7   : > { %v337_v23 = vadd.f32 %v336_v19, %v257_v18 }
  0xd8   : > { %v598_v21 = vpop.f32.mrf.mxu0 }
  0xd9   : > { %v433_v24 = vadd.f32 %v598_v21, %v342_v20 }
  0xda   : > { %v423_v25 = vpop.f32.mrf.mxu0 }
  0xdb   : > { %v442_v26 = vadd.f32 %v571_v22, %v433_v24  ;;  %v432_v27 = vadd.f32 %v423_v25, %v337_v23 }
  0xdd   : > { %v446_v28 = vmul.f32 0.70710677, %v442_v26  ;;  %v441_v29 = vadd.f32 %v571_v22, %v432_v27  ;;  %v444_v7 = vmul.f32 0.5, %v442_v26 }
  0xdf   : > { %v448_v30 = vand.u32 2147483647, %v446_v28  ;;  %v445_v31 = vmul.f32 0.70710677, %v441_v29  ;;  %vm488_vm3 = vcmp.ge.f32.partialorder %v446_v28, 0.0  ;;  %v443_v12 = vmul.f32 0.5, %v441_v29 }
  0xe1   : > { %v450_v32 = vmul.f32 0.3275911, %v448_v30  ;;  %v447_v33 = vand.u32 2147483647, %v445_v31  ;;  %v476_v37 = vsub.f32 0.0, %v448_v30  ;;  %vm487_vm5 = vcmp.ge.f32.partialorder %v445_v31, 0.0 }
  0xe3   : > { %v452_v34 = vadd.f32 1.0, %v450_v32  ;;  %v449_v35 = vmul.f32 0.3275911, %v447_v33  ;;  %v475_v38 = vsub.f32 0.0, %v447_v33  ;;  %v478_v39 = vmul.f32 %v476_v37, %v448_v30 }
  0xe5   : > { %608 = vrcp.f32 %v452_v34  ;;  %v451_v36 = vadd.f32 1.0, %v449_v35  ;;  %v477_v41 = vmul.f32 %v475_v38, %v447_v33  ;;  %v481_v43 = vmul.f32 1.442695, %v478_v39 }
  0xe7   : > { %610 = vrcp.f32 %v451_v36  ;;  %v479_v47 = vmul.f32 1.442695, %v477_v41 }
  0xe8   : > { %612 = vpow2.f32 %v481_v43 }
  0xe9   : > { %614 = vpow2.f32 %v479_v47 }
  0xf2   : > { %v609_v40 = vpop.eup %608 }
  0xf3   : > { %v458_v42 = vmul.f32 1.0614054, %v609_v40 }
  0xf4   : > { %v611_v44 = vpop.eup %610 }
  0xf5   : > { %v460_v45 = vadd.f32 -1.4531521, %v458_v42  ;;  %v457_v46 = vmul.f32 1.0614054, %v611_v44  ;;  %v613_v61 = vpop.eup %612 }
  0xf6   : > { %v615_v1 = vpop.eup %614 }
  0xf7   : > { %v462_v48 = vmul.f32 %v609_v40, %v460_v45  ;;  %v459_v49 = vadd.f32 -1.4531521, %v457_v46 }
  0xf9   : > { %v464_v50 = vadd.f32 1.4214138, %v462_v48  ;;  %v461_v51 = vmul.f32 %v611_v44, %v459_v49 }
  0xfb   : > { %v466_v52 = vmul.f32 %v609_v40, %v464_v50  ;;  %v463_v53 = vadd.f32 1.4214138, %v461_v51 }
  0xfd   : > { %v468_v54 = vadd.f32 -0.28449672, %v466_v52  ;;  %v465_v55 = vmul.f32 %v611_v44, %v463_v53 }
  0xff   : > { %v470_v56 = vmul.f32 %v609_v40, %v468_v54  ;;  %v467_v57 = vadd.f32 -0.28449672, %v465_v55 }
 0x101   : > { %v472_v58 = vadd.f32 0.2548296, %v470_v56  ;;  %v469_v59 = vmul.f32 %v611_v44, %v467_v57 }
 0x103   : > { %v474_v60 = vmul.f32 %v609_v40, %v472_v58  ;;  %v471_v62 = vadd.f32 0.2548296, %v469_v59 }
 0x105   : > { %v484_v63 = vmul.f32 %v613_v61, %v474_v60  ;;  %v473_v0 = vmul.f32 %v611_v44, %v471_v62 }
 0x107   : > { %v486_v2 = vsub.f32 1.0, %v484_v63  ;;  %v483_v3 = vmul.f32 %v615_v1, %v473_v0 }
 0x109   : > { %v490_v4 = vsub.f32 0.0, %v486_v2  ;;  %v485_v5 = vsub.f32 1.0, %v483_v3 }
 0x10b   : > { %v492_v6 = vsel %vm488_vm3, %v486_v2, %v490_v4  ;;  %v489_v9 = vsub.f32 0.0, %v485_v5 }
 0x10c   : > { %v494_v8 = vadd.f32 1.0, %v492_v6 }
 0x10d   : > { %v491_v11 = vsel %vm487_vm5, %v485_v5, %v489_v9 }
 0x10e   : > { %v496_v10 = vmul.f32 %v494_v8, %v444_v7  ;;  %v493_v13 = vadd.f32 1.0, %v491_v11 }
 0x110   : > { %499 = vst.msk [vmem:[%s170_s29 + $0x8] sm:$0xff] %vm497_vm4, %v496_v10  ;;  %v495_v14 = vmul.f32 %v493_v13, %v443_v12 }
 0x112   : > { %498 = vst.msk [vmem:[%s170_s29] sm:$0xff] %vm497_vm4, %v495_v14 }
 0x113 PF: > { %s13_s12 = sadd.s32 1, %s622_s12  }
 0x114   : > { %p10_p4 = scmp.ge.s32.totalorder %s13_s12, 6  }
 0x116   :  { %12 = sbr.rel (!%p10_p4) target bundleno = 1 (0x1), region = 64 }

// kernel: model_forward.9
= control target key start
LH: loop header
LB: loop body
LE: loop exit
PB: predicated region body
PF: predicated region fallthrough
CT: control target
= control target key end

     0   :  { %s2033_s18 = smov 0   ;;  %s2283_s0 = inlined_call_operand.vmem [shape: f32[4,8,32], index: 0, kind: input, shape index: {}]   ;;  %s2284_s1 = inlined_call_operand.vmem [shape: f32[1,32], index: 1, kind: input, shape index: {}]   ;;  %s2285_s2 = inlined_call_operand.vmem [shape: f32[1,32], index: 2, kind: input, shape index: {}]   ;;  %s2286_s3 = inlined_call_operand.vmem [shape: f32[32,96], index: 3, kind: input, shape index: {}]   ;;  %s2287_s4 = inlined_call_operand.vmem [shape: f32[1,96], index: 4, kind: input, shape index: {}]   ;;  %s2288_s5 = inlined_call_operand.vmem [shape: f32[32,32], index: 5, kind: input, shape index: {}]   ;;  %s2289_s6 = inlined_call_operand.vmem [shape: f32[1,32], index: 6, kind: input, shape index: {}]   ;;  %s2290_s7 = inlined_call_operand.vmem [shape: f32[1,32], index: 7, kind: input, shape index: {}]   ;;  %s2291_s8 = inlined_call_operand.vmem [shape: f32[1,32], index: 8, kind: input, shape index: {}]   ;;  %s2292_s9 = inlined_call_operand.vmem [shape: f32[32,128], index: 9, kind: input, shape index: {}]   ;;  %s2293_s10 = inlined_call_operand.vmem [shape: f32[1,128], index: 10, kind: input, shape index: {}]   ;;  %s2294_s11 = inlined_call_operand.vmem [shape: f32[128,32], index: 11, kind: input, shape index: {}]   ;;  %s2295_s12 = inlined_call_operand.vmem [shape: f32[1,32], index: 12, kind: input, shape index: {}]   ;;  %s2296_s13 = inlined_call_operand.vmem [shape: f32[1,32], index: 13, kind: input, shape index: {}]   ;;  %s2297_s14 = inlined_call_operand.vmem [shape: f32[1,32], index: 14, kind: input, shape index: {}]   ;;  %s2298_s15 = inlined_call_operand.vmem [shape: f32[4,8,32], index: 15, kind: output, shape index: {}]  }
   0x1 LB: > { %s1689_s19 = sadd.s32 4294967295, %s1935_s18   ;;  %p1693_p0 = scmp.ge.s32.totalorder %s1935_s18, 1  ;;  %s1935_s18 = sphi %s2033_s18, %s25_s18  }
   0x2   : > { %p436_p1 = scmp.lt.s32.totalorder %s1935_s18, 5 }
   0x4   : > { %p437_p2 = pnand %p1693_p0, %p436_p1 }
   0x5   : > { %p482_p3 = scmp.lt.s32.totalorder (!%p437_p2), %s1689_s19, 3  ;;  %s1939_s26 = smov (!%p437_p2), 96  }
   0x6   : > { %440 = sbr.rel (%p437_p2) target bundleno = 2724 (0xaa4), region = 80  ;;  %s1940_s27 = smov (!%p437_p2), 120  }
   0x7   : > { %s1941_s28 = smov (!%p437_p2), 88   ;;  %s1942_s29 = smov (!%p437_p2), 80  }
   0x8   : > { %s1943_s30 = smov (!%p437_p2), 72   ;;  %s1944_s16 = smov (!%p437_p2), 112  }
   0x9   : > { %s1945_s17 = smov (!%p437_p2), 104   ;;  %s1946_s21 = smov (!%p437_p2), 64  }
   0xa   : > { %s1947_s22 = smov (!%p437_p2), 48   ;;  %s1949_s24 = smov (!%p437_p2), 56  }
   0xb   : > { %s2300_s19 = smov (!%p482_p3, %s1689_s19), 3  ;;  %vm493_vm0 = vcmask 261120   ;;  %v525_v7 = vld [vmem:[%s2286_s3 + $0x18] sm:$0xff]  ;;  %v1937_v8 = vmov 0.0   ;;  %v524_v9 = vld [vmem:[%s2286_s3 + $0x10] sm:$0xff]  ;;  %vm1938_vm1 = vmmov 0  }
   0xc   : > { %s1694_s20 = sshll.u32 %s2300_s19, 3  ;;  %1771 = vmatprep.subr.mxu1 %v1937_v8  ;;  %1779 = vmatprep.mubr.msk.f32.mxu1 %vm1938_vm1, %v1937_v8  ;;  %v523_v10 = vld [vmem:[%s2286_s3 + $0x8] sm:$0xff]  ;;  %v522_v11 = vld [vmem:[%s2286_s3] sm:$0xff]  ;;  %vm610_vm2 = vcmask 64512   ;;  %vm1281_vm3 = vcmask 130048   ;;  %vm1283_vm4 = vcmask 195584  }
   0xd   : > { %s485_s23 = scalar_lea.vmem %s2283_s0, %s1694_s20  ;;  %1772 = vmatpush3.msra.mxu1 %v525_v7  ;;  %1792 = vmatprep.subr.mxu0 %v1937_v8  ;;  %v1696_v16 = vld [vmem:[%s2284_s1] ss:$0 sm:$0xff] }
   0xe   : > { %v2049_v0 = vld [vmem:[%s485_s23] sm:$0xff]  ;;  %1773 = vmatprep.subr.mxu1 %v1937_v8  ;;  %1794 = vmatprep.mubr.msk.f32.mxu0 %vm1938_vm1, %v1937_v8  ;;  %s1948_s23 = smov 40  }
   0xf   : > { %v494_v1 = vsel %vm493_vm0, %v2049_v0, 0.0  ;;  %1774 = vmatpush3.msra.mxu1 %v524_v9  ;;  %v1697_v18 = vld [vmem:[%s2285_s2] ss:$0 sm:$0xff] }
  0x10   : > { %495 = vadd.xlane.f32.xlu0 %v494_v1  ;;  %1775 = vmatprep.subr.mxu1 %v1937_v8  ;;  %v1698_v21 = vld [vmem:[%s2287_s4] ss:$0 sm:$0xff] }
  0x11   : > { %1776 = vmatpush3.msra.mxu1 %v523_v10 }
  0x12   : > { %1777 = vmatprep.subr.mxu1 %v1937_v8 }
  0x13   : > { %1778 = vmatpush3.msra.mxu1 %v522_v11 }
  0x14   : > { %1782 = vmatprep.subr.mxu1 %v1937_v8 }
  0x99   : > { %v496_v2 = vpop.xlane.xlu0 %495 }
  0x9a   : > { %v498_v3 = vmul.f32 0.03125, %v496_v2 }
  0x9c   : > { %v499_v4 = vsub.f32 %v2049_v0, %v498_v3 }
  0x9e   : > { %v500_v5 = vmul.f32 %v499_v4, %v499_v4 }
  0xa0   : > { %v501_v6 = vsel %vm493_vm0, %v500_v5, 0.0 }
  0xa1   : > { %502 = vadd.xlane.f32.xlu0 %v501_v6 }
 0x12a   : > { %v503_v12 = vpop.xlane.xlu0 %502 }
 0x12b   : > { %v504_v13 = vmul.f32 0.03125, %v503_v12 }
 0x12d   : > { %v505_v14 = vadd.f32 1e-05, %v504_v13 }
 0x12f   : > { %1903 = vrsqrt.f32 %v505_v14 }
 0x13c   : > { %v1904_v15 = vpop.eup %1903 }
 0x13d   : > { %v507_v17 = vmul.f32 %v1904_v15, %v499_v4 }
 0x13f   : > { %v514_v19 = vmul.f32 %v1696_v16, %v507_v17 }
 0x141   : > { %v521_v20 = vadd.f32 %v1697_v18, %v514_v19  ;;  %v1288_v19 = vld [vmem:[%s2288_s5 + $0x18] sm:$0xff] }
 0x143   : > { %1780 = vmatmul.mubr.msk.f32.vlgmr.msra.gmra.mxu1 %vm493_vm0, %v521_v20 }
 0x144   : > { %1784 = vmatprep.mubr.msk.f32.mxu1 %vm1938_vm1, %v1937_v8 }
 0x203   : > { %v602_v22 = vpop.f32.mrf.mxu1 }
 0x204   : > { %v2089_v23 = vadd.f32 %v1698_v21, %v602_v22  ;;  %v1287_v21 = vld [vmem:[%s2288_s5 + $0x10] sm:$0xff]  ;;  %v1286_v22 = vld [vmem:[%s2288_s5 + $0x8] sm:$0xff] }
 0x205   : > { %v1781_v24 = vpop.f32.mrf.mxu1 }
 0x206   : > { %608 = vrot.lane.b32.xlu1 %v2089_v23, %s1939_s26  ;;  %v606_v25 = vmul.f32 0.35355338, %v2089_v23  ;;  %v1285_v24 = vld [vmem:[%s2288_s5] sm:$0xff] }
 0x208   : > { %773 = vrot.lane.b32.xlu0 %v606_v25, %s1940_s27 }
 0x20a   : > { %775 = vrot.lane.b32.xlu1 %v2089_v23, %s1941_s28 }
 0x20e   : > { %940 = vrot.lane.b32.xlu1 %v2089_v23, %s1942_s29 }
 0x212   : > { %1105 = vrot.lane.b32.xlu1 %v2089_v23, %s1943_s30 }
 0x216   : > { %938 = vrot.lane.b32.xlu1 %v606_v25, %s1944_s16 }
 0x21a   : > { %1103 = vrot.lane.b32.xlu1 %v606_v25, %s1945_s17  ;;  %s489_s17 = scalar_lea.vmem %s2298_s15, %s1694_s20 }
 0x278   : > { %v609_v26 = vpop.permute.xlu1 %608 }
 0x279   : > { %1783 = vmatpush3.xpose.msk.msra.mxu1 %vm610_vm2, %v609_v26 }
 0x27a   : > { %1787 = vmatprep.subr.mxu1 %v1937_v8  ;;  %v774_v28 = vpop.permute.xlu0 %773 }
 0x27c   : > { %v776_v27 = vpop.permute.xlu1 %775  ;;  %1785 = vmatmul.mubr.msk.f32.vlgmr.msra.gmra.mxu1 %vm610_vm2, %v606_v25 }
 0x27d   : > { %1793 = vmatpush3.xpose.msk.msra.mxu0 %vm610_vm2, %v776_v27  ;;  %1789 = vmatprep.mubr.msk.f32.mxu1 %vm1938_vm1, %v1937_v8 }
 0x27e   : > { %1802 = vmatprep.subr.mxu0 %v1937_v8 }
 0x280   : > { %v941_v29 = vpop.permute.xlu1 %940  ;;  %1795 = vmatmul.mubr.msk.f32.vlgmr.msra.gmra.mxu0 %vm610_vm2, %v774_v28 }
 0x281   : > { %1803 = vmatpush3.xpose.msk.msra.mxu0 %vm610_vm2, %v941_v29  ;;  %1804 = vmatprep.mubr.msk.f32.mxu0 %vm1938_vm1, %v1937_v8 }
 0x282   : > { %1812 = vmatprep.subr.mxu0 %v1937_v8 }
 0x284   : > { %v1106_v30 = vpop.permute.xlu1 %1105 }
 0x288   : > { %v939_v31 = vpop.permute.xlu1 %938 }
 0x289   : > { %1805 = vmatmul.mubr.msk.f32.vlgmr.msra.gmra.mxu0 %vm610_vm2, %v939_v31 }
 0x28a   : > { %1813 = vmatpush3.xpose.msk.msra.mxu0 %vm610_vm2, %v1106_v30  ;;  %1814 = vmatprep.mubr.msk.f32.mxu0 %vm1938_vm1, %v1937_v8 }
 0x28b   : > { %1844 = vmatprep.subr.mxu0 %v1937_v8 }
 0x28c   : > { %v1104_v32 = vpop.permute.xlu1 %1103 }
 0x28d   : > { %1815 = vmatmul.mubr.msk.f32.vlgmr.msra.gmra.mxu0 %vm610_vm2, %v1104_v32 }
 0x28e   : > { %1876 = vmatprep.mubr.msk.f32.mxu0 %vm1938_vm1, %v1937_v8 }
 0x33c   : > { %v682_v33 = vpop.f32.mrf.mxu1 }
 0x33d   : > { %v686_v34 = vsel %vm610_vm2, %v682_v33, -inf }
 0x33e   : > { %687 = vmax.xlane.f32.xlu1 %v686_v34  ;;  %v1786_v35 = vpop.f32.mrf.mxu1 }
 0x340   : > { %v847_v36 = vpop.f32.mrf.mxu0 }
 0x341   : > { %v851_v37 = vsel %vm610_vm2, %v847_v36, -inf }
 0x342   : > { %852 = vmax.xlane.f32.xlu0 %v851_v37  ;;  %v1796_v38 = vpop.f32.mrf.mxu0 }
 0x343   : > { %v1713_v38 = vld [vmem:[%s2289_s6] ss:$0 sm:$0xff] }
 0x349   : > { %v1012_v39 = vpop.f32.mrf.mxu0 }
 0x34a   : > { %v1016_v40 = vsel %vm610_vm2, %v1012_v39, -inf }
 0x34b   : > { %v1806_v41 = vpop.f32.mrf.mxu0  ;;  %1017 = vmax.xlane.f32.xlu1 %v1016_v40 }
 0x34d   : > { %v1177_v42 = vpop.f32.mrf.mxu0 }
 0x34e   : > { %v1181_v43 = vsel %vm610_vm2, %v1177_v42, -inf }
 0x34f   : > { %1182 = vmax.xlane.f32.xlu0 %v1181_v43  ;;  %v1816_v44 = vpop.f32.mrf.mxu0 }
 0x35c   : > { %697 = vrot.lane.b32.xlu1 %v2089_v23, %s1946_s21  ;;  %s1950_s21 = smov 8  }
 0x3c7   : > { %v688_v45 = vpop.xlane.xlu1 %687 }
 0x3c8   : > { %v689_v46 = vsub.f32 %v682_v33, %v688_v45 }
 0x3ca   : > { %v690_v47 = vmul.f32 1.442695, %v689_v46 }
 0x3cb   : > { %v853_v48 = vpop.xlane.xlu0 %852 }
 0x3cc   : > { %1905 = vpow2.f32 %v690_v47  ;;  %v854_v49 = vsub.f32 %v847_v36, %v853_v48  ;;  %v1403_v48 = vld [vmem:[%s2292_s9 + $0x18] sm:$0xff] }
 0x3ce   : > { %v855_v50 = vmul.f32 1.442695, %v854_v49  ;;  %v1401_v49 = vld [vmem:[%s2292_s9 + $0x8] sm:$0xff] }
 0x3d0   : > { %1907 = vpow2.f32 %v855_v50  ;;  %v1400_v50 = vld [vmem:[%s2292_s9] sm:$0xff] }
 0x3d4   : > { %v1018_v51 = vpop.xlane.xlu1 %1017 }
 0x3d5   : > { %v1019_v52 = vsub.f32 %v1012_v39, %v1018_v51 }
 0x3d7   : > { %v1020_v53 = vmul.f32 1.442695, %v1019_v52 }
 0x3d8   : > { %v1183_v54 = vpop.xlane.xlu0 %1182  ;;  %v698_v55 = vpop.permute.xlu1 %697 }
 0x3d9   : > { %v1906_v56 = vpop.eup %1905  ;;  %1909 = vpow2.f32 %v1020_v53  ;;  %v1184_v57 = vsub.f32 %v1177_v42, %v1183_v54  ;;  %1788 = vmatpush3.msra.mxu1 %v698_v55  ;;  %v1714_v55 = vld [vmem:[%s2290_s7] ss:$0 sm:$0xff] }
 0x3da   : > { %v692_v58 = vsel %vm610_vm2, %v1906_v56, 0.0  ;;  %1797 = vmatprep.subr.mxu1 %v1937_v8 }
 0x3db   : > { %v1185_v59 = vmul.f32 1.442695, %v1184_v57  ;;  %693 = vadd.xlane.f32.xlu1 %v692_v58  ;;  %v1715_v57 = vld [vmem:[%s2291_s8] ss:$0 sm:$0xff] }
 0x3dd   : > { %v1908_v60 = vpop.eup %1907  ;;  %1911 = vpow2.f32 %v1185_v59 }
 0x3de   : > { %v857_v61 = vsel %vm610_vm2, %v1908_v60, 0.0 }
 0x3df   : > { %858 = vadd.xlane.f32.xlu0 %v857_v61  ;;  %v1525_v61 = vld [vmem:[%s2294_s11 + $0x70] sm:$0xff] }
 0x3e6   : > { %v1910_v62 = vpop.eup %1909 }
 0x3e7   : > { %v1022_v63 = vsel %vm610_vm2, %v1910_v62, 0.0 }
 0x3e8   : > { %1023 = vadd.xlane.f32.xlu1 %v1022_v63  ;;  %v1523_v63 = vld [vmem:[%s2294_s11 + $0x60] sm:$0xff] }
 0x3ea   : > { %v1912_v1 = vpop.eup %1911 }
 0x3eb   : > { %v1187_v2 = vsel %vm610_vm2, %v1912_v1, 0.0 }
 0x3ec   : > { %1188 = vadd.xlane.f32.xlu0 %v1187_v2  ;;  %v1521_v2 = vld [vmem:[%s2294_s11 + $0x50] sm:$0xff] }
 0x3f9   : > { %1027 = vrot.lane.b32.xlu1 %v2089_v23, %s1947_s22  ;;  %s1951_s22 = smov 16  }
 0x3fd   : > { %1192 = vrot.lane.b32.xlu1 %v2089_v23, %s1948_s23  ;;  %s1952_s23 = smov 24  }
 0x402   : > { %862 = vrot.lane.b32.xlu0 %v2089_v23, %s1949_s24 }
 0x464   : > { %v694_v3 = vpop.xlane.xlu1 %693 }
 0x465   : > { %1913 = vrcp.f32 %v694_v3  ;;  %v1520_v3 = vld [vmem:[%s2294_s11 + $0x48] sm:$0xff] }
 0x468   : > { %v859_v4 = vpop.xlane.xlu0 %858 }
 0x469   : > { %1915 = vrcp.f32 %v859_v4  ;;  %v1519_v4 = vld [vmem:[%s2294_s11 + $0x40] sm:$0xff] }
 0x471   : > { %v1024_v5 = vpop.xlane.xlu1 %1023 }
 0x472   : > { %v1914_v6 = vpop.eup %1913  ;;  %1917 = vrcp.f32 %v1024_v5  ;;  %v1518_v5 = vld [vmem:[%s2294_s11 + $0x38] sm:$0xff] }
 0x473   : > { %v696_v7 = vmul.f32 %v1914_v6, %v1906_v56  ;;  %v1517_v6 = vld [vmem:[%s2294_s11 + $0x30] sm:$0xff] }
 0x475   : > { %v1189_v9 = vpop.xlane.xlu0 %1188  ;;  %1790 = vmatmul.mubr.msk.f32.vlgmr.msra.gmra.mxu1 %vm610_vm2, %v696_v7  ;;  %v1028_v13 = vpop.permute.xlu1 %1027  ;;  %v1516_v7 = vld [vmem:[%s2294_s11 + $0x28] sm:$0xff] }
 0x476   : > { %v1916_v10 = vpop.eup %1915  ;;  %1919 = vrcp.f32 %v1189_v9  ;;  %1799 = vmatprep.mubr.msk.f32.mxu1 %vm1938_vm1, %v1937_v8  ;;  %v1515_v9 = vld [vmem:[%s2294_s11 + $0x20] sm:$0xff] }
 0x477   : > { %v861_v12 = vmul.f32 %v1916_v10, %v1908_v60  ;;  %v1526_v60 = vld [vmem:[%s2294_s11 + $0x78] sm:$0xff] }
 0x478   : > { %1845 = vmatpush3.msra.mxu0 %v1526_v60  ;;  %v1514_v10 = vld [vmem:[%s2294_s11 + $0x18] sm:$0xff] }
 0x479   : > { %v863_v11 = vpop.permute.xlu0 %862  ;;  %v1193_v16 = vpop.permute.xlu1 %1192  ;;  %1846 = vmatprep.subr.mxu0 %v1937_v8 }
 0x47a   : > { %1798 = vmatpush3.msra.mxu1 %v863_v11  ;;  %1847 = vmatpush3.msra.mxu0 %v1525_v61  ;;  %v1513_v11 = vld [vmem:[%s2294_s11 + $0x10] sm:$0xff] }
 0x47b   : > { %1800 = vmatmul.mubr.msk.f32.vlgmr.msra.gmra.mxu1 %vm610_vm2, %v861_v12  ;;  %1807 = vmatprep.subr.mxu1 %v1937_v8  ;;  %v1512_v12 = vld [vmem:[%s2294_s11 + $0x8] sm:$0xff] }
 0x47c   : > { %1808 = vmatpush3.msra.mxu1 %v1028_v13  ;;  %1809 = vmatprep.mubr.msk.f32.mxu1 %vm1938_vm1, %v1937_v8  ;;  %v1511_v13 = vld [vmem:[%s2294_s11] sm:$0xff] }
 0x47d   : > { %1817 = vmatprep.subr.mxu1 %v1937_v8  ;;  %1848 = vmatprep.subr.mxu0 %v1937_v8 }
 0x47f   : > { %v1918_v14 = vpop.eup %1917 }
 0x480   : > { %v1026_v15 = vmul.f32 %v1918_v14, %v1910_v62  ;;  %v1524_v62 = vld [vmem:[%s2294_s11 + $0x68] sm:$0xff]  ;;  %v1716_v14 = vld [vmem:[%s2293_s10] ss:$0 sm:$0xff] }
 0x481   : > { %1849 = vmatpush3.msra.mxu0 %v1524_v62 }
 0x482   : > { %1810 = vmatmul.mubr.msk.f32.vlgmr.msra.gmra.mxu1 %vm610_vm2, %v1026_v15  ;;  %1850 = vmatprep.subr.mxu0 %v1937_v8 }
 0x483   : > { %v1920_v17 = vpop.eup %1919  ;;  %1818 = vmatpush3.msra.mxu1 %v1193_v16  ;;  %1819 = vmatprep.mubr.msk.f32.mxu1 %vm1938_vm1, %v1937_v8 }
 0x484   : > { %v1191_v18 = vmul.f32 %v1920_v17, %v1912_v1  ;;  %1822 = vmatprep.subr.mxu1 %v1937_v8  ;;  %1851 = vmatpush3.msra.mxu0 %v1523_v63  ;;  %v1522_v1 = vld [vmem:[%s2294_s11 + $0x58] sm:$0xff] }
 0x485   : > { %1852 = vmatprep.subr.mxu0 %v1937_v8 }
 0x486   : > { %1820 = vmatmul.mubr.msk.f32.vlgmr.msra.gmra.mxu1 %vm610_vm2, %v1191_v18  ;;  %1853 = vmatpush3.msra.mxu0 %v1522_v1 }
 0x487   : > { %1830 = vmatprep.mubr.msk.f32.mxu1 %vm1938_vm1, %v1937_v8  ;;  %1823 = vmatpush3.msra.mxu1 %v1288_v19 }
 0x488   : > { %1824 = vmatprep.subr.mxu1 %v1937_v8  ;;  %1854 = vmatprep.subr.mxu0 %v1937_v8 }
 0x489   : > { %1825 = vmatpush3.msra.mxu1 %v1287_v21  ;;  %1855 = vmatpush3.msra.mxu0 %v1521_v2 }
 0x48a   : > { %1826 = vmatprep.subr.mxu1 %v1937_v8  ;;  %1856 = vmatprep.subr.mxu0 %v1937_v8 }
 0x48b   : > { %1827 = vmatpush3.msra.mxu1 %v1286_v22  ;;  %1857 = vmatpush3.msra.mxu0 %v1520_v3 }
 0x48c   : > { %1828 = vmatprep.subr.mxu1 %v1937_v8  ;;  %1858 = vmatprep.subr.mxu0 %v1937_v8 }
 0x48d   : > { %1829 = vmatpush3.msra.mxu1 %v1285_v24  ;;  %1859 = vmatpush3.msra.mxu0 %v1519_v4 }
 0x48e   : > { %1833 = vmatprep.subr.mxu1 %v1937_v8  ;;  %1860 = vmatprep.subr.mxu0 %v1937_v8 }
 0x48f   : > { %1861 = vmatpush3.msra.mxu0 %v1518_v5 }
 0x490   : > { %1862 = vmatprep.subr.mxu0 %v1937_v8 }
 0x491   : > { %1863 = vmatpush3.msra.mxu0 %v1517_v6 }
 0x492   : > { %1864 = vmatprep.subr.mxu0 %v1937_v8 }
 0x493   : > { %1865 = vmatpush3.msra.mxu0 %v1516_v7 }
 0x494   : > { %1866 = vmatprep.subr.mxu0 %v1937_v8 }
 0x495   : > { %1867 = vmatpush3.msra.mxu0 %v1515_v9 }
 0x496   : > { %1868 = vmatprep.subr.mxu0 %v1937_v8 }
 0x497   : > { %1869 = vmatpush3.msra.mxu0 %v1514_v10 }
 0x498   : > { %1870 = vmatprep.subr.mxu0 %v1937_v8 }
 0x499   : > { %1871 = vmatpush3.msra.mxu0 %v1513_v11 }
 0x49a   : > { %1872 = vmatprep.subr.mxu0 %v1937_v8 }
 0x49b   : > { %1873 = vmatpush3.msra.mxu0 %v1512_v12 }
 0x49c   : > { %1874 = vmatprep.subr.mxu0 %v1937_v8 }
 0x49d   : > { %1875 = vmatpush3.msra.mxu0 %v1511_v13 }
 0x535   : > { %v769_v20 = vpop.f32.mrf.mxu1 }
 0x537   : > { %v1791_v23 = vpop.f32.mrf.mxu1 }
 0x53b   : > { %v934_v25 = vpop.f32.mrf.mxu1 }
 0x53c   : > { %1269 = vrot.lane.b32.xlu0 %v934_v25, %s1950_s21 }
 0x53d   : > { %v1801_v26 = vpop.f32.mrf.mxu1 }
 0x542   : > { %v1099_v27 = vpop.f32.mrf.mxu1 }
 0x543   : > { %1273 = vrot.lane.b32.xlu1 %v1099_v27, %s1951_s22 }
 0x544   : > { %v1811_v28 = vpop.f32.mrf.mxu1 }
 0x546   : > { %v1264_v29 = vpop.f32.mrf.mxu1 }
 0x547   : > { %1277 = vrot.lane.b32.xlu0 %v1264_v29, %s1952_s23 }
 0x548   : > { %v1821_v30 = vpop.f32.mrf.mxu1 }
 0x5ae   : > { %v1270_v31 = vpop.permute.xlu0 %1269 }
 0x5af   : > { %v1280_v33 = vsel %vm610_vm2, %v769_v20, %v1270_v31 }
 0x5b5   : > { %v1274_v32 = vpop.permute.xlu1 %1273 }
 0x5b6   : > { %v1282_v34 = vsel %vm1281_vm3, %v1280_v33, %v1274_v32 }
 0x5b9   : > { %v1278_v35 = vpop.permute.xlu0 %1277 }
 0x5ba   : > { %v1284_v36 = vsel %vm1283_vm4, %v1282_v34, %v1278_v35 }
 0x5bb   : > { %1831 = vmatmul.mubr.msk.f32.vlgmr.msra.gmra.mxu1 %vm493_vm0, %v1284_v36 }
 0x5bc   : > { %1841 = vmatprep.mubr.msk.f32.mxu1 %vm1938_vm1, %v1937_v8  ;;  %1834 = vmatpush3.msra.mxu1 %v1403_v48 }
 0x5bd   : > { %1835 = vmatprep.subr.mxu1 %v1937_v8 }
 0x67b   : > { %v1358_v37 = vpop.f32.mrf.mxu1 }
 0x67c   : > { %v1362_v39 = vadd.f32 %v1358_v37, %v2049_v0  ;;  %v1402_v0 = vld [vmem:[%s2292_s9 + $0x10] sm:$0xff] }
 0x67d   : > { %v1832_v40 = vpop.f32.mrf.mxu1  ;;  %1836 = vmatpush3.msra.mxu1 %v1402_v0 }
 0x67e   : > { %v2168_v41 = vadd.f32 %v1713_v38, %v1362_v39  ;;  %1837 = vmatprep.subr.mxu1 %v1937_v8 }
 0x67f   : > { %1838 = vmatpush3.msra.mxu1 %v1401_v49 }
 0x680   : > { %v1373_v42 = vsel %vm493_vm0, %v2168_v41, 0.0  ;;  %1839 = vmatprep.subr.mxu1 %v1937_v8 }
 0x681   : > { %1374 = vadd.xlane.f32.xlu1 %v1373_v42  ;;  %1840 = vmatpush3.msra.mxu1 %v1400_v50 }
 0x70a   : > { %v1375_v43 = vpop.xlane.xlu1 %1374 }
 0x70b   : > { %v1376_v44 = vmul.f32 0.03125, %v1375_v43 }
 0x70d   : > { %v1377_v45 = vsub.f32 %v2168_v41, %v1376_v44  ;;  %v1718_v44 = vld [vmem:[%s2295_s12] ss:$0 sm:$0xff] }
 0x70f   : > { %v1378_v46 = vmul.f32 %v1377_v45, %v1377_v45 }
 0x711   : > { %v1379_v47 = vsel %vm493_vm0, %v1378_v46, 0.0 }
 0x712   : > { %1380 = vadd.xlane.f32.xlu0 %v1379_v47 }
 0x79b   : > { %v1381_v51 = vpop.xlane.xlu0 %1380 }
 0x79c   : > { %v1382_v52 = vmul.f32 0.03125, %v1381_v51 }
 0x79e   : > { %v1383_v53 = vadd.f32 1e-05, %v1382_v52 }
 0x7a0   : > { %1921 = vrsqrt.f32 %v1383_v53 }
 0x7ad   : > { %v1922_v54 = vpop.eup %1921 }
 0x7ae   : > { %v1385_v56 = vmul.f32 %v1922_v54, %v1377_v45 }
 0x7b0   : > { %v1392_v58 = vmul.f32 %v1714_v55, %v1385_v56 }
 0x7b2   : > { %v1399_v59 = vadd.f32 %v1715_v57, %v1392_v58  ;;  %v1720_v58 = vld [vmem:[%s2297_s14] ss:$0 sm:$0xff] }
 0x7b4   : > { %1842 = vmatmul.mubr.msk.f32.vlgmr.msra.gmra.mxu1 %vm493_vm0, %v1399_v59 }
 0x874   : > { %v1480_v15 = vpop.f32.mrf.mxu1 }
 0x875   : > { %v1481_v16 = vadd.f32 %v1716_v14, %v1480_v15 }
 0x876   : > { %v1843_v17 = vpop.f32.mrf.mxu1 }
 0x877   : > { %v1485_v18 = vmul.f32 0.70710677, %v1481_v16  ;;  %v1484_v39 = vmul.f32 0.5, %v1481_v16 }
 0x879   : > { %v1486_v19 = vand.u32 2147483647, %v1485_v18  ;;  %vm1506_vm5 = vcmp.ge.f32.partialorder %v1485_v18, 0.0 }
 0x87b   : > { %v1487_v20 = vmul.f32 0.3275911, %v1486_v19  ;;  %v1500_v22 = vsub.f32 0.0, %v1486_v19 }
 0x87d   : > { %v1488_v21 = vadd.f32 1.0, %v1487_v20  ;;  %v1501_v23 = vmul.f32 %v1500_v22, %v1486_v19 }
 0x87f   : > { %1923 = vrcp.f32 %v1488_v21  ;;  %v1502_v26 = vmul.f32 1.442695, %v1501_v23 }
 0x881   : > { %1925 = vpow2.f32 %v1502_v26 }
 0x88c   : > { %v1924_v24 = vpop.eup %1923 }
 0x88d   : > { %v1491_v25 = vmul.f32 1.0614054, %v1924_v24 }
 0x88e   : > { %v1926_v34 = vpop.eup %1925 }
 0x88f   : > { %v1492_v27 = vadd.f32 -1.4531521, %v1491_v25 }
 0x891   : > { %v1493_v8 = vmul.f32 %v1924_v24, %v1492_v27 }
 0x893   : > { %v1494_v28 = vadd.f32 1.4214138, %v1493_v8 }
 0x895   : > { %v1495_v29 = vmul.f32 %v1924_v24, %v1494_v28 }
 0x897   : > { %v1496_v30 = vadd.f32 -0.28449672, %v1495_v29 }
 0x899   : > { %v1497_v31 = vmul.f32 %v1924_v24, %v1496_v30 }
 0x89b   : > { %v1498_v32 = vadd.f32 0.2548296, %v1497_v31 }
 0x89d   : > { %v1499_v33 = vmul.f32 %v1924_v24, %v1498_v32 }
 0x89f   : > { %v1504_v35 = vmul.f32 %v1926_v34, %v1499_v33 }
 0x8a1   : > { %v1505_v36 = vsub.f32 1.0, %v1504_v35 }
 0x8a3   : > { %v1507_v37 = vsub.f32 0.0, %v1505_v36 }
 0x8a5   : > { %v1508_v38 = vsel %vm1506_vm5, %v1505_v36, %v1507_v37 }
 0x8a6   : > { %v1509_v40 = vadd.f32 1.0, %v1508_v38 }
 0x8a8   : > { %v1510_v42 = vmul.f32 %v1509_v40, %v1484_v39 }
 0x8aa   : > { %1877 = vmatmul.mubr.f32.vlgmr.msra.gmra.mxu0 %v1510_v42 }
 0x96a   : > { %v1593_v43 = vpop.f32.mrf.mxu0 }
 0x96b   : > { %v1597_v45 = vadd.f32 %v1593_v43, %v2168_v41  ;;  %v1719_v41 = vld [vmem:[%s2296_s13] ss:$0 sm:$0xff] }
 0x96c   : > { %v1878_v46 = vpop.f32.mrf.mxu0 }
 0x96d   : > { %v1605_v47 = vadd.f32 %v1718_v44, %v1597_v45 }
 0x96f   : > { %v1608_v48 = vsel %vm493_vm0, %v1605_v47, 0.0 }
 0x970   : > { %1609 = vadd.xlane.f32.xlu0 %v1608_v48 }
 0x9f9   : > { %v1610_v0 = vpop.xlane.xlu0 %1609 }
 0x9fa   : > { %v1611_v49 = vmul.f32 0.03125, %v1610_v0 }
 0x9fc   : > { %v1612_v50 = vsub.f32 %v1605_v47, %v1611_v49 }
 0x9fe   : > { %v1613_v51 = vmul.f32 %v1612_v50, %v1612_v50 }
 0xa00   : > { %v1614_v52 = vsel %vm493_vm0, %v1613_v51, 0.0 }
 0xa01   : > { %1615 = vadd.xlane.f32.xlu1 %v1614_v52 }
 0xa8a   : > { %v1616_v53 = vpop.xlane.xlu1 %1615 }
 0xa8b   : > { %v1617_v54 = vmul.f32 0.03125, %v1616_v53 }
 0xa8d   : > { %v1618_v55 = vadd.f32 1e-05, %v1617_v54 }
 0xa8f   : > { %1927 = vrsqrt.f32 %v1618_v55 }
 0xa9c   : > { %v1928_v56 = vpop.eup %1927 }
 0xa9d   : > { %v1620_v57 = vmul.f32 %v1928_v56, %v1612_v50 }
 0xa9f   : > { %v1627_v59 = vmul.f32 %v1719_v41, %v1620_v57 }
 0xaa1   : > { %v1634_v60 = vadd.f32 %v1720_v58, %v1627_v59 }
 0xaa3   : > { %1635 = vst.msk [vmem:[%s489_s17] sm:$0xff] %vm493_vm0, %v1634_v60 }
 0xaa4 PF: > { %s25_s18 = sadd.s32 1, %s1935_s18  }
 0xaa5   : > { %p22_p4 = scmp.ge.s32.totalorder %s25_s18, 6  }
 0xaa7   :  { %24 = sbr.rel (!%p22_p4) target bundleno = 1 (0x1), region = 110 }

// kernel: model_forward.8
= control target key start
LH: loop header
LB: loop body
LE: loop exit
PB: predicated region body
PF: predicated region fallthrough
CT: control target
= control target key end

     0   :  { %s2000_s18 = smov 0   ;;  %s2242_s0 = inlined_call_operand.vmem [shape: f32[4,8,32], index: 0, kind: input, shape index: {}]   ;;  %s2243_s1 = inlined_call_operand.vmem [shape: f32[1,32], index: 1, kind: input, shape index: {}]   ;;  %s2244_s2 = inlined_call_operand.vmem [shape: f32[1,32], index: 2, kind: input, shape index: {}]   ;;  %s2245_s3 = inlined_call_operand.vmem [shape: f32[32,96], index: 3, kind: input, shape index: {}]   ;;  %s2246_s4 = inlined_call_operand.vmem [shape: f32[1,96], index: 4, kind: input, shape index: {}]   ;;  %s2247_s5 = inlined_call_operand.vmem [shape: f32[32,32], index: 5, kind: input, shape index: {}]   ;;  %s2248_s6 = inlined_call_operand.vmem [shape: f32[1,32], index: 6, kind: input, shape index: {}]   ;;  %s2249_s7 = inlined_call_operand.vmem [shape: f32[1,32], index: 7, kind: input, shape index: {}]   ;;  %s2250_s8 = inlined_call_operand.vmem [shape: f32[1,32], index: 8, kind: input, shape index: {}]   ;;  %s2251_s9 = inlined_call_operand.vmem [shape: f32[32,128], index: 9, kind: input, shape index: {}]   ;;  %s2252_s10 = inlined_call_operand.vmem [shape: f32[1,128], index: 10, kind: input, shape index: {}]   ;;  %s2253_s11 = inlined_call_operand.vmem [shape: f32[128,32], index: 11, kind: input, shape index: {}]   ;;  %s2254_s12 = inlined_call_operand.vmem [shape: f32[1,32], index: 12, kind: input, shape index: {}]   ;;  %s2255_s13 = inlined_call_operand.vmem [shape: f32[1,32], index: 13, kind: input, shape index: {}]   ;;  %s2256_s14 = inlined_call_operand.vmem [shape: f32[1,32], index: 14, kind: input, shape index: {}]   ;;  %s2257_s15 = inlined_call_operand.vmem [shape: f32[4,8,32], index: 15, kind: output, shape index: {}]  }
   0x1 LB: > { %s1660_s19 = sadd.s32 4294967295, %s1902_s18   ;;  %p1664_p0 = scmp.ge.s32.totalorder %s1902_s18, 1  ;;  %s1902_s18 = sphi %s2000_s18, %s25_s18  }
   0x2   : > { %p436_p1 = scmp.lt.s32.totalorder %s1902_s18, 5 }
   0x4   : > { %p437_p2 = pnand %p1664_p0, %p436_p1 }
   0x5   : > { %p482_p3 = scmp.lt.s32.totalorder (!%p437_p2), %s1660_s19, 3  ;;  %s1906_s22 = smov (!%p437_p2), 96  }
   0x6   : > { %440 = sbr.rel (%p437_p2) target bundleno = 2416 (0x970), region = 80  ;;  %s1907_s23 = smov (!%p437_p2), 120  }
   0x7   : > { %s1908_s24 = smov (!%p437_p2), 88   ;;  %s1909_s25 = smov (!%p437_p2), 80  }
   0x8   : > { %s1910_s26 = smov (!%p437_p2), 72   ;;  %s1911_s27 = smov (!%p437_p2), 112  }
   0x9   : > { %s1912_s28 = smov (!%p437_p2), 104   ;;  %s1913_s29 = smov (!%p437_p2), 64  }
   0xa   : > { %s1914_s30 = smov (!%p437_p2), 48   ;;  %s1915_s16 = smov (!%p437_p2), 40  }
   0xb   : > { %s2259_s19 = smov (!%p482_p3, %s1660_s19), 3  ;;  %vm493_vm0 = vcmask 261120   ;;  %v525_v7 = vld [vmem:[%s2245_s3 + $0x18] sm:$0xff]  ;;  %v1904_v8 = vmov 0.0   ;;  %v524_v9 = vld [vmem:[%s2245_s3 + $0x10] sm:$0xff]  ;;  %vm1905_vm1 = vmmov 0  }
   0xc   : > { %s1665_s13 = sshll.u32 %s2259_s19, 3  ;;  %1740 = vmatprep.subr.mxu1 %v1904_v8  ;;  %1748 = vmatprep.mubr.msk.f32.mxu1 %vm1905_vm1, %v1904_v8  ;;  %v523_v10 = vld [vmem:[%s2245_s3 + $0x8] sm:$0xff]  ;;  %v522_v11 = vld [vmem:[%s2245_s3] sm:$0xff]  ;;  %vm610_vm2 = vcmask 64512   ;;  %s1916_s17 = smov 56   ;;  %vm1281_vm3 = vcmask 130048  }
   0xd   : > { %s485_s21 = scalar_lea.vmem %s2242_s0, %s1665_s13  ;;  %1741 = vmatpush3.msra.mxu1 %v525_v7  ;;  %1761 = vmatprep.subr.mxu0 %v1904_v8  ;;  %v1667_v16 = vld [vmem:[%s2243_s1] ss:$0 sm:$0xff]  ;;  %vm1283_vm4 = vcmask 195584  }
   0xe   : > { %v2016_v0 = vld [vmem:[%s485_s21] sm:$0xff]  ;;  %1742 = vmatprep.subr.mxu1 %v1904_v8  ;;  %1763 = vmatprep.mubr.msk.f32.mxu0 %vm1905_vm1, %v1904_v8 }
   0xf   : > { %v494_v1 = vsel %vm493_vm0, %v2016_v0, 0.0  ;;  %1743 = vmatpush3.msra.mxu1 %v524_v9  ;;  %v1668_v18 = vld [vmem:[%s2244_s2] ss:$0 sm:$0xff] }
  0x10   : > { %495 = vadd.xlane.f32.xlu0 %v494_v1  ;;  %1744 = vmatprep.subr.mxu1 %v1904_v8  ;;  %v1669_v21 = vld [vmem:[%s2246_s4] ss:$0 sm:$0xff] }
  0x11   : > { %1745 = vmatpush3.msra.mxu1 %v523_v10 }
  0x12   : > { %1746 = vmatprep.subr.mxu1 %v1904_v8 }
  0x13   : > { %1747 = vmatpush3.msra.mxu1 %v522_v11 }
  0x14   : > { %1751 = vmatprep.subr.mxu1 %v1904_v8 }
  0x99   : > { %v496_v2 = vpop.xlane.xlu0 %495 }
  0x9a   : > { %v498_v3 = vmul.f32 0.03125, %v496_v2 }
  0x9c   : > { %v499_v4 = vsub.f32 %v2016_v0, %v498_v3 }
  0x9e   : > { %v500_v5 = vmul.f32 %v499_v4, %v499_v4 }
  0xa0   : > { %v501_v6 = vsel %vm493_vm0, %v500_v5, 0.0 }
  0xa1   : > { %502 = vadd.xlane.f32.xlu0 %v501_v6 }
 0x12a   : > { %v503_v12 = vpop.xlane.xlu0 %502 }
 0x12b   : > { %v504_v13 = vmul.f32 0.03125, %v503_v12 }
 0x12d   : > { %v505_v14 = vadd.f32 1e-05, %v504_v13 }
 0x12f   : > { %1872 = vrsqrt.f32 %v505_v14 }
 0x13c   : > { %v1873_v15 = vpop.eup %1872 }
 0x13d   : > { %v507_v17 = vmul.f32 %v1873_v15, %v499_v4 }
 0x13f   : > { %v514_v19 = vmul.f32 %v1667_v16, %v507_v17 }
 0x141   : > { %v521_v20 = vadd.f32 %v1668_v18, %v514_v19  ;;  %v1288_v19 = vld [vmem:[%s2247_s5 + $0x18] sm:$0xff] }
 0x143   : > { %1749 = vmatmul.mubr.msk.f32.vlgmr.msra.gmra.mxu1 %vm493_vm0, %v521_v20 }
 0x144   : > { %1753 = vmatprep.mubr.msk.f32.mxu1 %vm1905_vm1, %v1904_v8 }
 0x203   : > { %v602_v22 = vpop.f32.mrf.mxu1 }
 0x204   : > { %v2056_v23 = vadd.f32 %v1669_v21, %v602_v22  ;;  %v1287_v21 = vld [vmem:[%s2247_s5 + $0x10] sm:$0xff]  ;;  %v1286_v22 = vld [vmem:[%s2247_s5 + $0x8] sm:$0xff] }
 0x205   : > { %v1750_v24 = vpop.f32.mrf.mxu1 }
 0x206   : > { %608 = vrot.lane.b32.xlu1 %v2056_v23, %s1906_s22  ;;  %v606_v25 = vmul.f32 0.35355338, %v2056_v23  ;;  %v1285_v24 = vld [vmem:[%s2247_s5] sm:$0xff] }
 0x208   : > { %773 = vrot.lane.b32.xlu0 %v606_v25, %s1907_s23 }
 0x20a   : > { %775 = vrot.lane.b32.xlu1 %v2056_v23, %s1908_s24 }
 0x20e   : > { %940 = vrot.lane.b32.xlu1 %v2056_v23, %s1909_s25 }
 0x212   : > { %1105 = vrot.lane.b32.xlu1 %v2056_v23, %s1910_s26  ;;  %s489_s26 = scalar_lea.vmem %s2257_s15, %s1665_s13 }
 0x216   : > { %938 = vrot.lane.b32.xlu1 %v606_v25, %s1911_s27  ;;  %s1917_s27 = smov 8  }
 0x21a   : > { %1103 = vrot.lane.b32.xlu1 %v606_v25, %s1912_s28  ;;  %s1918_s28 = smov 16  }
 0x278   : > { %v609_v26 = vpop.permute.xlu1 %608 }
 0x279   : > { %1752 = vmatpush3.xpose.msk.msra.mxu1 %vm610_vm2, %v609_v26 }
 0x27a   : > { %1756 = vmatprep.subr.mxu1 %v1904_v8  ;;  %v774_v28 = vpop.permute.xlu0 %773 }
 0x27c   : > { %v776_v27 = vpop.permute.xlu1 %775  ;;  %1754 = vmatmul.mubr.msk.f32.vlgmr.msra.gmra.mxu1 %vm610_vm2, %v606_v25 }
 0x27d   : > { %1762 = vmatpush3.xpose.msk.msra.mxu0 %vm610_vm2, %v776_v27  ;;  %1758 = vmatprep.mubr.msk.f32.mxu1 %vm1905_vm1, %v1904_v8 }
 0x27e   : > { %1771 = vmatprep.subr.mxu0 %v1904_v8 }
 0x280   : > { %v941_v29 = vpop.permute.xlu1 %940  ;;  %1764 = vmatmul.mubr.msk.f32.vlgmr.msra.gmra.mxu0 %vm610_vm2, %v774_v28 }
 0x281   : > { %1772 = vmatpush3.xpose.msk.msra.mxu0 %vm610_vm2, %v941_v29  ;;  %1773 = vmatprep.mubr.msk.f32.mxu0 %vm1905_vm1, %v1904_v8 }
 0x282   : > { %1781 = vmatprep.subr.mxu0 %v1904_v8 }
 0x284   : > { %v1106_v30 = vpop.permute.xlu1 %1105 }
 0x288   : > { %v939_v31 = vpop.permute.xlu1 %938 }
 0x289   : > { %1774 = vmatmul.mubr.msk.f32.vlgmr.msra.gmra.mxu0 %vm610_vm2, %v939_v31 }
 0x28a   : > { %1782 = vmatpush3.xpose.msk.msra.mxu0 %vm610_vm2, %v1106_v30  ;;  %1783 = vmatprep.mubr.msk.f32.mxu0 %vm1905_vm1, %v1904_v8 }
 0x28b   : > { %1813 = vmatprep.subr.mxu0 %v1904_v8 }
 0x28c   : > { %v1104_v32 = vpop.permute.xlu1 %1103 }
 0x28d   : > { %1784 = vmatmul.mubr.msk.f32.vlgmr.msra.gmra.mxu0 %vm610_vm2, %v1104_v32 }
 0x28e   : > { %1845 = vmatprep.mubr.msk.f32.mxu0 %vm1905_vm1, %v1904_v8 }
 0x33c   : > { %v682_v33 = vpop.f32.mrf.mxu1 }
 0x33d   : > { %v686_v34 = vsel %vm610_vm2, %v682_v33, -inf }
 0x33e   : > { %687 = vmax.xlane.f32.xlu1 %v686_v34  ;;  %v1755_v35 = vpop.f32.mrf.mxu1 }
 0x340   : > { %v847_v36 = vpop.f32.mrf.mxu0 }
 0x341   : > { %v851_v37 = vsel %vm610_vm2, %v847_v36, -inf }
 0x342   : > { %852 = vmax.xlane.f32.xlu0 %v851_v37  ;;  %v1765_v38 = vpop.f32.mrf.mxu0 }
 0x343   : > { %v1684_v38 = vld [vmem:[%s2248_s6] ss:$0 sm:$0xff] }
 0x349   : > { %v1012_v39 = vpop.f32.mrf.mxu0 }
 0x34a   : > { %v1016_v40 = vsel %vm610_vm2, %v1012_v39, -inf }
 0x34b   : > { %v1775_v41 = vpop.f32.mrf.mxu0  ;;  %1017 = vmax.xlane.f32.xlu1 %v1016_v40 }
 0x34d   : > { %v1177_v42 = vpop.f32.mrf.mxu0 }
 0x34e   : > { %v1181_v43 = vsel %vm610_vm2, %v1177_v42, -inf }
 0x34f   : > { %1182 = vmax.xlane.f32.xlu0 %v1181_v43  ;;  %v1785_v44 = vpop.f32.mrf.mxu0 }
 0x35c   : > { %697 = vrot.lane.b32.xlu1 %v2056_v23, %s1913_s29  ;;  %s1919_s29 = smov 24  }
 0x3c7   : > { %v688_v45 = vpop.xlane.xlu1 %687 }
 0x3c8   : > { %v689_v46 = vsub.f32 %v682_v33, %v688_v45 }
 0x3ca   : > { %v690_v47 = vmul.f32 1.442695, %v689_v46 }
 0x3cb   : > { %v853_v48 = vpop.xlane.xlu0 %852 }
 0x3cc   : > { %1874 = vpow2.f32 %v690_v47  ;;  %v854_v49 = vsub.f32 %v847_v36, %v853_v48  ;;  %v1403_v48 = vld [vmem:[%s2251_s9 + $0x18] sm:$0xff] }
 0x3ce   : > { %v855_v50 = vmul.f32 1.442695, %v854_v49  ;;  %v1401_v49 = vld [vmem:[%s2251_s9 + $0x8] sm:$0xff] }
 0x3d0   : > { %1876 = vpow2.f32 %v855_v50  ;;  %v1400_v50 = vld [vmem:[%s2251_s9] sm:$0xff] }
 0x3d4   : > { %v1018_v51 = vpop.xlane.xlu1 %1017 }
 0x3d5   : > { %v1019_v52 = vsub.f32 %v1012_v39, %v1018_v51 }
 0x3d7   : > { %v1020_v53 = vmul.f32 1.442695, %v1019_v52 }
 0x3d8   : > { %v1183_v54 = vpop.xlane.xlu0 %1182  ;;  %v698_v55 = vpop.permute.xlu1 %697 }
 0x3d9   : > { %v1875_v56 = vpop.eup %1874  ;;  %1878 = vpow2.f32 %v1020_v53  ;;  %v1184_v57 = vsub.f32 %v1177_v42, %v1183_v54  ;;  %1757 = vmatpush3.msra.mxu1 %v698_v55  ;;  %v1685_v55 = vld [vmem:[%s2249_s7] ss:$0 sm:$0xff] }
 0x3da   : > { %v692_v58 = vsel %vm610_vm2, %v1875_v56, 0.0  ;;  %1766 = vmatprep.subr.mxu1 %v1904_v8 }
 0x3db   : > { %v1185_v59 = vmul.f32 1.442695, %v1184_v57  ;;  %693 = vadd.xlane.f32.xlu1 %v692_v58  ;;  %v1686_v57 = vld [vmem:[%s2250_s8] ss:$0 sm:$0xff] }
 0x3dd   : > { %v1877_v60 = vpop.eup %1876  ;;  %1880 = vpow2.f32 %v1185_v59 }
 0x3de   : > { %v857_v61 = vsel %vm610_vm2, %v1877_v60, 0.0 }
 0x3df   : > { %858 = vadd.xlane.f32.xlu0 %v857_v61  ;;  %v1525_v61 = vld [vmem:[%s2253_s11 + $0x70] sm:$0xff] }
 0x3e6   : > { %v1879_v62 = vpop.eup %1878 }
 0x3e7   : > { %v1022_v63 = vsel %vm610_vm2, %v1879_v62, 0.0 }
 0x3e8   : > { %1023 = vadd.xlane.f32.xlu1 %v1022_v63  ;;  %v1523_v63 = vld [vmem:[%s2253_s11 + $0x60] sm:$0xff] }
 0x3ea   : > { %v1881_v1 = vpop.eup %1880 }
 0x3eb   : > { %v1187_v2 = vsel %vm610_vm2, %v1881_v1, 0.0 }
 0x3ec   : > { %1188 = vadd.xlane.f32.xlu0 %v1187_v2  ;;  %v1521_v2 = vld [vmem:[%s2253_s11 + $0x50] sm:$0xff] }
 0x3f9   : > { %1027 = vrot.lane.b32.xlu1 %v2056_v23, %s1914_s30 }
 0x3fd   : > { %1192 = vrot.lane.b32.xlu1 %v2056_v23, %s1915_s16 }
 0x402   : > { %862 = vrot.lane.b32.xlu0 %v2056_v23, %s1916_s17 }
 0x464   : > { %v694_v3 = vpop.xlane.xlu1 %693 }
 0x465   : > { %1882 = vrcp.f32 %v694_v3  ;;  %v1520_v3 = vld [vmem:[%s2253_s11 + $0x48] sm:$0xff] }
 0x468   : > { %v859_v4 = vpop.xlane.xlu0 %858 }
 0x469   : > { %1884 = vrcp.f32 %v859_v4  ;;  %v1519_v4 = vld [vmem:[%s2253_s11 + $0x40] sm:$0xff] }
 0x471   : > { %v1024_v5 = vpop.xlane.xlu1 %1023 }
 0x472   : > { %v1883_v6 = vpop.eup %1882  ;;  %1886 = vrcp.f32 %v1024_v5  ;;  %v1518_v5 = vld [vmem:[%s2253_s11 + $0x38] sm:$0xff] }
 0x473   : > { %v696_v7 = vmul.f32 %v1883_v6, %v1875_v56  ;;  %v1517_v6 = vld [vmem:[%s2253_s11 + $0x30] sm:$0xff] }
 0x475   : > { %v1189_v9 = vpop.xlane.xlu0 %1188  ;;  %1759 = vmatmul.mubr.msk.f32.vlgmr.msra.gmra.mxu1 %vm610_vm2, %v696_v7  ;;  %v1028_v13 = vpop.permute.xlu1 %1027  ;;  %v1516_v7 = vld [vmem:[%s2253_s11 + $0x28] sm:$0xff] }
 0x476   : > { %v1885_v10 = vpop.eup %1884  ;;  %1888 = vrcp.f32 %v1189_v9  ;;  %1768 = vmatprep.mubr.msk.f32.mxu1 %vm1905_vm1, %v1904_v8  ;;  %v1515_v9 = vld [vmem:[%s2253_s11 + $0x20] sm:$0xff] }
 0x477   : > { %v861_v12 = vmul.f32 %v1885_v10, %v1877_v60  ;;  %v1526_v60 = vld [vmem:[%s2253_s11 + $0x78] sm:$0xff] }
 0x478   : > { %1814 = vmatpush3.msra.mxu0 %v1526_v60  ;;  %v1514_v10 = vld [vmem:[%s2253_s11 + $0x18] sm:$0xff] }
 0x479   : > { %v863_v11 = vpop.permute.xlu0 %862  ;;  %v1193_v16 = vpop.permute.xlu1 %1192  ;;  %1815 = vmatprep.subr.mxu0 %v1904_v8 }
 0x47a   : > { %1767 = vmatpush3.msra.mxu1 %v863_v11  ;;  %1816 = vmatpush3.msra.mxu0 %v1525_v61  ;;  %v1513_v11 = vld [vmem:[%s2253_s11 + $0x10] sm:$0xff] }
 0x47b   : > { %1769 = vmatmul.mubr.msk.f32.vlgmr.msra.gmra.mxu1 %vm610_vm2, %v861_v12  ;;  %1776 = vmatprep.subr.mxu1 %v1904_v8  ;;  %v1512_v12 = vld [vmem:[%s2253_s11 + $0x8] sm:$0xff] }
 0x47c   : > { %1777 = vmatpush3.msra.mxu1 %v1028_v13  ;;  %1778 = vmatprep.mubr.msk.f32.mxu1 %vm1905_vm1, %v1904_v8  ;;  %v1511_v13 = vld [vmem:[%s2253_s11] sm:$0xff] }
 0x47d   : > { %1786 = vmatprep.subr.mxu1 %v1904_v8  ;;  %1817 = vmatprep.subr.mxu0 %v1904_v8 }
 0x47f   : > { %v1887_v14 = vpop.eup %1886 }
 0x480   : > { %v1026_v15 = vmul.f32 %v1887_v14, %v1879_v62  ;;  %v1524_v62 = vld [vmem:[%s2253_s11 + $0x68] sm:$0xff]  ;;  %v1687_v14 = vld [vmem:[%s2252_s10] ss:$0 sm:$0xff] }
 0x481   : > { %1818 = vmatpush3.msra.mxu0 %v1524_v62 }
 0x482   : > { %1779 = vmatmul.mubr.msk.f32.vlgmr.msra.gmra.mxu1 %vm610_vm2, %v1026_v15  ;;  %1819 = vmatprep.subr.mxu0 %v1904_v8 }
 0x483   : > { %v1889_v17 = vpop.eup %1888  ;;  %1787 = vmatpush3.msra.mxu1 %v1193_v16  ;;  %1788 = vmatprep.mubr.msk.f32.mxu1 %vm1905_vm1, %v1904_v8 }
 0x484   : > { %v1191_v18 = vmul.f32 %v1889_v17, %v1881_v1  ;;  %1791 = vmatprep.subr.mxu1 %v1904_v8  ;;  %1820 = vmatpush3.msra.mxu0 %v1523_v63  ;;  %v1522_v1 = vld [vmem:[%s2253_s11 + $0x58] sm:$0xff] }
 0x485   : > { %1821 = vmatprep.subr.mxu0 %v1904_v8 }
 0x486   : > { %1789 = vmatmul.mubr.msk.f32.vlgmr.msra.gmra.mxu1 %vm610_vm2, %v1191_v18  ;;  %1822 = vmatpush3.msra.mxu0 %v1522_v1 }
 0x487   : > { %1799 = vmatprep.mubr.msk.f32.mxu1 %vm1905_vm1, %v1904_v8  ;;  %1792 = vmatpush3.msra.mxu1 %v1288_v19 }
 0x488   : > { %1793 = vmatprep.subr.mxu1 %v1904_v8  ;;  %1823 = vmatprep.subr.mxu0 %v1904_v8 }
 0x489   : > { %1794 = vmatpush3.msra.mxu1 %v1287_v21  ;;  %1824 = vmatpush3.msra.mxu0 %v1521_v2 }
 0x48a   : > { %1795 = vmatprep.subr.mxu1 %v1904_v8  ;;  %1825 = vmatprep.subr.mxu0 %v1904_v8 }
 0x48b   : > { %1796 = vmatpush3.msra.mxu1 %v1286_v22  ;;  %1826 = vmatpush3.msra.mxu0 %v1520_v3 }
 0x48c   : > { %1797 = vmatprep.subr.mxu1 %v1904_v8  ;;  %1827 = vmatprep.subr.mxu0 %v1904_v8 }
 0x48d   : > { %1798 = vmatpush3.msra.mxu1 %v1285_v24  ;;  %1828 = vmatpush3.msra.mxu0 %v1519_v4 }
 0x48e   : > { %1802 = vmatprep.subr.mxu1 %v1904_v8  ;;  %1829 = vmatprep.subr.mxu0 %v1904_v8 }
 0x48f   : > { %1830 = vmatpush3.msra.mxu0 %v1518_v5 }
 0x490   : > { %1831 = vmatprep.subr.mxu0 %v1904_v8 }
 0x491   : > { %1832 = vmatpush3.msra.mxu0 %v1517_v6 }
 0x492   : > { %1833 = vmatprep.subr.mxu0 %v1904_v8 }
 0x493   : > { %1834 = vmatpush3.msra.mxu0 %v1516_v7 }
 0x494   : > { %1835 = vmatprep.subr.mxu0 %v1904_v8 }
 0x495   : > { %1836 = vmatpush3.msra.mxu0 %v1515_v9 }
 0x496   : > { %1837 = vmatprep.subr.mxu0 %v1904_v8 }
 0x497   : > { %1838 = vmatpush3.msra.mxu0 %v1514_v10 }
 0x498   : > { %1839 = vmatprep.subr.mxu0 %v1904_v8 }
 0x499   : > { %1840 = vmatpush3.msra.mxu0 %v1513_v11 }
 0x49a   : > { %1841 = vmatprep.subr.mxu0 %v1904_v8 }
 0x49b   : > { %1842 = vmatpush3.msra.mxu0 %v1512_v12 }
 0x49c   : > { %1843 = vmatprep.subr.mxu0 %v1904_v8 }
 0x49d   : > { %1844 = vmatpush3.msra.mxu0 %v1511_v13 }
 0x535   : > { %v769_v20 = vpop.f32.mrf.mxu1 }
 0x537   : > { %v1760_v23 = vpop.f32.mrf.mxu1 }
 0x53b   : > { %v934_v25 = vpop.f32.mrf.mxu1 }
 0x53c   : > { %1269 = vrot.lane.b32.xlu0 %v934_v25, %s1917_s27 }
 0x53d   : > { %v1770_v26 = vpop.f32.mrf.mxu1 }
 0x542   : > { %v1099_v27 = vpop.f32.mrf.mxu1 }
 0x543   : > { %1273 = vrot.lane.b32.xlu1 %v1099_v27, %s1918_s28 }
 0x544   : > { %v1780_v28 = vpop.f32.mrf.mxu1 }
 0x546   : > { %v1264_v29 = vpop.f32.mrf.mxu1 }
 0x547   : > { %1277 = vrot.lane.b32.xlu0 %v1264_v29, %s1919_s29 }
 0x548   : > { %v1790_v30 = vpop.f32.mrf.mxu1 }
 0x5ae   : > { %v1270_v31 = vpop.permute.xlu0 %1269 }
 0x5af   : > { %v1280_v33 = vsel %vm610_vm2, %v769_v20, %v1270_v31 }
 0x5b5   : > { %v1274_v32 = vpop.permute.xlu1 %1273 }
 0x5b6   : > { %v1282_v34 = vsel %vm1281_vm3, %v1280_v33, %v1274_v32 }
 0x5b9   : > { %v1278_v35 = vpop.permute.xlu0 %1277 }
 0x5ba   : > { %v1284_v36 = vsel %vm1283_vm4, %v1282_v34, %v1278_v35 }
 0x5bb   : > { %1800 = vmatmul.mubr.msk.f32.vlgmr.msra.gmra.mxu1 %vm493_vm0, %v1284_v36 }
 0x5bc   : > { %1810 = vmatprep.mubr.msk.f32.mxu1 %vm1905_vm1, %v1904_v8  ;;  %1803 = vmatpush3.msra.mxu1 %v1403_v48 }
 0x5bd   : > { %1804 = vmatprep.subr.mxu1 %v1904_v8 }
 0x67b   : > { %v1358_v37 = vpop.f32.mrf.mxu1 }
 0x67c   : > { %v1362_v39 = vadd.f32 %v1358_v37, %v2016_v0  ;;  %v1402_v0 = vld [vmem:[%s2251_s9 + $0x10] sm:$0xff] }
 0x67d   : > { %v1801_v40 = vpop.f32.mrf.mxu1  ;;  %1805 = vmatpush3.msra.mxu1 %v1402_v0 }
 0x67e   : > { %v2135_v41 = vadd.f32 %v1684_v38, %v1362_v39  ;;  %1806 = vmatprep.subr.mxu1 %v1904_v8 }
 0x67f   : > { %1807 = vmatpush3.msra.mxu1 %v1401_v49 }
 0x680   : > { %v1373_v42 = vsel %vm493_vm0, %v2135_v41, 0.0  ;;  %1808 = vmatprep.subr.mxu1 %v1904_v8 }
 0x681   : > { %1374 = vadd.xlane.f32.xlu1 %v1373_v42  ;;  %1809 = vmatpush3.msra.mxu1 %v1400_v50 }
 0x70a   : > { %v1375_v43 = vpop.xlane.xlu1 %1374 }
 0x70b   : > { %v1376_v44 = vmul.f32 0.03125, %v1375_v43 }
 0x70d   : > { %v1377_v45 = vsub.f32 %v2135_v41, %v1376_v44  ;;  %v1689_v44 = vld [vmem:[%s2254_s12] ss:$0 sm:$0xff] }
 0x70f   : > { %v1378_v46 = vmul.f32 %v1377_v45, %v1377_v45 }
 0x711   : > { %v1379_v47 = vsel %vm493_vm0, %v1378_v46, 0.0 }
 0x712   : > { %1380 = vadd.xlane.f32.xlu0 %v1379_v47 }
 0x79b   : > { %v1381_v51 = vpop.xlane.xlu0 %1380 }
 0x79c   : > { %v1382_v52 = vmul.f32 0.03125, %v1381_v51 }
 0x79e   : > { %v1383_v53 = vadd.f32 1e-05, %v1382_v52 }
 0x7a0   : > { %1890 = vrsqrt.f32 %v1383_v53 }
 0x7ad   : > { %v1891_v54 = vpop.eup %1890 }
 0x7ae   : > { %v1385_v56 = vmul.f32 %v1891_v54, %v1377_v45 }
 0x7b0   : > { %v1392_v58 = vmul.f32 %v1685_v55, %v1385_v56 }
 0x7b2   : > { %v1399_v59 = vadd.f32 %v1686_v57, %v1392_v58 }
 0x7b4   : > { %1811 = vmatmul.mubr.msk.f32.vlgmr.msra.gmra.mxu1 %vm493_vm0, %v1399_v59 }
 0x874   : > { %v1480_v15 = vpop.f32.mrf.mxu1 }
 0x875   : > { %v1481_v16 = vadd.f32 %v1687_v14, %v1480_v15 }
 0x876   : > { %v1812_v17 = vpop.f32.mrf.mxu1 }
 0x877   : > { %v1485_v18 = vmul.f32 0.70710677, %v1481_v16  ;;  %v1484_v39 = vmul.f32 0.5, %v1481_v16 }
 0x879   : > { %v1486_v19 = vand.u32 2147483647, %v1485_v18  ;;  %vm1506_vm5 = vcmp.ge.f32.partialorder %v1485_v18, 0.0 }
 0x87b   : > { %v1487_v20 = vmul.f32 0.3275911, %v1486_v19  ;;  %v1500_v22 = vsub.f32 0.0, %v1486_v19 }
 0x87d   : > { %v1488_v21 = vadd.f32 1.0, %v1487_v20  ;;  %v1501_v23 = vmul.f32 %v1500_v22, %v1486_v19 }
 0x87f   : > { %1892 = vrcp.f32 %v1488_v21  ;;  %v1502_v26 = vmul.f32 1.442695, %v1501_v23 }
 0x881   : > { %1894 = vpow2.f32 %v1502_v26 }
 0x88c   : > { %v1893_v24 = vpop.eup %1892 }
 0x88d   : > { %v1491_v25 = vmul.f32 1.0614054, %v1893_v24 }
 0x88e   : > { %v1895_v34 = vpop.eup %1894 }
 0x88f   : > { %v1492_v27 = vadd.f32 -1.4531521, %v1491_v25 }
 0x891   : > { %v1493_v8 = vmul.f32 %v1893_v24, %v1492_v27 }
 0x893   : > { %v1494_v28 = vadd.f32 1.4214138, %v1493_v8 }
 0x895   : > { %v1495_v29 = vmul.f32 %v1893_v24, %v1494_v28 }
 0x897   : > { %v1496_v30 = vadd.f32 -0.28449672, %v1495_v29 }
 0x899   : > { %v1497_v31 = vmul.f32 %v1893_v24, %v1496_v30 }
 0x89b   : > { %v1498_v32 = vadd.f32 0.2548296, %v1497_v31 }
 0x89d   : > { %v1499_v33 = vmul.f32 %v1893_v24, %v1498_v32 }
 0x89f   : > { %v1504_v35 = vmul.f32 %v1895_v34, %v1499_v33 }
 0x8a1   : > { %v1505_v36 = vsub.f32 1.0, %v1504_v35 }
 0x8a3   : > { %v1507_v37 = vsub.f32 0.0, %v1505_v36 }
 0x8a5   : > { %v1508_v38 = vsel %vm1506_vm5, %v1505_v36, %v1507_v37 }
 0x8a6   : > { %v1509_v40 = vadd.f32 1.0, %v1508_v38 }
 0x8a8   : > { %v1510_v42 = vmul.f32 %v1509_v40, %v1484_v39 }
 0x8aa   : > { %1846 = vmatmul.mubr.f32.vlgmr.msra.gmra.mxu0 %v1510_v42 }
 0x96a   : > { %v1593_v43 = vpop.f32.mrf.mxu0 }
 0x96b   : > { %v1597_v45 = vadd.f32 %v1593_v43, %v2135_v41 }
 0x96c   : > { %v1847_v46 = vpop.f32.mrf.mxu0 }
 0x96d   : > { %v1605_v47 = vadd.f32 %v1689_v44, %v1597_v45 }
 0x96f   : > { %1606 = vst.msk [vmem:[%s489_s26] sm:$0xff] %vm493_vm0, %v1605_v47 }
 0x970 PF: > { %s25_s18 = sadd.s32 1, %s1902_s18  }
 0x971   : > { %p22_p4 = scmp.ge.s32.totalorder %s25_s18, 6  }
 0x973   :  { %24 = sbr.rel (!%p22_p4) target bundleno = 1 (0x1), region = 110 }

// kernel: model_forward.11
= control target key start
LH: loop header
LB: loop body
LE: loop exit
PB: predicated region body
PF: predicated region fallthrough
CT: control target
= control target key end

     0   :  { %v298_v0 = vmov 0.0   ;;  %vm299_vm0 = vmmov 0   ;;  %vm36_vm1 = vcmask 523264   ;;  %s407_s1 = inlined_call_operand.vmem [shape: f32[64,128], index: 1, kind: input, shape index: {}]   ;;  %s408_s0 = inlined_call_operand.vmem [shape: f32[40,64], index: 0, kind: input, shape index: {}]   ;;  %s409_s2 = inlined_call_operand.vmem [shape: f32[1,128], index: 2, kind: input, shape index: {}]   ;;  %s410_s4 = inlined_call_operand.vmem [shape: f32[40,128], index: 4, kind: output, shape index: {1}]   ;;  %s411_s3 = inlined_call_operand.vmem [shape: f32[40,128], index: 3, kind: output, shape index: {0}]  }
   0x1   :  { %229 = vmatprep.subr.mxu0 %v298_v0  ;;  %v28_v1 = vld [vmem:[%s407_s1 + $0x38] sm:$0xff]  ;;  %v27_v2 = vld [vmem:[%s407_s1 + $0x30] sm:$0xff]  ;;  %260 = vmatprep.subr.mxu1 %v298_v0  ;;  %v26_v3 = vld [vmem:[%s407_s1 + $0x28] sm:$0xff] }
   0x2   :  { %230 = vmatpush3.msra.mxu0 %v28_v1  ;;  %268 = vmatpush3.msra.mxu1 %v28_v1  ;;  %v25_v4 = vld [vmem:[%s407_s1 + $0x20] sm:$0xff]  ;;  %v24_v5 = vld [vmem:[%s407_s1 + $0x18] sm:$0xff]  ;;  %v23_v6 = vld [vmem:[%s407_s1 + $0x10] sm:$0xff] }
   0x3   :  { %231 = vmatprep.subr.mxu0 %v298_v0  ;;  %261 = vmatprep.subr.mxu1 %v298_v0  ;;  %v22_v7 = vld [vmem:[%s407_s1 + $0x8] sm:$0xff]  ;;  %v21_v8 = vld [vmem:[%s407_s1] sm:$0xff]  ;;  %v19_v10 = vld [vmem:[%s408_s0 + $0x18] sm:$0xff] }
   0x4   :  { %232 = vmatpush3.msra.mxu0 %v27_v2  ;;  %269 = vmatpush3.msra.mxu1 %v27_v2  ;;  %v16_v9 = vld [vmem:[%s408_s0] sm:$0xff]  ;;  %v17_v11 = vld [vmem:[%s408_s0 + $0x8] sm:$0xff]  ;;  %v18_v13 = vld [vmem:[%s408_s0 + $0x10] sm:$0xff] }
   0x5   :  { %233 = vmatprep.subr.mxu0 %v298_v0  ;;  %262 = vmatprep.subr.mxu1 %v298_v0  ;;  %v20_v12 = vld [vmem:[%s408_s0 + $0x20] sm:$0xff] }
   0x6   :  { %234 = vmatpush3.msra.mxu0 %v26_v3  ;;  %270 = vmatpush3.msra.mxu1 %v26_v3  ;;  %v210_v14 = vld [vmem:[%s409_s2] ss:$0 sm:$0xff] }
   0x7   :  { %235 = vmatprep.subr.mxu0 %v298_v0  ;;  %263 = vmatprep.subr.mxu1 %v298_v0 }
   0x8   :  { %236 = vmatpush3.msra.mxu0 %v25_v4  ;;  %271 = vmatpush3.msra.mxu1 %v25_v4 }
   0x9   :  { %237 = vmatprep.subr.mxu0 %v298_v0  ;;  %264 = vmatprep.subr.mxu1 %v298_v0 }
   0xa   :  { %238 = vmatpush3.msra.mxu0 %v24_v5  ;;  %272 = vmatpush3.msra.mxu1 %v24_v5 }
   0xb   :  { %239 = vmatprep.subr.mxu0 %v298_v0  ;;  %265 = vmatprep.subr.mxu1 %v298_v0 }
   0xc   :  { %240 = vmatpush3.msra.mxu0 %v23_v6  ;;  %273 = vmatpush3.msra.mxu1 %v23_v6 }
   0xd   :  { %241 = vmatprep.subr.mxu0 %v298_v0  ;;  %245 = vmatprep.mubr.msk.f32.mxu0 %vm299_vm0, %v298_v0 }
   0xe   :  { %242 = vmatpush3.msra.mxu0 %v22_v7  ;;  %266 = vmatprep.subr.mxu1 %v298_v0 }
   0xf   :  { %243 = vmatprep.subr.mxu0 %v298_v0  ;;  %274 = vmatpush3.msra.mxu1 %v22_v7 }
  0x10   :  { %244 = vmatpush3.msra.mxu0 %v21_v8  ;;  %267 = vmatprep.subr.mxu1 %v298_v0 }
  0x11   :  { %246 = vmatmul.mubr.msk.f32.vlgmr.msra.gmra.mxu0 %vm36_vm1, %v16_v9  ;;  %275 = vmatpush3.msra.mxu1 %v21_v8 }
  0x12   :  { %248 = vmatprep.mubr.msk.f32.mxu0 %vm299_vm0, %v298_v0  ;;  %254 = vmatprep.mubr.msk.f32.mxu1 %vm299_vm0, %v298_v0 }
  0x13   :  { %255 = vmatmul.mubr.msk.f32.vlgmr.msra.gmra.mxu1 %vm36_vm1, %v19_v10 }
  0x14   :  { %257 = vmatprep.mubr.msk.f32.mxu1 %vm299_vm0, %v298_v0 }
  0x15   :  { %249 = vmatmul.mubr.msk.f32.gmra.mxu0 %vm36_vm1, %v17_v11 }
  0x16   :  { %251 = vmatprep.mubr.msk.f32.mxu0 %vm299_vm0, %v298_v0 }
  0x17   :  { %258 = vmatmul.mubr.msk.f32.gmra.mxu1 %vm36_vm1, %v20_v12 }
  0x19   :  { %252 = vmatmul.mubr.msk.f32.gmra.mxu0 %vm36_vm1, %v18_v13 }
  0xd1   :  { %v118_v15 = vpop.f32.mrf.mxu0 }
  0xd2   :  { %v119_v16 = vadd.f32 %v210_v14, %v118_v15 }
  0xd3   :  { %v247_v17 = vpop.f32.mrf.mxu0  ;;  %v133_v18 = vpop.f32.mrf.mxu1 }
  0xd4   :  { %197 = vst [vmem:[%s410_s4] sm:$0xff] %v119_v16  ;;  %142 = vmax.xlane.f32.xlu0 %v119_v16  ;;  %v134_v19 = vadd.f32 %v210_v14, %v133_v18 }
  0xd5   :  { %v123_v20 = vpop.f32.mrf.mxu0  ;;  %v256_v21 = vpop.f32.mrf.mxu1 }
  0xd6   :  { %v124_v22 = vadd.f32 %v210_v14, %v123_v20  ;;  %200 = vst [vmem:[%s410_s4 + $0x18] sm:$0xff] %v134_v19 }
  0xd7   :  { %v250_v23 = vpop.f32.mrf.mxu0  ;;  %v138_v24 = vpop.f32.mrf.mxu1 }
  0xd8   :  { %198 = vst [vmem:[%s410_s4 + $0x8] sm:$0xff] %v124_v22  ;;  %144 = vmax.xlane.f32.xlu0 %v124_v22  ;;  %v139_v25 = vadd.f32 %v210_v14, %v138_v24 }
  0xd9   :  { %v128_v26 = vpop.f32.mrf.mxu0  ;;  %v259_v27 = vpop.f32.mrf.mxu1 }
  0xda   :  { %v129_v28 = vadd.f32 %v210_v14, %v128_v26  ;;  %201 = vst [vmem:[%s410_s4 + $0x20] sm:$0xff] %v139_v25 }
  0xdb   :  { %v253_v29 = vpop.f32.mrf.mxu0 }
  0xdc   :  { %199 = vst [vmem:[%s410_s4 + $0x10] sm:$0xff] %v129_v28  ;;  %150 = vmax.xlane.f32.xlu0 %v139_v25  ;;  %146 = vmax.xlane.f32.xlu1 %v129_v28 }
  0xe0   :  { %148 = vmax.xlane.f32.xlu1 %v134_v19 }
 0x15d   :  { %v143_v30 = vpop.xlane.xlu0 %142 }
 0x15e   :  { %v152_v31 = vsub.f32 %v119_v16, %v143_v30 }
 0x160   :  { %v157_v32 = vmul.f32 1.442695, %v152_v31 }
 0x161   :  { %v145_v33 = vpop.xlane.xlu0 %144 }
 0x162   :  { %278 = vpow2.f32 %v157_v32  ;;  %v153_v34 = vsub.f32 %v124_v22, %v145_v33 }
 0x164   :  { %v159_v35 = vmul.f32 1.442695, %v153_v34 }
 0x165   :  { %v151_v36 = vpop.xlane.xlu0 %150  ;;  %v147_v37 = vpop.xlane.xlu1 %146 }
 0x166   :  { %280 = vpow2.f32 %v159_v35  ;;  %v154_v38 = vsub.f32 %v129_v28, %v147_v37  ;;  %v156_v39 = vsub.f32 %v139_v25, %v151_v36 }
 0x168   :  { %v161_v40 = vmul.f32 1.442695, %v154_v38  ;;  %v165_v43 = vmul.f32 1.442695, %v156_v39 }
 0x169   :  { %v149_v41 = vpop.xlane.xlu1 %148 }
 0x16a   :  { %v155_v42 = vsub.f32 %v134_v19, %v149_v41  ;;  %282 = vpow2.f32 %v161_v40 }
 0x16c   :  { %v163_v44 = vmul.f32 1.442695, %v155_v42 }
 0x16e   :  { %284 = vpow2.f32 %v163_v44 }
 0x16f   :  { %v279_v45 = vpop.eup %278  ;;  %286 = vpow2.f32 %v165_v43 }
 0x170   :  { %167 = vadd.xlane.f32.xlu1 %v279_v45 }
 0x173   :  { %v281_v46 = vpop.eup %280 }
 0x174   :  { %169 = vadd.xlane.f32.xlu0 %v281_v46 }
 0x177   :  { %v283_v47 = vpop.eup %282 }
 0x178   :  { %171 = vadd.xlane.f32.xlu1 %v283_v47 }
 0x17b   :  { %v285_v48 = vpop.eup %284 }
 0x17c   :  { %v287_v49 = vpop.eup %286  ;;  %173 = vadd.xlane.f32.xlu0 %v285_v48 }
 0x17d   :  { %175 = vadd.xlane.f32.xlu1 %v287_v49 }
 0x1f9   :  { %v168_v50 = vpop.xlane.xlu1 %167 }
 0x1fa   :  { %288 = vlog2.f32 %v168_v50 }
 0x1fd   :  { %v170_v51 = vpop.xlane.xlu0 %169 }
 0x1fe   :  { %290 = vlog2.f32 %v170_v51 }
 0x201   :  { %v172_v52 = vpop.xlane.xlu1 %171 }
 0x202   :  { %292 = vlog2.f32 %v172_v52 }
 0x205   :  { %v174_v53 = vpop.xlane.xlu0 %173 }
 0x206   :  { %294 = vlog2.f32 %v174_v53  ;;  %v176_v54 = vpop.xlane.xlu1 %175 }
 0x207   :  { %v289_v55 = vpop.eup %288  ;;  %296 = vlog2.f32 %v176_v54 }
 0x208   :  { %v178_v56 = vmul.f32 0.6931472, %v289_v55 }
 0x20a   :  { %v187_v57 = vsub.f32 %v152_v31, %v178_v56 }
 0x20b   :  { %v291_v58 = vpop.eup %290 }
 0x20c   :  { %192 = vst [vmem:[%s411_s3] sm:$0xff] %v187_v57  ;;  %v180_v59 = vmul.f32 0.6931472, %v291_v58 }
 0x20e   :  { %v188_v60 = vsub.f32 %v153_v34, %v180_v59 }
 0x20f   :  { %v293_v61 = vpop.eup %292 }
 0x210   :  { %193 = vst [vmem:[%s411_s3 + $0x8] sm:$0xff] %v188_v60  ;;  %v182_v62 = vmul.f32 0.6931472, %v293_v61 }
 0x212   :  { %v189_v0 = vsub.f32 %v154_v38, %v182_v62 }
 0x213   :  { %v295_v63 = vpop.eup %294 }
 0x214   :  { %v297_v1 = vpop.eup %296  ;;  %v184_v2 = vmul.f32 0.6931472, %v295_v63  ;;  %194 = vst [vmem:[%s411_s3 + $0x10] sm:$0xff] %v189_v0 }
 0x215   :  { %v186_v3 = vmul.f32 0.6931472, %v297_v1 }
 0x216   :  { %v190_v4 = vsub.f32 %v155_v42, %v184_v2 }
 0x217   :  { %v191_v5 = vsub.f32 %v156_v39, %v186_v3 }
 0x218   :  { %195 = vst [vmem:[%s411_s3 + $0x18] sm:$0xff] %v190_v4 }
 0x219   :  { %196 = vst [vmem:[%s411_s3 + $0x20] sm:$0xff] %v191_v5 }

// kernel: model_forward.10
= control target key start
LH: loop header
LB: loop body
LE: loop exit
PB: predicated region body
PF: predicated region fallthrough
CT: control target
= control target key end

     0   :  { %s945_s12 = smov 0   ;;  %s1132_s0 = inlined_call_operand.vmem [shape: f32[4,21,32], index: 0, kind: input, shape index: {}]   ;;  %s1133_s1 = inlined_call_operand.vmem [shape: f32[5,32,64], index: 1, kind: input, shape index: {}]   ;;  %s1134_s2 = inlined_call_operand.vmem [shape: f32[1,64], index: 2, kind: input, shape index: {}]   ;;  %s1135_s3 = inlined_call_operand.vmem [shape: f32[4,17,64], index: 3, kind: output, shape index: {}]  }
   0x1 LB: > { %s735_s13 = sadd.s32 4294967295, %s921_s12   ;;  %p739_p0 = scmp.ge.s32.totalorder %s921_s12, 1  ;;  %s921_s12 = sphi %s945_s12, %s13_s12  }
   0x2   : > { %p137_p1 = scmp.lt.s32.totalorder %s921_s12, 5 }
   0x4   : > { %p138_p2 = pnand %p739_p0, %p137_p1 }
   0x5   : > { %p161_p3 = scmp.lt.s32.totalorder (!%p138_p2), %s735_s13, 3 }
   0x6   : > { %141 = sbr.rel (%p138_p2) target bundleno = 253 (0xfd), region = 32 }
   0xb   : > { %v745_v0 = vld [vmem:[%s1133_s1 + $0x38] sm:$0xff]  ;;  %v923_v1 = vmov 0.0   ;;  %v744_v2 = vld [vmem:[%s1133_s1 + $0x30] sm:$0xff]  ;;  %s1137_s13 = smov (!%p161_p3, %s735_s13), 3  ;;  %v743_v3 = vld [vmem:[%s1133_s1 + $0x28] sm:$0xff]  ;;  %vm192_vm0 = vcmask 261120  }
   0xc   : > { %896 = vmatprep.subr.mxu1 %v923_v1  ;;  %811 = vmatprep.subr.mxu0 %v923_v1  ;;  %s904_s20 = smul.u32 24, %s1137_s13  ;;  %v742_v4 = vld [vmem:[%s1133_s1 + $0x20] sm:$0xff]  ;;  %vm186_vm1 = vcmask 1046528   ;;  %vm924_vm2 = vmmov 0   ;;  %v177_v9 = vld [vmem:[%s1133_s1 + $0x18] sm:$0xff]  ;;  %v176_v13 = vld [vmem:[%s1133_s1 + $0x10] sm:$0xff] }
   0xd   : > { %900 = vmatpush3.msra.mxu1 %v745_v0  ;;  %812 = vmatpush3.msra.mxu0 %v745_v0  ;;  %v755_v14 = vld [vmem:[%s1133_s1 + $0x58] sm:$0xff]  ;;  %v175_v15 = vld [vmem:[%s1133_s1 + $0x8] sm:$0xff]  ;;  %v754_v16 = vld [vmem:[%s1133_s1 + $0x50] sm:$0xff]  ;;  %vm370_vm3 = vcmask 1045504   ;;  %vm470_vm4 = vcmask 1044480   ;;  %vm570_vm5 = vcmask 1043456  }
   0xe   : > { %897 = vmatprep.subr.mxu1 %v923_v1  ;;  %813 = vmatprep.subr.mxu0 %v923_v1  ;;  %s165_s25 = scalar_lea.vmem %s1132_s0, %s904_s20  ;;  %v174_v18 = vld [vmem:[%s1133_s1] sm:$0xff]  ;;  %v753_v21 = vld [vmem:[%s1133_s1 + $0x48] sm:$0xff]  ;;  %v762_v23 = vld [vmem:[%s1133_s1 + $0x78] sm:$0xff]  ;;  %s170_s11 = scalar_lea.vmem %s1135_s3, %s904_s20  ;;  %vm675_vm6 = vcmask 523264   ;;  %vm678_vm7 = vcmask 516096  }
   0xf   : > { %901 = vmatpush3.msra.mxu1 %v744_v2  ;;  %814 = vmatpush3.msra.mxu0 %v744_v2  ;;  %v981_v5 = vld [vmem:[%s165_s25 + $0x10] sm:$0x1f]  ;;  %v983_v6 = vld [vmem:[%s165_s25] sm:$0xff]  ;;  %v985_v7 = vld [vmem:[%s165_s25 + $0x8] sm:$0xff] }
  0x10   : > { %898 = vmatprep.subr.mxu1 %v923_v1  ;;  %815 = vmatprep.subr.mxu0 %v923_v1  ;;  %v190_v8 = vrot.slane %v981_v5, 1  ;;  %v187_v10 = vrot.slane %v983_v6, 1  ;;  %v188_v11 = vrot.slane %v985_v7, 1  ;;  %v371_v19 = vrot.slane %v983_v6, 2  ;;  %v752_v22 = vld [vmem:[%s1133_s1 + $0x40] sm:$0xff]  ;;  %v769_v26 = vld [vmem:[%s1133_s1 + $0x98] sm:$0xff] }
  0x11   : > { %902 = vmatpush3.msra.mxu1 %v743_v3  ;;  %816 = vmatpush3.msra.mxu0 %v743_v3  ;;  %v372_v20 = vrot.slane %v985_v7, 2  ;;  %v374_v25 = vrot.slane %v981_v5, 2  ;;  %v761_v27 = vld [vmem:[%s1133_s1 + $0x70] sm:$0xff]  ;;  %v760_v30 = vld [vmem:[%s1133_s1 + $0x68] sm:$0xff]  ;;  %v471_v31 = vrot.slane %v983_v6, 3  ;;  %v472_v32 = vrot.slane %v985_v7, 3 }
  0x12   : > { %899 = vmatprep.subr.mxu1 %v923_v1  ;;  %817 = vmatprep.subr.mxu0 %v923_v1  ;;  %v189_v12 = vsel %vm186_vm1, %v187_v10, %v188_v11  ;;  %v191_v17 = vsel %vm186_vm1, %v188_v11, %v190_v8  ;;  %v768_v29 = vld [vmem:[%s1133_s1 + $0x90] sm:$0xff]  ;;  %v767_v33 = vld [vmem:[%s1133_s1 + $0x88] sm:$0xff]  ;;  %v759_v34 = vld [vmem:[%s1133_s1 + $0x60] sm:$0xff]  ;;  %v571_v35 = vrot.slane %v983_v6, 4  ;;  %v572_v36 = vrot.slane %v985_v7, 4 }
  0x13   : > { %903 = vmatpush3.msra.mxu1 %v742_v4  ;;  %825 = vmatprep.mubr.msk.f32.mxu1 %vm924_vm2, %v923_v1  ;;  %v373_v24 = vsel %vm370_vm3, %v371_v19, %v372_v20  ;;  %v375_v28 = vsel %vm370_vm3, %v372_v20, %v374_v25  ;;  %v473_v37 = vsel %vm470_vm4, %v471_v31, %v472_v32  ;;  %v766_v38 = vld [vmem:[%s1133_s1 + $0x80] sm:$0xff]  ;;  %v474_v39 = vrot.slane %v981_v5, 3 }
  0x14   : > { %828 = vmatprep.subr.mxu1 %v923_v1  ;;  %818 = vmatpush3.msra.mxu0 %v742_v4  ;;  %v573_v40 = vsel %vm570_vm5, %v571_v35, %v572_v36  ;;  %v574_v41 = vrot.slane %v981_v5, 4 }
  0x15   : > { %819 = vmatprep.mubr.msk.f32.mxu0 %vm924_vm2, %v923_v1  ;;  %826 = vmatmul.mubr.msk.f32.vlgmr.msra.gmra.mxu1 %vm192_vm0, %v190_v8  ;;  %v475_v42 = vsel %vm470_vm4, %v472_v32, %v474_v39 }
  0x16   : > { %829 = vmatpush3.msra.mxu1 %v177_v9  ;;  %820 = vmatmul.mubr.msk.f32.vlgmr.msra.gmra.mxu0 %vm192_vm0, %v189_v12  ;;  %v575_v43 = vsel %vm570_vm5, %v572_v36, %v574_v41 }
  0x17   : > { %830 = vmatprep.subr.mxu1 %v923_v1  ;;  %845 = vmatprep.subr.mxu0 %v923_v1 }
  0x18   : > { %831 = vmatpush3.msra.mxu1 %v176_v13  ;;  %846 = vmatpush3.msra.mxu0 %v755_v14 }
  0x19   : > { %832 = vmatprep.subr.mxu1 %v923_v1  ;;  %847 = vmatprep.subr.mxu0 %v923_v1 }
  0x1a   : > { %822 = vmatprep.mubr.msk.f32.mxu0 %vm924_vm2, %v923_v1  ;;  %833 = vmatpush3.msra.mxu1 %v175_v15 }
  0x1b   : > { %848 = vmatpush3.msra.mxu0 %v754_v16  ;;  %834 = vmatprep.subr.mxu1 %v923_v1 }
  0x1c   : > { %823 = vmatmul.mubr.msk.f32.gmra.mxu0 %vm192_vm0, %v191_v17  ;;  %849 = vmatprep.subr.mxu0 %v923_v1 }
  0x1d   : > { %835 = vmatpush3.msra.mxu1 %v174_v18  ;;  %836 = vmatprep.mubr.msk.f32.mxu1 %vm924_vm2, %v923_v1 }
  0x1e   : > { %850 = vmatpush3.msra.mxu0 %v753_v21  ;;  %837 = vmatmul.mubr.msk.f32.vlgmr.msra.gmra.mxu1 %vm192_vm0, %v983_v6 }
  0x1f   : > { %851 = vmatprep.subr.mxu0 %v923_v1  ;;  %862 = vmatprep.subr.mxu1 %v923_v1 }
  0x20   : > { %852 = vmatpush3.msra.mxu0 %v752_v22  ;;  %853 = vmatprep.mubr.msk.f32.mxu0 %vm924_vm2, %v923_v1 }
  0x21   : > { %863 = vmatpush3.msra.mxu1 %v762_v23  ;;  %854 = vmatmul.mubr.msk.f32.vlgmr.msra.gmra.mxu0 %vm192_vm0, %v373_v24 }
  0x22   : > { %879 = vmatprep.subr.mxu0 %v923_v1  ;;  %839 = vmatprep.mubr.msk.f32.mxu1 %vm924_vm2, %v923_v1 }
  0x23   : > { %864 = vmatprep.subr.mxu1 %v923_v1  ;;  %880 = vmatpush3.msra.mxu0 %v769_v26 }
  0x24   : > { %840 = vmatmul.mubr.msk.f32.gmra.mxu1 %vm192_vm0, %v985_v7  ;;  %856 = vmatprep.mubr.msk.f32.mxu0 %vm924_vm2, %v923_v1 }
  0x25   : > { %865 = vmatpush3.msra.mxu1 %v761_v27  ;;  %881 = vmatprep.subr.mxu0 %v923_v1 }
  0x26   : > { %857 = vmatmul.mubr.msk.f32.gmra.mxu0 %vm192_vm0, %v375_v28  ;;  %866 = vmatprep.subr.mxu1 %v923_v1 }
  0x27   : > { %882 = vmatpush3.msra.mxu0 %v768_v29  ;;  %842 = vmatprep.mubr.msk.f32.mxu1 %vm924_vm2, %v923_v1 }
  0x28   : > { %867 = vmatpush3.msra.mxu1 %v760_v30  ;;  %883 = vmatprep.subr.mxu0 %v923_v1 }
  0x29   : > { %843 = vmatmul.mubr.msk.f32.gmra.mxu1 %vm192_vm0, %v981_v5  ;;  %859 = vmatprep.mubr.msk.f32.mxu0 %vm924_vm2, %v923_v1  ;;  %v773_v5 = vld [vmem:[%s1134_s2] ss:$0 sm:$0xff] }
  0x2a   : > { %868 = vmatprep.subr.mxu1 %v923_v1  ;;  %884 = vmatpush3.msra.mxu0 %v767_v33 }
  0x2b   : > { %860 = vmatmul.mubr.msk.f32.gmra.mxu0 %vm192_vm0, %v374_v25  ;;  %869 = vmatpush3.msra.mxu1 %v759_v34 }
  0x2c   : > { %870 = vmatprep.mubr.msk.f32.mxu1 %vm924_vm2, %v923_v1  ;;  %885 = vmatprep.subr.mxu0 %v923_v1 }
  0x2d   : > { %871 = vmatmul.mubr.msk.f32.vlgmr.msra.gmra.mxu1 %vm192_vm0, %v473_v37  ;;  %886 = vmatpush3.msra.mxu0 %v766_v38 }
  0x2e   : > { %887 = vmatprep.mubr.msk.f32.mxu0 %vm924_vm2, %v923_v1  ;;  %873 = vmatprep.mubr.msk.f32.mxu1 %vm924_vm2, %v923_v1 }
  0x2f   : > { %888 = vmatmul.mubr.msk.f32.vlgmr.msra.gmra.mxu0 %vm192_vm0, %v573_v40 }
  0x30   : > { %890 = vmatprep.mubr.msk.f32.mxu0 %vm924_vm2, %v923_v1 }
  0x31   : > { %874 = vmatmul.mubr.msk.f32.gmra.mxu1 %vm192_vm0, %v475_v42 }
  0x32   : > { %876 = vmatprep.mubr.msk.f32.mxu1 %vm924_vm2, %v923_v1 }
  0x33   : > { %891 = vmatmul.mubr.msk.f32.gmra.mxu0 %vm192_vm0, %v575_v43 }
  0x34   : > { %893 = vmatprep.mubr.msk.f32.mxu0 %vm924_vm2, %v923_v1 }
  0x35   : > { %877 = vmatmul.mubr.msk.f32.gmra.mxu1 %vm192_vm0, %v474_v39 }
  0x37   : > { %894 = vmatmul.mubr.msk.f32.gmra.mxu0 %vm192_vm0, %v574_v41 }
  0xd5   : > { %v275_v44 = vpop.f32.mrf.mxu1 }
  0xd6   : > { %v265_v45 = vpop.f32.mrf.mxu0 }
  0xd7   : > { %v827_v46 = vpop.f32.mrf.mxu1 }
  0xd8   : > { %v821_v47 = vpop.f32.mrf.mxu0 }
  0xdc   : > { %v270_v48 = vpop.f32.mrf.mxu0 }
  0xde   : > { %v824_v49 = vpop.f32.mrf.mxu0  ;;  %v351_v50 = vpop.f32.mrf.mxu1 }
  0xdf   : > { %v352_v57 = vadd.f32 %v351_v50, %v265_v45 }
  0xe0   : > { %v838_v51 = vpop.f32.mrf.mxu1 }
  0xe1   : > { %v448_v52 = vpop.f32.mrf.mxu0 }
  0xe2   : > { %v462_v62 = vadd.f32 %v448_v52, %v352_v57 }
  0xe3   : > { %v855_v53 = vpop.f32.mrf.mxu0 }
  0xe4   : > { %v356_v54 = vpop.f32.mrf.mxu1 }
  0xe5   : > { %v357_v63 = vadd.f32 %v356_v54, %v270_v48 }
  0xe6   : > { %v841_v55 = vpop.f32.mrf.mxu1  ;;  %v453_v56 = vpop.f32.mrf.mxu0 }
  0xe7   : > { %v463_v6 = vadd.f32 %v453_v56, %v357_v63 }
  0xe8   : > { %v858_v58 = vpop.f32.mrf.mxu0 }
  0xe9   : > { %v361_v59 = vpop.f32.mrf.mxu1 }
  0xea   : > { %v362_v7 = vadd.f32 %v361_v59, %v275_v44 }
  0xeb   : > { %v844_v60 = vpop.f32.mrf.mxu1  ;;  %v458_v61 = vpop.f32.mrf.mxu0 }
  0xec   : > { %v464_v15 = vadd.f32 %v458_v61, %v362_v7 }
  0xed   : > { %v861_v0 = vpop.f32.mrf.mxu0  ;;  %v548_v1 = vpop.f32.mrf.mxu1 }
  0xee   : > { %v562_v2 = vadd.f32 %v548_v1, %v462_v62 }
  0xef   : > { %v872_v3 = vpop.f32.mrf.mxu1  ;;  %v648_v4 = vpop.f32.mrf.mxu0 }
  0xf0   : > { %v662_v8 = vadd.f32 %v648_v4, %v562_v2 }
  0xf1   : > { %v553_v9 = vpop.f32.mrf.mxu1  ;;  %v889_v10 = vpop.f32.mrf.mxu0 }
  0xf2   : > { %v672_v11 = vadd.f32 %v773_v5, %v662_v8  ;;  %v563_v12 = vadd.f32 %v553_v9, %v463_v6 }
  0xf3   : > { %v875_v13 = vpop.f32.mrf.mxu1  ;;  %v653_v14 = vpop.f32.mrf.mxu0 }
  0xf4   : > { %676 = vst.msk [vmem:[%s170_s11] sm:$0xff] %vm675_vm6, %v672_v11  ;;  %v663_v16 = vadd.f32 %v653_v14, %v563_v12 }
  0xf5   : > { %v558_v17 = vpop.f32.mrf.mxu1  ;;  %v892_v18 = vpop.f32.mrf.mxu0 }
  0xf6   : > { %v673_v19 = vadd.f32 %v773_v5, %v663_v16  ;;  %v564_v20 = vadd.f32 %v558_v17, %v464_v15 }
  0xf7   : > { %v878_v21 = vpop.f32.mrf.mxu1  ;;  %v658_v22 = vpop.f32.mrf.mxu0 }
  0xf8   : > { %677 = vst.msk [vmem:[%s170_s11 + $0x8] sm:$0xff] %vm675_vm6, %v673_v19  ;;  %v664_v23 = vadd.f32 %v658_v22, %v564_v20 }
  0xf9   : > { %v895_v24 = vpop.f32.mrf.mxu0 }
  0xfa   : > { %v674_v25 = vadd.f32 %v773_v5, %v664_v23 }
  0xfc   : > { %679 = vst.msk [vmem:[%s170_s11 + $0x10] sm:$0x1] %vm678_vm7, %v674_v25 }
  0xfd PF: > { %s13_s12 = sadd.s32 1, %s921_s12  }
  0xfe   : > { %p10_p4 = scmp.ge.s32.totalorder %s13_s12, 6  }
 0x100   :  { %12 = sbr.rel (!%p10_p4) target bundleno = 1 (0x1), region = 66 }

</bundles_post_ra>
